<compile_context>
chip_gen: v6e
topology: v6e:2x2x1
jax: 0.10.0
libtpu: 0.0.40
codegen_flags: <defaults>
</compile_context>

<pallas_src>
import functools
import math

import numpy as np
import jax
import jax.numpy as jnp
from jax import lax
from jax.experimental import pallas as pl
from jax.experimental.pallas import tpu as pltpu

# ---------------------------------------------------------------------------
# constants
# ---------------------------------------------------------------------------

_SQRT2 = math.sqrt(2.0)
_SQRT2PI = math.sqrt(2.0 * math.pi)
_SQRT2_PI = math.sqrt(2.0 / math.pi)     # sqrt(2/pi)
_PI3_2 = math.pi ** 1.5
_PI2 = math.pi ** 2

# Abramowitz & Stegun 7.1.26 erf coefficients (|abs err| < 1.5e-7).
_ERF_P = 0.3275911
_ERF_A1 = 0.254829592
_ERF_A2 = -0.284496736
_ERF_A3 = 1.421413741
_ERF_A4 = -1.453152027
_ERF_A5 = 1.061405429

_NCONST = 7   # number of per-sigma scalar constants passed through SMEM


# ---------------------------------------------------------------------------
# Pallas kernel
# ---------------------------------------------------------------------------

def _erf_from_gauss(z, e):
    """erf(z) given e = exp(-z*z) (reuses the Gaussian exponential)."""
    sign = jnp.where(z < 0.0, -1.0, 1.0)
    az = jnp.abs(z)
    den = 1.0 + _ERF_P * az
    t = pl.reciprocal(den, approx=True)        # EUP vrcp (free slot)
    t = t * (2.0 - den * t)                    # one Newton step (accuracy insurance)
    poly = ((((_ERF_A5 * t + _ERF_A4) * t + _ERF_A3) * t + _ERF_A2) * t
            + _ERF_A1) * t
    return sign * (1.0 - poly * e)


def _interaction_kernel(consts_ref, ri0_ref, rif_ref, rj0_ref, rjf_ref, out_ref):
    """consts_ref: (7, nsigma) f32 in SMEM; radii refs: (BLK_ROWS, 128) in VMEM;
    out_ref: (nsigma, BLK_ROWS, 128) in VMEM."""
    nsig = out_ref.shape[0]
    blk_rows = ri0_ref.shape[0]
    n_strips = blk_rows // 8

    def strip_body(t, carry):
        r0 = pl.multiple_of(t * 8, 8)
        sl = pl.ds(r0, 8)

        ri0 = ri0_ref[sl, :]
        rif = rif_ref[sl, :]
        rj0 = rj0_ref[sl, :]
        rjf = rjf_ref[sl, :]

        # ---- sigma-independent per-strip quantities (shared by all channels) --
        ri0_2 = ri0 * ri0
        rif_2 = rif * rif
        ri0_3 = ri0_2 * ri0
        rif_3 = rif_2 * rif

        def ep_pre(rj):
            rj_2 = rj * rj
            return (rj, rj_2,
                    ri0 - rj, ri0 + rj, rif - rj, rif + rj,   # d1m, d1p, d2m, d2p
                    ri0 * rj, rif * rj,                        # x1, x2
                    ri0_2 + rj_2, rif_2 + rj_2,                # b1, b2
                    _SQRT2PI * rj)                             # sqrt(2*pi)*rj

        pre0 = ep_pre(rj0)
        pref = ep_pre(rjf)

        # ---- unrolled loop over the (few) sigma channels -----------------------
        for s in range(nsig):
            s6c = consts_ref[0, s]         # sqrt(2) pi^1.5 sigma^6
            s4c = consts_ref[1, s]         # 2/3 pi^2 sigma^4
            inv_s2s = consts_ref[2, s]     # 1 / (sqrt(2) sigma)
            two_sig = consts_ref[3, s]     # 2 sigma
            two_sig2 = consts_ref[4, s]    # 2 sigma^2
            three_sig2 = consts_ref[5, s]  # 3 sigma^2
            csig = consts_ref[6, s]        # sqrt(2/pi) sigma

            def gauss_erf(d):
                z = d * inv_s2s
                e = jnp.exp(-(z * z))                 # exp(-d^2 / (2 sigma^2))
                return e, _erf_from_gauss(z, e)

            def endpoint(pre):
                """(minus-variant - plus-variant) of one rj endpoint; returns the
                s^6 bracket and the s^4 bracket with all scale multiplies deferred."""
                (rj, rj_2, d1m, d1p, d2m, d2p, x1, x2, b1, b2, s2pirj) = pre
                e1m, f1m = gauss_erf(d1m)
                e1p, f1p = gauss_erf(d1p)
                e2m, f2m = gauss_erf(d2m)
                e2p, f2p = gauss_erf(d2p)
                e1d = e1m - e1p
                e1s = e1m + e1p
                e2d = e2m - e2p
                e2s = e2m + e2p
                f1d = f1m - f1p
                f1s = f1m + f1p
                f2d = f2m - f2p
                f2s = f2m + f2p
                fss = f1s - f2s
                # s^6 bracket
                b = two_sig * (e1d - e2d) - s2pirj * fss
                # s^4 bracket
                base1 = b1 + two_sig2
                base2 = b2 + two_sig2
                q = rj * (rj_2 + three_sig2)          # rj^3 + 3 sigma^2 rj
                c = (csig * (base2 * e2d + x2 * e2s - base1 * e1d - x1 * e1s)
                     + (rif_3 * f2d - ri0_3 * f1d + q * fss))
                return b, c

            b0, c0 = endpoint(pre0)
            bf, cf = endpoint(pref)
            res = s6c * (b0 - bf) + s4c * (c0 - cf)
            out_ref[s, sl, :] = res.astype(out_ref.dtype)

        return carry

    lax.fori_loop(0, n_strips, strip_body, 0)


# ---------------------------------------------------------------------------
# wrapper
# ---------------------------------------------------------------------------

@functools.partial(jax.jit, static_argnames=("blk_rows_max",))
def interaction_block_forward(ri0, rif, rj0, rjf, sigma, *, blk_rows_max=128):
    """Pallas-backed equivalent of InteractionBlock.forward.

    ri0, rif, rj0, rjf: (N,) float   sigma: (nsigma,) float
    returns: (N, nsigma) float32
    """
    n = ri0.shape[0]
    nsigma = sigma.shape[0]
    f32 = jnp.float32

    # --- pack the pair dimension onto (sublane, lane) = (rows, 128) ------------
    rows = max(1, (n + 127) // 128)
    rows8 = ((rows + 7) // 8) * 8
    # keep >= 2 grid blocks whenever possible so v7x can use both TensorCores
    g_min = 2 if rows8 >= 16 else 1
    g = max(g_min, (rows8 + blk_rows_max - 1) // blk_rows_max)
    blk_rows = (((rows8 + g - 1) // g) + 7) // 8 * 8
    rows_pad = g * blk_rows
    n_pad = rows_pad * 128
    pad = n_pad - n

    def prep(r):
        r = r.astype(f32).reshape(n)
        if pad:
            r = jnp.pad(r, (0, pad), constant_values=1.0)   # benign pad values
        return r.reshape(rows_pad, 128)

    # --- per-sigma scalar constants, computed once outside the kernel ----------
    sig = sigma.astype(f32)
    sig2 = sig * sig
    consts = jnp.stack([
        (_SQRT2 * _PI3_2) * (sig2 * sig2 * sig2),   # sqrt(2) pi^1.5 sigma^6
        ((2.0 / 3.0) * _PI2) * (sig2 * sig2),       # 2/3 pi^2 sigma^4
        1.0 / (_SQRT2 * sig),                       # 1 / (sqrt(2) sigma)
        2.0 * sig,                                  # 2 sigma
        2.0 * sig2,                                 # 2 sigma^2
        3.0 * sig2,                                 # 3 sigma^2
        _SQRT2_PI * sig,                            # sqrt(2/pi) sigma
    ], axis=0).astype(f32)                          # (7, nsigma)

    grid = (rows_pad // blk_rows,)
    radii_spec = pl.BlockSpec((blk_rows, 128), lambda i: (i, 0))

    out = pl.pallas_call(
        _interaction_kernel,
        out_shape=jax.ShapeDtypeStruct((nsigma, rows_pad, 128), f32),
        grid=grid,
        in_specs=[pl.BlockSpec(memory_space=pltpu.MemorySpace.SMEM),
                  radii_spec, radii_spec, radii_spec, radii_spec],
        out_specs=pl.BlockSpec((nsigma, blk_rows, 128), lambda i: (0, i, 0)),
        compiler_params=pltpu.CompilerParams(
            dimension_semantics=("parallel",)),
    )(consts, prep(ri0), prep(rif), prep(rj0), prep(rjf))

    # (nsigma, rows_pad, 128) -> (nsigma, n_pad) is a free row-major reshape;
    # the final transpose to the module's (N, nsigma) is a cheap XLA relayout.
    return out.reshape(nsigma, n_pad)[:, :n].T


# ---------------------------------------------------------------------------
# float64 host reference (literal transcription of the PyTorch function)
# ---------------------------------------------------------------------------

def _reference_f64(ri0, rif, rj0, rjf, sigma):
    erf = np.vectorize(math.erf)
    ri0 = np.asarray(ri0, np.float64)[:, None]
    rif = np.asarray(rif, np.float64)[:, None]
    rj0 = np.asarray(rj0, np.float64)[:, None]
    rjf = np.asarray(rjf, np.float64)[:, None]
    sigma = np.asarray(sigma, np.float64)[None, :]
    sqrt2 = np.sqrt(2.0)
    sqrt2pi = np.sqrt(2.0 * np.pi)
    sqrt2_pi = np.sqrt(2.0 / np.pi)
    sigma2_2 = 2 * sigma ** 2
    s6 = sqrt2 * np.pi ** 1.5 * sigma ** 6
    s4 = 2.0 / 3.0 * np.pi ** 2 * sigma ** 4
    sqrt2_sigma = sqrt2 * sigma

    def block(rj, plus):
        sgn = 1.0 if plus else -1.0
        d1 = ri0 + sgn * rj
        d2 = rif + sgn * rj
        e1 = np.exp(-d1 ** 2 / sigma2_2)
        e2 = np.exp(-d2 ** 2 / sigma2_2)
        f1 = erf(d1 / sqrt2_sigma)
        f2 = erf(d2 / sqrt2_sigma)
        if plus:
            tA = s6 * (2 * sigma * (e1 - e2) + sqrt2pi * rj * (f1 - f2))
            p1 = ri0 ** 2 - ri0 * rj + rj ** 2 + 2 * sigma ** 2
            p2 = rif ** 2 - rif * rj + rj ** 2 + 2 * sigma ** 2
            c1 = ri0 ** 3 + rj ** 3 + 3 * rj * sigma ** 2
            c2 = rif ** 3 + rj ** 3 + 3 * rj * sigma ** 2
        else:
            tA = s6 * (2 * sigma * (e1 - e2) - sqrt2pi * rj * (f1 - f2))
            p1 = ri0 ** 2 + ri0 * rj + rj ** 2 + 2 * sigma ** 2
            p2 = rif ** 2 + rif * rj + rj ** 2 + 2 * sigma ** 2
            c1 = ri0 ** 3 - rj * (rj ** 2 + 3 * sigma ** 2)
            c2 = rif ** 3 - rj * (rj ** 2 + 3 * sigma ** 2)
        tB = s4 * (-e1 * sqrt2_pi * sigma * p1 + e2 * sqrt2_pi * sigma * p2
                   - c1 * f1 + c2 * f2)
        return tA + tB

    # out = term1 + term2 - term3 - term4 - term5 - term6 + term7 + term8
    return (block(rj0, False) - block(rj0, True)
            - block(rjf, False) + block(rjf, True))


def _f32_noise_scale(ri0, rif, rj0, rjf, sigma):
    """Cancellation-free magnitude of the expression; eps32 * this is the
    intrinsic float32 noise floor of the corner-difference formula."""
    erf = np.vectorize(math.erf)
    ri0 = np.asarray(ri0, np.float64)[:, None]
    rif = np.asarray(rif, np.float64)[:, None]
    rj0 = np.asarray(rj0, np.float64)[:, None]
    rjf = np.asarray(rjf, np.float64)[:, None]
    sigma = np.asarray(sigma, np.float64)[None, :]
    sqrt2 = np.sqrt(2.0)
    sqrt2pi = np.sqrt(2.0 * np.pi)
    sqrt2_pi = np.sqrt(2.0 / np.pi)
    sigma2_2 = 2 * sigma ** 2
    s6 = sqrt2 * np.pi ** 1.5 * sigma ** 6
    s4 = 2.0 / 3.0 * np.pi ** 2 * sigma ** 4
    sqrt2_sigma = sqrt2 * sigma

    mag = np.zeros((ri0.shape[0], sigma.shape[1]), np.float64)
    for rj in (rj0, rjf):
        for sgn in (-1.0, 1.0):
            d1 = ri0 + sgn * rj
            d2 = rif + sgn * rj
            e1 = np.exp(-d1 ** 2 / sigma2_2)
            e2 = np.exp(-d2 ** 2 / sigma2_2)
            f1 = np.abs(erf(d1 / sqrt2_sigma))
            f2 = np.abs(erf(d2 / sqrt2_sigma))
            p1 = ri0 ** 2 + np.abs(ri0 * rj) + rj ** 2 + 2 * sigma ** 2
            p2 = rif ** 2 + np.abs(rif * rj) + rj ** 2 + 2 * sigma ** 2
            q = np.abs(rj ** 3 + 3 * rj * sigma ** 2)
            c1 = np.abs(ri0) ** 3 + q
            c2 = np.abs(rif) ** 3 + q
            mag = mag + s6 * (2 * sigma * (e1 + e2)
                              + sqrt2pi * np.abs(rj) * (f1 + f2))
            mag = mag + s4 * (sqrt2_pi * sigma * (e1 * p1 + e2 * p2)
                              + c1 * f1 + c2 * f2)
    return mag


# ---------------------------------------------------------------------------
# main
# ---------------------------------------------------------------------------

if __name__ == "__main__":
    key = jax.random.PRNGKey(0)
    k1, k2, k3, k4 = jax.random.split(key, 4)

    N = 1500        # number of shell pairs (exercises padding + a 2-step grid)
    NSIGMA = 5      # module default: sigma = linspace(8, 100, 5)

    # Deterministic synthetic shell radii: inner radius + positive thickness.
    ri0 = jax.random.uniform(k1, (N,), jnp.float32, 0.0, 10.0)
    rif = ri0 + jax.random.uniform(k2, (N,), jnp.float32, 1.0, 5.0)
    rj0 = jax.random.uniform(k3, (N,), jnp.float32, 0.0, 10.0)
    rjf = rj0 + jax.random.uniform(k4, (N,), jnp.float32, 1.0, 5.0)

    # Parameter init exactly as the module's __init__ (sigma=None, nsigma=5).
    sigma = jnp.linspace(8.0, 100.0, NSIGMA, dtype=jnp.float32)

    out = interaction_block_forward(ri0, rif, rj0, rjf, sigma)
    out = jax.block_until_ready(out)

    # float64 host reference (the PyTorch module computes in double precision).
    ref = _reference_f64(np.asarray(ri0), np.asarray(rif),
                         np.asarray(rj0), np.asarray(rjf), np.asarray(sigma))
    mag = _f32_noise_scale(np.asarray(ri0), np.asarray(rif),
                           np.asarray(rj0), np.asarray(rjf), np.asarray(sigma))

    out_np = np.asarray(out).astype(np.float64)
    assert out.shape == (N, NSIGMA)
    assert np.all(np.isfinite(out_np))

    # Tolerance = f32 forward-error bound of this ill-conditioned expression:
    # ~1e-4 * (cancellation-free magnitude) is ~800 f32 ulps of the largest
    # intermediates, plus a small relative slack on the reference itself.
    tol = 1e-4 * mag + 1e-3 * np.abs(ref) + 1e-6
    err = np.abs(out_np - ref)
    assert np.all(err <= tol), float(np.max(err / tol))

    print("KERNEL_OK")
</pallas_src>

<mosaic_0001>
module attributes {stable_mosaic.version = 11 : i64} {
  func.func @_interaction_kernel(%arg0: i32, %arg1: memref<7x5xf32, #tpu.memory_space<smem>>, %arg2: memref<8x128xf32, #tpu.memory_space<vmem>>, %arg3: memref<8x128xf32, #tpu.memory_space<vmem>>, %arg4: memref<8x128xf32, #tpu.memory_space<vmem>>, %arg5: memref<8x128xf32, #tpu.memory_space<vmem>>, %arg6: memref<5x8x128xf32, #tpu.memory_space<vmem>>) attributes {dimension_semantics = [#tpu.dimension_semantics<parallel>], iteration_bounds = array<i64: 2>, scalar_prefetch = 0 : i64, scratch_operands = 0 : i64, tpu.core_type = #tpu.core_type<tc>, window_params = [{transform_indices = @transform_0, window_bounds = array<i64: 7, 5>}, {transform_indices = @transform_1, window_bounds = array<i64: 8, 128>}, {transform_indices = @transform_2, window_bounds = array<i64: 8, 128>}, {transform_indices = @transform_3, window_bounds = array<i64: 8, 128>}, {transform_indices = @transform_4, window_bounds = array<i64: 8, 128>}, {transform_indices = @transform_5, window_bounds = array<i64: 5, 8, 128>}]} {
    %c0_i32 = arith.constant 0 : i32
    %c8_i32 = arith.constant 8 : i32
    %0 = arith.muli %c0_i32, %c8_i32 : i32
    %1 = tpu.assume_multiple %0, 8 : i32
    %2 = arith.index_cast %1 : i32 to index
    %c0 = arith.constant 0 : index
    %3 = vector.load %arg2[%2, %c0] : memref<8x128xf32, #tpu.memory_space<vmem>>, vector<8x128xf32>
    %4 = arith.index_cast %1 : i32 to index
    %c0_0 = arith.constant 0 : index
    %5 = vector.load %arg3[%4, %c0_0] : memref<8x128xf32, #tpu.memory_space<vmem>>, vector<8x128xf32>
    %6 = arith.index_cast %1 : i32 to index
    %c0_1 = arith.constant 0 : index
    %7 = vector.load %arg4[%6, %c0_1] : memref<8x128xf32, #tpu.memory_space<vmem>>, vector<8x128xf32>
    %8 = arith.index_cast %1 : i32 to index
    %c0_2 = arith.constant 0 : index
    %9 = vector.load %arg5[%8, %c0_2] : memref<8x128xf32, #tpu.memory_space<vmem>>, vector<8x128xf32>
    %10 = arith.mulf %3, %3 : vector<8x128xf32>
    %11 = arith.mulf %5, %5 : vector<8x128xf32>
    %12 = arith.mulf %10, %3 : vector<8x128xf32>
    %13 = arith.mulf %11, %5 : vector<8x128xf32>
    %14 = arith.mulf %7, %7 : vector<8x128xf32>
    %15 = arith.subf %3, %7 : vector<8x128xf32>
    %16 = arith.addf %3, %7 : vector<8x128xf32>
    %17 = arith.subf %5, %7 : vector<8x128xf32>
    %18 = arith.addf %5, %7 : vector<8x128xf32>
    %19 = arith.mulf %3, %7 : vector<8x128xf32>
    %20 = arith.mulf %5, %7 : vector<8x128xf32>
    %21 = arith.addf %10, %14 : vector<8x128xf32>
    %22 = arith.addf %11, %14 : vector<8x128xf32>
    %cst = arith.constant 2.50662827 : f32
    %23 = vector.broadcast %cst : f32 to vector<8x128xf32>
    %24 = arith.mulf %23, %7 : vector<8x128xf32>
    %25 = arith.mulf %9, %9 : vector<8x128xf32>
    %26 = arith.subf %3, %9 : vector<8x128xf32>
    %27 = arith.addf %3, %9 : vector<8x128xf32>
    %28 = arith.subf %5, %9 : vector<8x128xf32>
    %29 = arith.addf %5, %9 : vector<8x128xf32>
    %30 = arith.mulf %3, %9 : vector<8x128xf32>
    %31 = arith.mulf %5, %9 : vector<8x128xf32>
    %32 = arith.addf %10, %25 : vector<8x128xf32>
    %33 = arith.addf %11, %25 : vector<8x128xf32>
    %cst_3 = arith.constant 2.50662827 : f32
    %34 = vector.broadcast %cst_3 : f32 to vector<8x128xf32>
    %35 = arith.mulf %34, %9 : vector<8x128xf32>
    %c0_4 = arith.constant 0 : index
    %c0_5 = arith.constant 0 : index
    %36 = memref.load %arg1[%c0_4, %c0_5] : memref<7x5xf32, #tpu.memory_space<smem>>
    %c1 = arith.constant 1 : index
    %c0_6 = arith.constant 0 : index
    %37 = memref.load %arg1[%c1, %c0_6] : memref<7x5xf32, #tpu.memory_space<smem>>
    %c2 = arith.constant 2 : index
    %c0_7 = arith.constant 0 : index
    %38 = memref.load %arg1[%c2, %c0_7] : memref<7x5xf32, #tpu.memory_space<smem>>
    %c3 = arith.constant 3 : index
    %c0_8 = arith.constant 0 : index
    %39 = memref.load %arg1[%c3, %c0_8] : memref<7x5xf32, #tpu.memory_space<smem>>
    %c4 = arith.constant 4 : index
    %c0_9 = arith.constant 0 : index
    %40 = memref.load %arg1[%c4, %c0_9] : memref<7x5xf32, #tpu.memory_space<smem>>
    %c5 = arith.constant 5 : index
    %c0_10 = arith.constant 0 : index
    %41 = memref.load %arg1[%c5, %c0_10] : memref<7x5xf32, #tpu.memory_space<smem>>
    %c6 = arith.constant 6 : index
    %c0_11 = arith.constant 0 : index
    %42 = memref.load %arg1[%c6, %c0_11] : memref<7x5xf32, #tpu.memory_space<smem>>
    %43 = vector.broadcast %38 : f32 to vector<8x128xf32>
    %44 = arith.mulf %15, %43 : vector<8x128xf32>
    %45 = arith.mulf %44, %44 : vector<8x128xf32>
    %cst_12 = arith.constant 0.000000e+00 : f32
    %46 = vector.broadcast %cst_12 : f32 to vector<8x128xf32>
    %47 = arith.subf %46, %45 : vector<8x128xf32>
    %48 = math.exp %47 : vector<8x128xf32>
    %cst_13 = arith.constant 0.000000e+00 : f32
    %49 = vector.broadcast %cst_13 : f32 to vector<8x128xf32>
    %50 = arith.cmpf olt, %44, %49 : vector<8x128xf32>
    %cst_14 = arith.constant -1.000000e+00 : f32
    %cst_15 = arith.constant 1.000000e+00 : f32
    %51 = vector.broadcast %cst_14 : f32 to vector<8x128xf32>
    %52 = vector.broadcast %cst_15 : f32 to vector<8x128xf32>
    %53 = arith.select %50, %51, %52 : vector<8x128xi1>, vector<8x128xf32>
    %54 = math.absf %44 : vector<8x128xf32>
    %cst_16 = arith.constant 0.327591091 : f32
    %55 = vector.broadcast %cst_16 : f32 to vector<8x128xf32>
    %56 = arith.mulf %55, %54 : vector<8x128xf32>
    %cst_17 = arith.constant 1.000000e+00 : f32
    %57 = vector.broadcast %cst_17 : f32 to vector<8x128xf32>
    %58 = arith.addf %57, %56 : vector<8x128xf32>
    %59 = tpu.reciprocal %58 {approx = true} : vector<8x128xf32> -> vector<8x128xf32>
    %60 = arith.mulf %58, %59 : vector<8x128xf32>
    %cst_18 = arith.constant 2.000000e+00 : f32
    %61 = vector.broadcast %cst_18 : f32 to vector<8x128xf32>
    %62 = arith.subf %61, %60 : vector<8x128xf32>
    %63 = arith.mulf %59, %62 : vector<8x128xf32>
    %cst_19 = arith.constant 1.06140542 : f32
    %64 = vector.broadcast %cst_19 : f32 to vector<8x128xf32>
    %65 = arith.mulf %64, %63 : vector<8x128xf32>
    %cst_20 = arith.constant -1.45315206 : f32
    %66 = vector.broadcast %cst_20 : f32 to vector<8x128xf32>
    %67 = arith.addf %65, %66 : vector<8x128xf32>
    %68 = arith.mulf %67, %63 : vector<8x128xf32>
    %cst_21 = arith.constant 1.42141378 : f32
    %69 = vector.broadcast %cst_21 : f32 to vector<8x128xf32>
    %70 = arith.addf %68, %69 : vector<8x128xf32>
    %71 = arith.mulf %70, %63 : vector<8x128xf32>
    %cst_22 = arith.constant -0.284496725 : f32
    %72 = vector.broadcast %cst_22 : f32 to vector<8x128xf32>
    %73 = arith.addf %71, %72 : vector<8x128xf32>
    %74 = arith.mulf %73, %63 : vector<8x128xf32>
    %cst_23 = arith.constant 0.254829586 : f32
    %75 = vector.broadcast %cst_23 : f32 to vector<8x128xf32>
    %76 = arith.addf %74, %75 : vector<8x128xf32>
    %77 = arith.mulf %76, %63 : vector<8x128xf32>
    %78 = arith.mulf %77, %48 : vector<8x128xf32>
    %cst_24 = arith.constant 1.000000e+00 : f32
    %79 = vector.broadcast %cst_24 : f32 to vector<8x128xf32>
    %80 = arith.subf %79, %78 : vector<8x128xf32>
    %81 = arith.mulf %53, %80 : vector<8x128xf32>
    %82 = vector.broadcast %38 : f32 to vector<8x128xf32>
    %83 = arith.mulf %16, %82 : vector<8x128xf32>
    %84 = arith.mulf %83, %83 : vector<8x128xf32>
    %cst_25 = arith.constant 0.000000e+00 : f32
    %85 = vector.broadcast %cst_25 : f32 to vector<8x128xf32>
    %86 = arith.subf %85, %84 : vector<8x128xf32>
    %87 = math.exp %86 : vector<8x128xf32>
    %cst_26 = arith.constant 0.000000e+00 : f32
    %88 = vector.broadcast %cst_26 : f32 to vector<8x128xf32>
    %89 = arith.cmpf olt, %83, %88 : vector<8x128xf32>
    %cst_27 = arith.constant -1.000000e+00 : f32
    %cst_28 = arith.constant 1.000000e+00 : f32
    %90 = vector.broadcast %cst_27 : f32 to vector<8x128xf32>
    %91 = vector.broadcast %cst_28 : f32 to vector<8x128xf32>
    %92 = arith.select %89, %90, %91 : vector<8x128xi1>, vector<8x128xf32>
    %93 = math.absf %83 : vector<8x128xf32>
    %cst_29 = arith.constant 0.327591091 : f32
    %94 = vector.broadcast %cst_29 : f32 to vector<8x128xf32>
    %95 = arith.mulf %94, %93 : vector<8x128xf32>
    %cst_30 = arith.constant 1.000000e+00 : f32
    %96 = vector.broadcast %cst_30 : f32 to vector<8x128xf32>
    %97 = arith.addf %96, %95 : vector<8x128xf32>
    %98 = tpu.reciprocal %97 {approx = true} : vector<8x128xf32> -> vector<8x128xf32>
    %99 = arith.mulf %97, %98 : vector<8x128xf32>
    %cst_31 = arith.constant 2.000000e+00 : f32
    %100 = vector.broadcast %cst_31 : f32 to vector<8x128xf32>
    %101 = arith.subf %100, %99 : vector<8x128xf32>
    %102 = arith.mulf %98, %101 : vector<8x128xf32>
    %cst_32 = arith.constant 1.06140542 : f32
    %103 = vector.broadcast %cst_32 : f32 to vector<8x128xf32>
    %104 = arith.mulf %103, %102 : vector<8x128xf32>
    %cst_33 = arith.constant -1.45315206 : f32
    %105 = vector.broadcast %cst_33 : f32 to vector<8x128xf32>
    %106 = arith.addf %104, %105 : vector<8x128xf32>
    %107 = arith.mulf %106, %102 : vector<8x128xf32>
    %cst_34 = arith.constant 1.42141378 : f32
    %108 = vector.broadcast %cst_34 : f32 to vector<8x128xf32>
    %109 = arith.addf %107, %108 : vector<8x128xf32>
    %110 = arith.mulf %109, %102 : vector<8x128xf32>
    %cst_35 = arith.constant -0.284496725 : f32
    %111 = vector.broadcast %cst_35 : f32 to vector<8x128xf32>
    %112 = arith.addf %110, %111 : vector<8x128xf32>
    %113 = arith.mulf %112, %102 : vector<8x128xf32>
    %cst_36 = arith.constant 0.254829586 : f32
    %114 = vector.broadcast %cst_36 : f32 to vector<8x128xf32>
    %115 = arith.addf %113, %114 : vector<8x128xf32>
    %116 = arith.mulf %115, %102 : vector<8x128xf32>
    %117 = arith.mulf %116, %87 : vector<8x128xf32>
    %cst_37 = arith.constant 1.000000e+00 : f32
    %118 = vector.broadcast %cst_37 : f32 to vector<8x128xf32>
    %119 = arith.subf %118, %117 : vector<8x128xf32>
    %120 = arith.mulf %92, %119 : vector<8x128xf32>
    %121 = vector.broadcast %38 : f32 to vector<8x128xf32>
    %122 = arith.mulf %17, %121 : vector<8x128xf32>
    %123 = arith.mulf %122, %122 : vector<8x128xf32>
    %cst_38 = arith.constant 0.000000e+00 : f32
    %124 = vector.broadcast %cst_38 : f32 to vector<8x128xf32>
    %125 = arith.subf %124, %123 : vector<8x128xf32>
    %126 = math.exp %125 : vector<8x128xf32>
    %cst_39 = arith.constant 0.000000e+00 : f32
    %127 = vector.broadcast %cst_39 : f32 to vector<8x128xf32>
    %128 = arith.cmpf olt, %122, %127 : vector<8x128xf32>
    %cst_40 = arith.constant -1.000000e+00 : f32
    %cst_41 = arith.constant 1.000000e+00 : f32
    %129 = vector.broadcast %cst_40 : f32 to vector<8x128xf32>
    %130 = vector.broadcast %cst_41 : f32 to vector<8x128xf32>
    %131 = arith.select %128, %129, %130 : vector<8x128xi1>, vector<8x128xf32>
    %132 = math.absf %122 : vector<8x128xf32>
    %cst_42 = arith.constant 0.327591091 : f32
    %133 = vector.broadcast %cst_42 : f32 to vector<8x128xf32>
    %134 = arith.mulf %133, %132 : vector<8x128xf32>
    %cst_43 = arith.constant 1.000000e+00 : f32
    %135 = vector.broadcast %cst_43 : f32 to vector<8x128xf32>
    %136 = arith.addf %135, %134 : vector<8x128xf32>
    %137 = tpu.reciprocal %136 {approx = true} : vector<8x128xf32> -> vector<8x128xf32>
    %138 = arith.mulf %136, %137 : vector<8x128xf32>
    %cst_44 = arith.constant 2.000000e+00 : f32
    %139 = vector.broadcast %cst_44 : f32 to vector<8x128xf32>
    %140 = arith.subf %139, %138 : vector<8x128xf32>
    %141 = arith.mulf %137, %140 : vector<8x128xf32>
    %cst_45 = arith.constant 1.06140542 : f32
    %142 = vector.broadcast %cst_45 : f32 to vector<8x128xf32>
    %143 = arith.mulf %142, %141 : vector<8x128xf32>
    %cst_46 = arith.constant -1.45315206 : f32
    %144 = vector.broadcast %cst_46 : f32 to vector<8x128xf32>
    %145 = arith.addf %143, %144 : vector<8x128xf32>
    %146 = arith.mulf %145, %141 : vector<8x128xf32>
    %cst_47 = arith.constant 1.42141378 : f32
    %147 = vector.broadcast %cst_47 : f32 to vector<8x128xf32>
    %148 = arith.addf %146, %147 : vector<8x128xf32>
    %149 = arith.mulf %148, %141 : vector<8x128xf32>
    %cst_48 = arith.constant -0.284496725 : f32
    %150 = vector.broadcast %cst_48 : f32 to vector<8x128xf32>
    %151 = arith.addf %149, %150 : vector<8x128xf32>
    %152 = arith.mulf %151, %141 : vector<8x128xf32>
    %cst_49 = arith.constant 0.254829586 : f32
    %153 = vector.broadcast %cst_49 : f32 to vector<8x128xf32>
    %154 = arith.addf %152, %153 : vector<8x128xf32>
    %155 = arith.mulf %154, %141 : vector<8x128xf32>
    %156 = arith.mulf %155, %126 : vector<8x128xf32>
    %cst_50 = arith.constant 1.000000e+00 : f32
    %157 = vector.broadcast %cst_50 : f32 to vector<8x128xf32>
    %158 = arith.subf %157, %156 : vector<8x128xf32>
    %159 = arith.mulf %131, %158 : vector<8x128xf32>
    %160 = vector.broadcast %38 : f32 to vector<8x128xf32>
    %161 = arith.mulf %18, %160 : vector<8x128xf32>
    %162 = arith.mulf %161, %161 : vector<8x128xf32>
    %cst_51 = arith.constant 0.000000e+00 : f32
    %163 = vector.broadcast %cst_51 : f32 to vector<8x128xf32>
    %164 = arith.subf %163, %162 : vector<8x128xf32>
    %165 = math.exp %164 : vector<8x128xf32>
    %cst_52 = arith.constant 0.000000e+00 : f32
    %166 = vector.broadcast %cst_52 : f32 to vector<8x128xf32>
    %167 = arith.cmpf olt, %161, %166 : vector<8x128xf32>
    %cst_53 = arith.constant -1.000000e+00 : f32
    %cst_54 = arith.constant 1.000000e+00 : f32
    %168 = vector.broadcast %cst_53 : f32 to vector<8x128xf32>
    %169 = vector.broadcast %cst_54 : f32 to vector<8x128xf32>
    %170 = arith.select %167, %168, %169 : vector<8x128xi1>, vector<8x128xf32>
    %171 = math.absf %161 : vector<8x128xf32>
    %cst_55 = arith.constant 0.327591091 : f32
    %172 = vector.broadcast %cst_55 : f32 to vector<8x128xf32>
    %173 = arith.mulf %172, %171 : vector<8x128xf32>
    %cst_56 = arith.constant 1.000000e+00 : f32
    %174 = vector.broadcast %cst_56 : f32 to vector<8x128xf32>
    %175 = arith.addf %174, %173 : vector<8x128xf32>
    %176 = tpu.reciprocal %175 {approx = true} : vector<8x128xf32> -> vector<8x128xf32>
    %177 = arith.mulf %175, %176 : vector<8x128xf32>
    %cst_57 = arith.constant 2.000000e+00 : f32
    %178 = vector.broadcast %cst_57 : f32 to vector<8x128xf32>
    %179 = arith.subf %178, %177 : vector<8x128xf32>
    %180 = arith.mulf %176, %179 : vector<8x128xf32>
    %cst_58 = arith.constant 1.06140542 : f32
    %181 = vector.broadcast %cst_58 : f32 to vector<8x128xf32>
    %182 = arith.mulf %181, %180 : vector<8x128xf32>
    %cst_59 = arith.constant -1.45315206 : f32
    %183 = vector.broadcast %cst_59 : f32 to vector<8x128xf32>
    %184 = arith.addf %182, %183 : vector<8x128xf32>
    %185 = arith.mulf %184, %180 : vector<8x128xf32>
    %cst_60 = arith.constant 1.42141378 : f32
    %186 = vector.broadcast %cst_60 : f32 to vector<8x128xf32>
    %187 = arith.addf %185, %186 : vector<8x128xf32>
    %188 = arith.mulf %187, %180 : vector<8x128xf32>
    %cst_61 = arith.constant -0.284496725 : f32
    %189 = vector.broadcast %cst_61 : f32 to vector<8x128xf32>
    %190 = arith.addf %188, %189 : vector<8x128xf32>
    %191 = arith.mulf %190, %180 : vector<8x128xf32>
    %cst_62 = arith.constant 0.254829586 : f32
    %192 = vector.broadcast %cst_62 : f32 to vector<8x128xf32>
    %193 = arith.addf %191, %192 : vector<8x128xf32>
    %194 = arith.mulf %193, %180 : vector<8x128xf32>
    %195 = arith.mulf %194, %165 : vector<8x128xf32>
    %cst_63 = arith.constant 1.000000e+00 : f32
    %196 = vector.broadcast %cst_63 : f32 to vector<8x128xf32>
    %197 = arith.subf %196, %195 : vector<8x128xf32>
    %198 = arith.mulf %170, %197 : vector<8x128xf32>
    %199 = arith.subf %48, %87 : vector<8x128xf32>
    %200 = arith.addf %48, %87 : vector<8x128xf32>
    %201 = arith.subf %126, %165 : vector<8x128xf32>
    %202 = arith.addf %126, %165 : vector<8x128xf32>
    %203 = arith.subf %81, %120 : vector<8x128xf32>
    %204 = arith.addf %81, %120 : vector<8x128xf32>
    %205 = arith.subf %159, %198 : vector<8x128xf32>
    %206 = arith.addf %159, %198 : vector<8x128xf32>
    %207 = arith.subf %204, %206 : vector<8x128xf32>
    %208 = arith.subf %199, %201 : vector<8x128xf32>
    %209 = vector.broadcast %39 : f32 to vector<8x128xf32>
    %210 = arith.mulf %209, %208 : vector<8x128xf32>
    %211 = arith.mulf %24, %207 : vector<8x128xf32>
    %212 = arith.subf %210, %211 : vector<8x128xf32>
    %213 = vector.broadcast %40 : f32 to vector<8x128xf32>
    %214 = arith.addf %21, %213 : vector<8x128xf32>
    %215 = vector.broadcast %40 : f32 to vector<8x128xf32>
    %216 = arith.addf %22, %215 : vector<8x128xf32>
    %217 = vector.broadcast %41 : f32 to vector<8x128xf32>
    %218 = arith.addf %14, %217 : vector<8x128xf32>
    %219 = arith.mulf %7, %218 : vector<8x128xf32>
    %220 = arith.mulf %216, %201 : vector<8x128xf32>
    %221 = arith.mulf %20, %202 : vector<8x128xf32>
    %222 = arith.addf %220, %221 : vector<8x128xf32>
    %223 = arith.mulf %214, %199 : vector<8x128xf32>
    %224 = arith.subf %222, %223 : vector<8x128xf32>
    %225 = arith.mulf %19, %200 : vector<8x128xf32>
    %226 = arith.subf %224, %225 : vector<8x128xf32>
    %227 = vector.broadcast %42 : f32 to vector<8x128xf32>
    %228 = arith.mulf %227, %226 : vector<8x128xf32>
    %229 = arith.mulf %13, %205 : vector<8x128xf32>
    %230 = arith.mulf %12, %203 : vector<8x128xf32>
    %231 = arith.subf %229, %230 : vector<8x128xf32>
    %232 = arith.mulf %219, %207 : vector<8x128xf32>
    %233 = arith.addf %231, %232 : vector<8x128xf32>
    %234 = arith.addf %228, %233 : vector<8x128xf32>
    %235 = vector.broadcast %38 : f32 to vector<8x128xf32>
    %236 = arith.mulf %26, %235 : vector<8x128xf32>
    %237 = arith.mulf %236, %236 : vector<8x128xf32>
    %cst_64 = arith.constant 0.000000e+00 : f32
    %238 = vector.broadcast %cst_64 : f32 to vector<8x128xf32>
    %239 = arith.subf %238, %237 : vector<8x128xf32>
    %240 = math.exp %239 : vector<8x128xf32>
    %cst_65 = arith.constant 0.000000e+00 : f32
    %241 = vector.broadcast %cst_65 : f32 to vector<8x128xf32>
    %242 = arith.cmpf olt, %236, %241 : vector<8x128xf32>
    %cst_66 = arith.constant -1.000000e+00 : f32
    %cst_67 = arith.constant 1.000000e+00 : f32
    %243 = vector.broadcast %cst_66 : f32 to vector<8x128xf32>
    %244 = vector.broadcast %cst_67 : f32 to vector<8x128xf32>
    %245 = arith.select %242, %243, %244 : vector<8x128xi1>, vector<8x128xf32>
    %246 = math.absf %236 : vector<8x128xf32>
    %cst_68 = arith.constant 0.327591091 : f32
    %247 = vector.broadcast %cst_68 : f32 to vector<8x128xf32>
    %248 = arith.mulf %247, %246 : vector<8x128xf32>
    %cst_69 = arith.constant 1.000000e+00 : f32
    %249 = vector.broadcast %cst_69 : f32 to vector<8x128xf32>
    %250 = arith.addf %249, %248 : vector<8x128xf32>
    %251 = tpu.reciprocal %250 {approx = true} : vector<8x128xf32> -> vector<8x128xf32>
    %252 = arith.mulf %250, %251 : vector<8x128xf32>
    %cst_70 = arith.constant 2.000000e+00 : f32
    %253 = vector.broadcast %cst_70 : f32 to vector<8x128xf32>
    %254 = arith.subf %253, %252 : vector<8x128xf32>
    %255 = arith.mulf %251, %254 : vector<8x128xf32>
    %cst_71 = arith.constant 1.06140542 : f32
    %256 = vector.broadcast %cst_71 : f32 to vector<8x128xf32>
    %257 = arith.mulf %256, %255 : vector<8x128xf32>
    %cst_72 = arith.constant -1.45315206 : f32
    %258 = vector.broadcast %cst_72 : f32 to vector<8x128xf32>
    %259 = arith.addf %257, %258 : vector<8x128xf32>
    %260 = arith.mulf %259, %255 : vector<8x128xf32>
    %cst_73 = arith.constant 1.42141378 : f32
    %261 = vector.broadcast %cst_73 : f32 to vector<8x128xf32>
    %262 = arith.addf %260, %261 : vector<8x128xf32>
    %263 = arith.mulf %262, %255 : vector<8x128xf32>
    %cst_74 = arith.constant -0.284496725 : f32
    %264 = vector.broadcast %cst_74 : f32 to vector<8x128xf32>
    %265 = arith.addf %263, %264 : vector<8x128xf32>
    %266 = arith.mulf %265, %255 : vector<8x128xf32>
    %cst_75 = arith.constant 0.254829586 : f32
    %267 = vector.broadcast %cst_75 : f32 to vector<8x128xf32>
    %268 = arith.addf %266, %267 : vector<8x128xf32>
    %269 = arith.mulf %268, %255 : vector<8x128xf32>
    %270 = arith.mulf %269, %240 : vector<8x128xf32>
    %cst_76 = arith.constant 1.000000e+00 : f32
    %271 = vector.broadcast %cst_76 : f32 to vector<8x128xf32>
    %272 = arith.subf %271, %270 : vector<8x128xf32>
    %273 = arith.mulf %245, %272 : vector<8x128xf32>
    %274 = vector.broadcast %38 : f32 to vector<8x128xf32>
    %275 = arith.mulf %27, %274 : vector<8x128xf32>
    %276 = arith.mulf %275, %275 : vector<8x128xf32>
    %cst_77 = arith.constant 0.000000e+00 : f32
    %277 = vector.broadcast %cst_77 : f32 to vector<8x128xf32>
    %278 = arith.subf %277, %276 : vector<8x128xf32>
    %279 = math.exp %278 : vector<8x128xf32>
    %cst_78 = arith.constant 0.000000e+00 : f32
    %280 = vector.broadcast %cst_78 : f32 to vector<8x128xf32>
    %281 = arith.cmpf olt, %275, %280 : vector<8x128xf32>
    %cst_79 = arith.constant -1.000000e+00 : f32
    %cst_80 = arith.constant 1.000000e+00 : f32
    %282 = vector.broadcast %cst_79 : f32 to vector<8x128xf32>
    %283 = vector.broadcast %cst_80 : f32 to vector<8x128xf32>
    %284 = arith.select %281, %282, %283 : vector<8x128xi1>, vector<8x128xf32>
    %285 = math.absf %275 : vector<8x128xf32>
    %cst_81 = arith.constant 0.327591091 : f32
    %286 = vector.broadcast %cst_81 : f32 to vector<8x128xf32>
    %287 = arith.mulf %286, %285 : vector<8x128xf32>
    %cst_82 = arith.constant 1.000000e+00 : f32
    %288 = vector.broadcast %cst_82 : f32 to vector<8x128xf32>
    %289 = arith.addf %288, %287 : vector<8x128xf32>
    %290 = tpu.reciprocal %289 {approx = true} : vector<8x128xf32> -> vector<8x128xf32>
    %291 = arith.mulf %289, %290 : vector<8x128xf32>
    %cst_83 = arith.constant 2.000000e+00 : f32
    %292 = vector.broadcast %cst_83 : f32 to vector<8x128xf32>
    %293 = arith.subf %292, %291 : vector<8x128xf32>
    %294 = arith.mulf %290, %293 : vector<8x128xf32>
    %cst_84 = arith.constant 1.06140542 : f32
    %295 = vector.broadcast %cst_84 : f32 to vector<8x128xf32>
    %296 = arith.mulf %295, %294 : vector<8x128xf32>
    %cst_85 = arith.constant -1.45315206 : f32
    %297 = vector.broadcast %cst_85 : f32 to vector<8x128xf32>
    %298 = arith.addf %296, %297 : vector<8x128xf32>
    %299 = arith.mulf %298, %294 : vector<8x128xf32>
    %cst_86 = arith.constant 1.42141378 : f32
    %300 = vector.broadcast %cst_86 : f32 to vector<8x128xf32>
    %301 = arith.addf %299, %300 : vector<8x128xf32>
    %302 = arith.mulf %301, %294 : vector<8x128xf32>
    %cst_87 = arith.constant -0.284496725 : f32
    %303 = vector.broadcast %cst_87 : f32 to vector<8x128xf32>
    %304 = arith.addf %302, %303 : vector<8x128xf32>
    %305 = arith.mulf %304, %294 : vector<8x128xf32>
    %cst_88 = arith.constant 0.254829586 : f32
    %306 = vector.broadcast %cst_88 : f32 to vector<8x128xf32>
    %307 = arith.addf %305, %306 : vector<8x128xf32>
    %308 = arith.mulf %307, %294 : vector<8x128xf32>
    %309 = arith.mulf %308, %279 : vector<8x128xf32>
    %cst_89 = arith.constant 1.000000e+00 : f32
    %310 = vector.broadcast %cst_89 : f32 to vector<8x128xf32>
    %311 = arith.subf %310, %309 : vector<8x128xf32>
    %312 = arith.mulf %284, %311 : vector<8x128xf32>
    %313 = vector.broadcast %38 : f32 to vector<8x128xf32>
    %314 = arith.mulf %28, %313 : vector<8x128xf32>
    %315 = arith.mulf %314, %314 : vector<8x128xf32>
    %cst_90 = arith.constant 0.000000e+00 : f32
    %316 = vector.broadcast %cst_90 : f32 to vector<8x128xf32>
    %317 = arith.subf %316, %315 : vector<8x128xf32>
    %318 = math.exp %317 : vector<8x128xf32>
    %cst_91 = arith.constant 0.000000e+00 : f32
    %319 = vector.broadcast %cst_91 : f32 to vector<8x128xf32>
    %320 = arith.cmpf olt, %314, %319 : vector<8x128xf32>
    %cst_92 = arith.constant -1.000000e+00 : f32
    %cst_93 = arith.constant 1.000000e+00 : f32
    %321 = vector.broadcast %cst_92 : f32 to vector<8x128xf32>
    %322 = vector.broadcast %cst_93 : f32 to vector<8x128xf32>
    %323 = arith.select %320, %321, %322 : vector<8x128xi1>, vector<8x128xf32>
    %324 = math.absf %314 : vector<8x128xf32>
    %cst_94 = arith.constant 0.327591091 : f32
    %325 = vector.broadcast %cst_94 : f32 to vector<8x128xf32>
    %326 = arith.mulf %325, %324 : vector<8x128xf32>
    %cst_95 = arith.constant 1.000000e+00 : f32
    %327 = vector.broadcast %cst_95 : f32 to vector<8x128xf32>
    %328 = arith.addf %327, %326 : vector<8x128xf32>
    %329 = tpu.reciprocal %328 {approx = true} : vector<8x128xf32> -> vector<8x128xf32>
    %330 = arith.mulf %328, %329 : vector<8x128xf32>
    %cst_96 = arith.constant 2.000000e+00 : f32
    %331 = vector.broadcast %cst_96 : f32 to vector<8x128xf32>
    %332 = arith.subf %331, %330 : vector<8x128xf32>
    %333 = arith.mulf %329, %332 : vector<8x128xf32>
    %cst_97 = arith.constant 1.06140542 : f32
    %334 = vector.broadcast %cst_97 : f32 to vector<8x128xf32>
    %335 = arith.mulf %334, %333 : vector<8x128xf32>
    %cst_98 = arith.constant -1.45315206 : f32
    %336 = vector.broadcast %cst_98 : f32 to vector<8x128xf32>
    %337 = arith.addf %335, %336 : vector<8x128xf32>
    %338 = arith.mulf %337, %333 : vector<8x128xf32>
    %cst_99 = arith.constant 1.42141378 : f32
    %339 = vector.broadcast %cst_99 : f32 to vector<8x128xf32>
    %340 = arith.addf %338, %339 : vector<8x128xf32>
    %341 = arith.mulf %340, %333 : vector<8x128xf32>
    %cst_100 = arith.constant -0.284496725 : f32
    %342 = vector.broadcast %cst_100 : f32 to vector<8x128xf32>
    %343 = arith.addf %341, %342 : vector<8x128xf32>
    %344 = arith.mulf %343, %333 : vector<8x128xf32>
    %cst_101 = arith.constant 0.254829586 : f32
    %345 = vector.broadcast %cst_101 : f32 to vector<8x128xf32>
    %346 = arith.addf %344, %345 : vector<8x128xf32>
    %347 = arith.mulf %346, %333 : vector<8x128xf32>
    %348 = arith.mulf %347, %318 : vector<8x128xf32>
    %cst_102 = arith.constant 1.000000e+00 : f32
    %349 = vector.broadcast %cst_102 : f32 to vector<8x128xf32>
    %350 = arith.subf %349, %348 : vector<8x128xf32>
    %351 = arith.mulf %323, %350 : vector<8x128xf32>
    %352 = vector.broadcast %38 : f32 to vector<8x128xf32>
    %353 = arith.mulf %29, %352 : vector<8x128xf32>
    %354 = arith.mulf %353, %353 : vector<8x128xf32>
    %cst_103 = arith.constant 0.000000e+00 : f32
    %355 = vector.broadcast %cst_103 : f32 to vector<8x128xf32>
    %356 = arith.subf %355, %354 : vector<8x128xf32>
    %357 = math.exp %356 : vector<8x128xf32>
    %cst_104 = arith.constant 0.000000e+00 : f32
    %358 = vector.broadcast %cst_104 : f32 to vector<8x128xf32>
    %359 = arith.cmpf olt, %353, %358 : vector<8x128xf32>
    %cst_105 = arith.constant -1.000000e+00 : f32
    %cst_106 = arith.constant 1.000000e+00 : f32
    %360 = vector.broadcast %cst_105 : f32 to vector<8x128xf32>
    %361 = vector.broadcast %cst_106 : f32 to vector<8x128xf32>
    %362 = arith.select %359, %360, %361 : vector<8x128xi1>, vector<8x128xf32>
    %363 = math.absf %353 : vector<8x128xf32>
    %cst_107 = arith.constant 0.327591091 : f32
    %364 = vector.broadcast %cst_107 : f32 to vector<8x128xf32>
    %365 = arith.mulf %364, %363 : vector<8x128xf32>
    %cst_108 = arith.constant 1.000000e+00 : f32
    %366 = vector.broadcast %cst_108 : f32 to vector<8x128xf32>
    %367 = arith.addf %366, %365 : vector<8x128xf32>
    %368 = tpu.reciprocal %367 {approx = true} : vector<8x128xf32> -> vector<8x128xf32>
    %369 = arith.mulf %367, %368 : vector<8x128xf32>
    %cst_109 = arith.constant 2.000000e+00 : f32
    %370 = vector.broadcast %cst_109 : f32 to vector<8x128xf32>
    %371 = arith.subf %370, %369 : vector<8x128xf32>
    %372 = arith.mulf %368, %371 : vector<8x128xf32>
    %cst_110 = arith.constant 1.06140542 : f32
    %373 = vector.broadcast %cst_110 : f32 to vector<8x128xf32>
    %374 = arith.mulf %373, %372 : vector<8x128xf32>
    %cst_111 = arith.constant -1.45315206 : f32
    %375 = vector.broadcast %cst_111 : f32 to vector<8x128xf32>
    %376 = arith.addf %374, %375 : vector<8x128xf32>
    %377 = arith.mulf %376, %372 : vector<8x128xf32>
    %cst_112 = arith.constant 1.42141378 : f32
    %378 = vector.broadcast %cst_112 : f32 to vector<8x128xf32>
    %379 = arith.addf %377, %378 : vector<8x128xf32>
    %380 = arith.mulf %379, %372 : vector<8x128xf32>
    %cst_113 = arith.constant -0.284496725 : f32
    %381 = vector.broadcast %cst_113 : f32 to vector<8x128xf32>
    %382 = arith.addf %380, %381 : vector<8x128xf32>
    %383 = arith.mulf %382, %372 : vector<8x128xf32>
    %cst_114 = arith.constant 0.254829586 : f32
    %384 = vector.broadcast %cst_114 : f32 to vector<8x128xf32>
    %385 = arith.addf %383, %384 : vector<8x128xf32>
    %386 = arith.mulf %385, %372 : vector<8x128xf32>
    %387 = arith.mulf %386, %357 : vector<8x128xf32>
    %cst_115 = arith.constant 1.000000e+00 : f32
    %388 = vector.broadcast %cst_115 : f32 to vector<8x128xf32>
    %389 = arith.subf %388, %387 : vector<8x128xf32>
    %390 = arith.mulf %362, %389 : vector<8x128xf32>
    %391 = arith.subf %240, %279 : vector<8x128xf32>
    %392 = arith.addf %240, %279 : vector<8x128xf32>
    %393 = arith.subf %318, %357 : vector<8x128xf32>
    %394 = arith.addf %318, %357 : vector<8x128xf32>
    %395 = arith.subf %273, %312 : vector<8x128xf32>
    %396 = arith.addf %273, %312 : vector<8x128xf32>
    %397 = arith.subf %351, %390 : vector<8x128xf32>
    %398 = arith.addf %351, %390 : vector<8x128xf32>
    %399 = arith.subf %396, %398 : vector<8x128xf32>
    %400 = arith.subf %391, %393 : vector<8x128xf32>
    %401 = vector.broadcast %39 : f32 to vector<8x128xf32>
    %402 = arith.mulf %401, %400 : vector<8x128xf32>
    %403 = arith.mulf %35, %399 : vector<8x128xf32>
    %404 = arith.subf %402, %403 : vector<8x128xf32>
    %405 = vector.broadcast %40 : f32 to vector<8x128xf32>
    %406 = arith.addf %32, %405 : vector<8x128xf32>
    %407 = vector.broadcast %40 : f32 to vector<8x128xf32>
    %408 = arith.addf %33, %407 : vector<8x128xf32>
    %409 = vector.broadcast %41 : f32 to vector<8x128xf32>
    %410 = arith.addf %25, %409 : vector<8x128xf32>
    %411 = arith.mulf %9, %410 : vector<8x128xf32>
    %412 = arith.mulf %408, %393 : vector<8x128xf32>
    %413 = arith.mulf %31, %394 : vector<8x128xf32>
    %414 = arith.addf %412, %413 : vector<8x128xf32>
    %415 = arith.mulf %406, %391 : vector<8x128xf32>
    %416 = arith.subf %414, %415 : vector<8x128xf32>
    %417 = arith.mulf %30, %392 : vector<8x128xf32>
    %418 = arith.subf %416, %417 : vector<8x128xf32>
    %419 = vector.broadcast %42 : f32 to vector<8x128xf32>
    %420 = arith.mulf %419, %418 : vector<8x128xf32>
    %421 = arith.mulf %13, %397 : vector<8x128xf32>
    %422 = arith.mulf %12, %395 : vector<8x128xf32>
    %423 = arith.subf %421, %422 : vector<8x128xf32>
    %424 = arith.mulf %411, %399 : vector<8x128xf32>
    %425 = arith.addf %423, %424 : vector<8x128xf32>
    %426 = arith.addf %420, %425 : vector<8x128xf32>
    %427 = arith.subf %212, %404 : vector<8x128xf32>
    %428 = vector.broadcast %36 : f32 to vector<8x128xf32>
    %429 = arith.mulf %428, %427 : vector<8x128xf32>
    %430 = arith.subf %234, %426 : vector<8x128xf32>
    %431 = vector.broadcast %37 : f32 to vector<8x128xf32>
    %432 = arith.mulf %431, %430 : vector<8x128xf32>
    %433 = arith.addf %429, %432 : vector<8x128xf32>
    %c0_116 = arith.constant 0 : index
    %434 = arith.index_cast %1 : i32 to index
    %c0_117 = arith.constant 0 : index
    %435 = vector.load %arg6[%c0_116, %434, %c0_117] : memref<5x8x128xf32, #tpu.memory_space<vmem>>, vector<1x8x128xf32>
    %436 = vector.shape_cast %435 : vector<1x8x128xf32> to vector<8x128xf32>
    %437 = vector.shape_cast %433 : vector<8x128xf32> to vector<1x8x128xf32>
    tpu.vector_store %arg6[%c0_116, %434, %c0_117], %437 {strides = array<i32>} : memref<5x8x128xf32, #tpu.memory_space<vmem>>, vector<1x8x128xf32>,
    %c0_118 = arith.constant 0 : index
    %c1_119 = arith.constant 1 : index
    %438 = memref.load %arg1[%c0_118, %c1_119] : memref<7x5xf32, #tpu.memory_space<smem>>
    %c1_120 = arith.constant 1 : index
    %c1_121 = arith.constant 1 : index
    %439 = memref.load %arg1[%c1_120, %c1_121] : memref<7x5xf32, #tpu.memory_space<smem>>
    %c2_122 = arith.constant 2 : index
    %c1_123 = arith.constant 1 : index
    %440 = memref.load %arg1[%c2_122, %c1_123] : memref<7x5xf32, #tpu.memory_space<smem>>
    %c3_124 = arith.constant 3 : index
    %c1_125 = arith.constant 1 : index
    %441 = memref.load %arg1[%c3_124, %c1_125] : memref<7x5xf32, #tpu.memory_space<smem>>
    %c4_126 = arith.constant 4 : index
    %c1_127 = arith.constant 1 : index
    %442 = memref.load %arg1[%c4_126, %c1_127] : memref<7x5xf32, #tpu.memory_space<smem>>
    %c5_128 = arith.constant 5 : index
    %c1_129 = arith.constant 1 : index
    %443 = memref.load %arg1[%c5_128, %c1_129] : memref<7x5xf32, #tpu.memory_space<smem>>
    %c6_130 = arith.constant 6 : index
    %c1_131 = arith.constant 1 : index
    %444 = memref.load %arg1[%c6_130, %c1_131] : memref<7x5xf32, #tpu.memory_space<smem>>
    %445 = vector.broadcast %440 : f32 to vector<8x128xf32>
    %446 = arith.mulf %15, %445 : vector<8x128xf32>
    %447 = arith.mulf %446, %446 : vector<8x128xf32>
    %cst_132 = arith.constant 0.000000e+00 : f32
    %448 = vector.broadcast %cst_132 : f32 to vector<8x128xf32>
    %449 = arith.subf %448, %447 : vector<8x128xf32>
    %450 = math.exp %449 : vector<8x128xf32>
    %cst_133 = arith.constant 0.000000e+00 : f32
    %451 = vector.broadcast %cst_133 : f32 to vector<8x128xf32>
    %452 = arith.cmpf olt, %446, %451 : vector<8x128xf32>
    %cst_134 = arith.constant -1.000000e+00 : f32
    %cst_135 = arith.constant 1.000000e+00 : f32
    %453 = vector.broadcast %cst_134 : f32 to vector<8x128xf32>
    %454 = vector.broadcast %cst_135 : f32 to vector<8x128xf32>
    %455 = arith.select %452, %453, %454 : vector<8x128xi1>, vector<8x128xf32>
    %456 = math.absf %446 : vector<8x128xf32>
    %cst_136 = arith.constant 0.327591091 : f32
    %457 = vector.broadcast %cst_136 : f32 to vector<8x128xf32>
    %458 = arith.mulf %457, %456 : vector<8x128xf32>
    %cst_137 = arith.constant 1.000000e+00 : f32
    %459 = vector.broadcast %cst_137 : f32 to vector<8x128xf32>
    %460 = arith.addf %459, %458 : vector<8x128xf32>
    %461 = tpu.reciprocal %460 {approx = true} : vector<8x128xf32> -> vector<8x128xf32>
    %462 = arith.mulf %460, %461 : vector<8x128xf32>
    %cst_138 = arith.constant 2.000000e+00 : f32
    %463 = vector.broadcast %cst_138 : f32 to vector<8x128xf32>
    %464 = arith.subf %463, %462 : vector<8x128xf32>
    %465 = arith.mulf %461, %464 : vector<8x128xf32>
    %cst_139 = arith.constant 1.06140542 : f32
    %466 = vector.broadcast %cst_139 : f32 to vector<8x128xf32>
    %467 = arith.mulf %466, %465 : vector<8x128xf32>
    %cst_140 = arith.constant -1.45315206 : f32
    %468 = vector.broadcast %cst_140 : f32 to vector<8x128xf32>
    %469 = arith.addf %467, %468 : vector<8x128xf32>
    %470 = arith.mulf %469, %465 : vector<8x128xf32>
    %cst_141 = arith.constant 1.42141378 : f32
    %471 = vector.broadcast %cst_141 : f32 to vector<8x128xf32>
    %472 = arith.addf %470, %471 : vector<8x128xf32>
    %473 = arith.mulf %472, %465 : vector<8x128xf32>
    %cst_142 = arith.constant -0.284496725 : f32
    %474 = vector.broadcast %cst_142 : f32 to vector<8x128xf32>
    %475 = arith.addf %473, %474 : vector<8x128xf32>
    %476 = arith.mulf %475, %465 : vector<8x128xf32>
    %cst_143 = arith.constant 0.254829586 : f32
    %477 = vector.broadcast %cst_143 : f32 to vector<8x128xf32>
    %478 = arith.addf %476, %477 : vector<8x128xf32>
    %479 = arith.mulf %478, %465 : vector<8x128xf32>
    %480 = arith.mulf %479, %450 : vector<8x128xf32>
    %cst_144 = arith.constant 1.000000e+00 : f32
    %481 = vector.broadcast %cst_144 : f32 to vector<8x128xf32>
    %482 = arith.subf %481, %480 : vector<8x128xf32>
    %483 = arith.mulf %455, %482 : vector<8x128xf32>
    %484 = vector.broadcast %440 : f32 to vector<8x128xf32>
    %485 = arith.mulf %16, %484 : vector<8x128xf32>
    %486 = arith.mulf %485, %485 : vector<8x128xf32>
    %cst_145 = arith.constant 0.000000e+00 : f32
    %487 = vector.broadcast %cst_145 : f32 to vector<8x128xf32>
    %488 = arith.subf %487, %486 : vector<8x128xf32>
    %489 = math.exp %488 : vector<8x128xf32>
    %cst_146 = arith.constant 0.000000e+00 : f32
    %490 = vector.broadcast %cst_146 : f32 to vector<8x128xf32>
    %491 = arith.cmpf olt, %485, %490 : vector<8x128xf32>
    %cst_147 = arith.constant -1.000000e+00 : f32
    %cst_148 = arith.constant 1.000000e+00 : f32
    %492 = vector.broadcast %cst_147 : f32 to vector<8x128xf32>
    %493 = vector.broadcast %cst_148 : f32 to vector<8x128xf32>
    %494 = arith.select %491, %492, %493 : vector<8x128xi1>, vector<8x128xf32>
    %495 = math.absf %485 : vector<8x128xf32>
    %cst_149 = arith.constant 0.327591091 : f32
    %496 = vector.broadcast %cst_149 : f32 to vector<8x128xf32>
    %497 = arith.mulf %496, %495 : vector<8x128xf32>
    %cst_150 = arith.constant 1.000000e+00 : f32
    %498 = vector.broadcast %cst_150 : f32 to vector<8x128xf32>
    %499 = arith.addf %498, %497 : vector<8x128xf32>
    %500 = tpu.reciprocal %499 {approx = true} : vector<8x128xf32> -> vector<8x128xf32>
    %501 = arith.mulf %499, %500 : vector<8x128xf32>
    %cst_151 = arith.constant 2.000000e+00 : f32
    %502 = vector.broadcast %cst_151 : f32 to vector<8x128xf32>
    %503 = arith.subf %502, %501 : vector<8x128xf32>
    %504 = arith.mulf %500, %503 : vector<8x128xf32>
    %cst_152 = arith.constant 1.06140542 : f32
    %505 = vector.broadcast %cst_152 : f32 to vector<8x128xf32>
    %506 = arith.mulf %505, %504 : vector<8x128xf32>
    %cst_153 = arith.constant -1.45315206 : f32
    %507 = vector.broadcast %cst_153 : f32 to vector<8x128xf32>
    %508 = arith.addf %506, %507 : vector<8x128xf32>
    %509 = arith.mulf %508, %504 : vector<8x128xf32>
    %cst_154 = arith.constant 1.42141378 : f32
    %510 = vector.broadcast %cst_154 : f32 to vector<8x128xf32>
    %511 = arith.addf %509, %510 : vector<8x128xf32>
    %512 = arith.mulf %511, %504 : vector<8x128xf32>
    %cst_155 = arith.constant -0.284496725 : f32
    %513 = vector.broadcast %cst_155 : f32 to vector<8x128xf32>
    %514 = arith.addf %512, %513 : vector<8x128xf32>
    %515 = arith.mulf %514, %504 : vector<8x128xf32>
    %cst_156 = arith.constant 0.254829586 : f32
    %516 = vector.broadcast %cst_156 : f32 to vector<8x128xf32>
    %517 = arith.addf %515, %516 : vector<8x128xf32>
    %518 = arith.mulf %517, %504 : vector<8x128xf32>
    %519 = arith.mulf %518, %489 : vector<8x128xf32>
    %cst_157 = arith.constant 1.000000e+00 : f32
    %520 = vector.broadcast %cst_157 : f32 to vector<8x128xf32>
    %521 = arith.subf %520, %519 : vector<8x128xf32>
    %522 = arith.mulf %494, %521 : vector<8x128xf32>
    %523 = vector.broadcast %440 : f32 to vector<8x128xf32>
    %524 = arith.mulf %17, %523 : vector<8x128xf32>
    %525 = arith.mulf %524, %524 : vector<8x128xf32>
    %cst_158 = arith.constant 0.000000e+00 : f32
    %526 = vector.broadcast %cst_158 : f32 to vector<8x128xf32>
    %527 = arith.subf %526, %525 : vector<8x128xf32>
    %528 = math.exp %527 : vector<8x128xf32>
    %cst_159 = arith.constant 0.000000e+00 : f32
    %529 = vector.broadcast %cst_159 : f32 to vector<8x128xf32>
    %530 = arith.cmpf olt, %524, %529 : vector<8x128xf32>
    %cst_160 = arith.constant -1.000000e+00 : f32
    %cst_161 = arith.constant 1.000000e+00 : f32
    %531 = vector.broadcast %cst_160 : f32 to vector<8x128xf32>
    %532 = vector.broadcast %cst_161 : f32 to vector<8x128xf32>
    %533 = arith.select %530, %531, %532 : vector<8x128xi1>, vector<8x128xf32>
    %534 = math.absf %524 : vector<8x128xf32>
    %cst_162 = arith.constant 0.327591091 : f32
    %535 = vector.broadcast %cst_162 : f32 to vector<8x128xf32>
    %536 = arith.mulf %535, %534 : vector<8x128xf32>
    %cst_163 = arith.constant 1.000000e+00 : f32
    %537 = vector.broadcast %cst_163 : f32 to vector<8x128xf32>
    %538 = arith.addf %537, %536 : vector<8x128xf32>
    %539 = tpu.reciprocal %538 {approx = true} : vector<8x128xf32> -> vector<8x128xf32>
    %540 = arith.mulf %538, %539 : vector<8x128xf32>
    %cst_164 = arith.constant 2.000000e+00 : f32
    %541 = vector.broadcast %cst_164 : f32 to vector<8x128xf32>
    %542 = arith.subf %541, %540 : vector<8x128xf32>
    %543 = arith.mulf %539, %542 : vector<8x128xf32>
    %cst_165 = arith.constant 1.06140542 : f32
    %544 = vector.broadcast %cst_165 : f32 to vector<8x128xf32>
    %545 = arith.mulf %544, %543 : vector<8x128xf32>
    %cst_166 = arith.constant -1.45315206 : f32
    %546 = vector.broadcast %cst_166 : f32 to vector<8x128xf32>
    %547 = arith.addf %545, %546 : vector<8x128xf32>
    %548 = arith.mulf %547, %543 : vector<8x128xf32>
    %cst_167 = arith.constant 1.42141378 : f32
    %549 = vector.broadcast %cst_167 : f32 to vector<8x128xf32>
    %550 = arith.addf %548, %549 : vector<8x128xf32>
    %551 = arith.mulf %550, %543 : vector<8x128xf32>
    %cst_168 = arith.constant -0.284496725 : f32
    %552 = vector.broadcast %cst_168 : f32 to vector<8x128xf32>
    %553 = arith.addf %551, %552 : vector<8x128xf32>
    %554 = arith.mulf %553, %543 : vector<8x128xf32>
    %cst_169 = arith.constant 0.254829586 : f32
    %555 = vector.broadcast %cst_169 : f32 to vector<8x128xf32>
    %556 = arith.addf %554, %555 : vector<8x128xf32>
    %557 = arith.mulf %556, %543 : vector<8x128xf32>
    %558 = arith.mulf %557, %528 : vector<8x128xf32>
    %cst_170 = arith.constant 1.000000e+00 : f32
    %559 = vector.broadcast %cst_170 : f32 to vector<8x128xf32>
    %560 = arith.subf %559, %558 : vector<8x128xf32>
    %561 = arith.mulf %533, %560 : vector<8x128xf32>
    %562 = vector.broadcast %440 : f32 to vector<8x128xf32>
    %563 = arith.mulf %18, %562 : vector<8x128xf32>
    %564 = arith.mulf %563, %563 : vector<8x128xf32>
    %cst_171 = arith.constant 0.000000e+00 : f32
    %565 = vector.broadcast %cst_171 : f32 to vector<8x128xf32>
    %566 = arith.subf %565, %564 : vector<8x128xf32>
    %567 = math.exp %566 : vector<8x128xf32>
    %cst_172 = arith.constant 0.000000e+00 : f32
    %568 = vector.broadcast %cst_172 : f32 to vector<8x128xf32>
    %569 = arith.cmpf olt, %563, %568 : vector<8x128xf32>
    %cst_173 = arith.constant -1.000000e+00 : f32
    %cst_174 = arith.constant 1.000000e+00 : f32
    %570 = vector.broadcast %cst_173 : f32 to vector<8x128xf32>
    %571 = vector.broadcast %cst_174 : f32 to vector<8x128xf32>
    %572 = arith.select %569, %570, %571 : vector<8x128xi1>, vector<8x128xf32>
    %573 = math.absf %563 : vector<8x128xf32>
    %cst_175 = arith.constant 0.327591091 : f32
    %574 = vector.broadcast %cst_175 : f32 to vector<8x128xf32>
    %575 = arith.mulf %574, %573 : vector<8x128xf32>
    %cst_176 = arith.constant 1.000000e+00 : f32
    %576 = vector.broadcast %cst_176 : f32 to vector<8x128xf32>
    %577 = arith.addf %576, %575 : vector<8x128xf32>
    %578 = tpu.reciprocal %577 {approx = true} : vector<8x128xf32> -> vector<8x128xf32>
    %579 = arith.mulf %577, %578 : vector<8x128xf32>
    %cst_177 = arith.constant 2.000000e+00 : f32
    %580 = vector.broadcast %cst_177 : f32 to vector<8x128xf32>
    %581 = arith.subf %580, %579 : vector<8x128xf32>
    %582 = arith.mulf %578, %581 : vector<8x128xf32>
    %cst_178 = arith.constant 1.06140542 : f32
    %583 = vector.broadcast %cst_178 : f32 to vector<8x128xf32>
    %584 = arith.mulf %583, %582 : vector<8x128xf32>
    %cst_179 = arith.constant -1.45315206 : f32
    %585 = vector.broadcast %cst_179 : f32 to vector<8x128xf32>
    %586 = arith.addf %584, %585 : vector<8x128xf32>
    %587 = arith.mulf %586, %582 : vector<8x128xf32>
    %cst_180 = arith.constant 1.42141378 : f32
    %588 = vector.broadcast %cst_180 : f32 to vector<8x128xf32>
    %589 = arith.addf %587, %588 : vector<8x128xf32>
    %590 = arith.mulf %589, %582 : vector<8x128xf32>
    %cst_181 = arith.constant -0.284496725 : f32
    %591 = vector.broadcast %cst_181 : f32 to vector<8x128xf32>
    %592 = arith.addf %590, %591 : vector<8x128xf32>
    %593 = arith.mulf %592, %582 : vector<8x128xf32>
    %cst_182 = arith.constant 0.254829586 : f32
    %594 = vector.broadcast %cst_182 : f32 to vector<8x128xf32>
    %595 = arith.addf %593, %594 : vector<8x128xf32>
    %596 = arith.mulf %595, %582 : vector<8x128xf32>
    %597 = arith.mulf %596, %567 : vector<8x128xf32>
    %cst_183 = arith.constant 1.000000e+00 : f32
    %598 = vector.broadcast %cst_183 : f32 to vector<8x128xf32>
    %599 = arith.subf %598, %597 : vector<8x128xf32>
    %600 = arith.mulf %572, %599 : vector<8x128xf32>
    %601 = arith.subf %450, %489 : vector<8x128xf32>
    %602 = arith.addf %450, %489 : vector<8x128xf32>
    %603 = arith.subf %528, %567 : vector<8x128xf32>
    %604 = arith.addf %528, %567 : vector<8x128xf32>
    %605 = arith.subf %483, %522 : vector<8x128xf32>
    %606 = arith.addf %483, %522 : vector<8x128xf32>
    %607 = arith.subf %561, %600 : vector<8x128xf32>
    %608 = arith.addf %561, %600 : vector<8x128xf32>
    %609 = arith.subf %606, %608 : vector<8x128xf32>
    %610 = arith.subf %601, %603 : vector<8x128xf32>
    %611 = vector.broadcast %441 : f32 to vector<8x128xf32>
    %612 = arith.mulf %611, %610 : vector<8x128xf32>
    %613 = arith.mulf %24, %609 : vector<8x128xf32>
    %614 = arith.subf %612, %613 : vector<8x128xf32>
    %615 = vector.broadcast %442 : f32 to vector<8x128xf32>
    %616 = arith.addf %21, %615 : vector<8x128xf32>
    %617 = vector.broadcast %442 : f32 to vector<8x128xf32>
    %618 = arith.addf %22, %617 : vector<8x128xf32>
    %619 = vector.broadcast %443 : f32 to vector<8x128xf32>
    %620 = arith.addf %14, %619 : vector<8x128xf32>
    %621 = arith.mulf %7, %620 : vector<8x128xf32>
    %622 = arith.mulf %618, %603 : vector<8x128xf32>
    %623 = arith.mulf %20, %604 : vector<8x128xf32>
    %624 = arith.addf %622, %623 : vector<8x128xf32>
    %625 = arith.mulf %616, %601 : vector<8x128xf32>
    %626 = arith.subf %624, %625 : vector<8x128xf32>
    %627 = arith.mulf %19, %602 : vector<8x128xf32>
    %628 = arith.subf %626, %627 : vector<8x128xf32>
    %629 = vector.broadcast %444 : f32 to vector<8x128xf32>
    %630 = arith.mulf %629, %628 : vector<8x128xf32>
    %631 = arith.mulf %13, %607 : vector<8x128xf32>
    %632 = arith.mulf %12, %605 : vector<8x128xf32>
    %633 = arith.subf %631, %632 : vector<8x128xf32>
    %634 = arith.mulf %621, %609 : vector<8x128xf32>
    %635 = arith.addf %633, %634 : vector<8x128xf32>
    %636 = arith.addf %630, %635 : vector<8x128xf32>
    %637 = vector.broadcast %440 : f32 to vector<8x128xf32>
    %638 = arith.mulf %26, %637 : vector<8x128xf32>
    %639 = arith.mulf %638, %638 : vector<8x128xf32>
    %cst_184 = arith.constant 0.000000e+00 : f32
    %640 = vector.broadcast %cst_184 : f32 to vector<8x128xf32>
    %641 = arith.subf %640, %639 : vector<8x128xf32>
    %642 = math.exp %641 : vector<8x128xf32>
    %cst_185 = arith.constant 0.000000e+00 : f32
    %643 = vector.broadcast %cst_185 : f32 to vector<8x128xf32>
    %644 = arith.cmpf olt, %638, %643 : vector<8x128xf32>
    %cst_186 = arith.constant -1.000000e+00 : f32
    %cst_187 = arith.constant 1.000000e+00 : f32
    %645 = vector.broadcast %cst_186 : f32 to vector<8x128xf32>
    %646 = vector.broadcast %cst_187 : f32 to vector<8x128xf32>
    %647 = arith.select %644, %645, %646 : vector<8x128xi1>, vector<8x128xf32>
    %648 = math.absf %638 : vector<8x128xf32>
    %cst_188 = arith.constant 0.327591091 : f32
    %649 = vector.broadcast %cst_188 : f32 to vector<8x128xf32>
    %650 = arith.mulf %649, %648 : vector<8x128xf32>
    %cst_189 = arith.constant 1.000000e+00 : f32
    %651 = vector.broadcast %cst_189 : f32 to vector<8x128xf32>
    %652 = arith.addf %651, %650 : vector<8x128xf32>
    %653 = tpu.reciprocal %652 {approx = true} : vector<8x128xf32> -> vector<8x128xf32>
    %654 = arith.mulf %652, %653 : vector<8x128xf32>
    %cst_190 = arith.constant 2.000000e+00 : f32
    %655 = vector.broadcast %cst_190 : f32 to vector<8x128xf32>
    %656 = arith.subf %655, %654 : vector<8x128xf32>
    %657 = arith.mulf %653, %656 : vector<8x128xf32>
    %cst_191 = arith.constant 1.06140542 : f32
    %658 = vector.broadcast %cst_191 : f32 to vector<8x128xf32>
    %659 = arith.mulf %658, %657 : vector<8x128xf32>
    %cst_192 = arith.constant -1.45315206 : f32
    %660 = vector.broadcast %cst_192 : f32 to vector<8x128xf32>
    %661 = arith.addf %659, %660 : vector<8x128xf32>
    %662 = arith.mulf %661, %657 : vector<8x128xf32>
    %cst_193 = arith.constant 1.42141378 : f32
    %663 = vector.broadcast %cst_193 : f32 to vector<8x128xf32>
    %664 = arith.addf %662, %663 : vector<8x128xf32>
    %665 = arith.mulf %664, %657 : vector<8x128xf32>
    %cst_194 = arith.constant -0.284496725 : f32
    %666 = vector.broadcast %cst_194 : f32 to vector<8x128xf32>
    %667 = arith.addf %665, %666 : vector<8x128xf32>
    %668 = arith.mulf %667, %657 : vector<8x128xf32>
    %cst_195 = arith.constant 0.254829586 : f32
    %669 = vector.broadcast %cst_195 : f32 to vector<8x128xf32>
    %670 = arith.addf %668, %669 : vector<8x128xf32>
    %671 = arith.mulf %670, %657 : vector<8x128xf32>
    %672 = arith.mulf %671, %642 : vector<8x128xf32>
    %cst_196 = arith.constant 1.000000e+00 : f32
    %673 = vector.broadcast %cst_196 : f32 to vector<8x128xf32>
    %674 = arith.subf %673, %672 : vector<8x128xf32>
    %675 = arith.mulf %647, %674 : vector<8x128xf32>
    %676 = vector.broadcast %440 : f32 to vector<8x128xf32>
    %677 = arith.mulf %27, %676 : vector<8x128xf32>
    %678 = arith.mulf %677, %677 : vector<8x128xf32>
    %cst_197 = arith.constant 0.000000e+00 : f32
    %679 = vector.broadcast %cst_197 : f32 to vector<8x128xf32>
    %680 = arith.subf %679, %678 : vector<8x128xf32>
    %681 = math.exp %680 : vector<8x128xf32>
    %cst_198 = arith.constant 0.000000e+00 : f32
    %682 = vector.broadcast %cst_198 : f32 to vector<8x128xf32>
    %683 = arith.cmpf olt, %677, %682 : vector<8x128xf32>
    %cst_199 = arith.constant -1.000000e+00 : f32
    %cst_200 = arith.constant 1.000000e+00 : f32
    %684 = vector.broadcast %cst_199 : f32 to vector<8x128xf32>
    %685 = vector.broadcast %cst_200 : f32 to vector<8x128xf32>
    %686 = arith.select %683, %684, %685 : vector<8x128xi1>, vector<8x128xf32>
    %687 = math.absf %677 : vector<8x128xf32>
    %cst_201 = arith.constant 0.327591091 : f32
    %688 = vector.broadcast %cst_201 : f32 to vector<8x128xf32>
    %689 = arith.mulf %688, %687 : vector<8x128xf32>
    %cst_202 = arith.constant 1.000000e+00 : f32
    %690 = vector.broadcast %cst_202 : f32 to vector<8x128xf32>
    %691 = arith.addf %690, %689 : vector<8x128xf32>
    %692 = tpu.reciprocal %691 {approx = true} : vector<8x128xf32> -> vector<8x128xf32>
    %693 = arith.mulf %691, %692 : vector<8x128xf32>
    %cst_203 = arith.constant 2.000000e+00 : f32
    %694 = vector.broadcast %cst_203 : f32 to vector<8x128xf32>
    %695 = arith.subf %694, %693 : vector<8x128xf32>
    %696 = arith.mulf %692, %695 : vector<8x128xf32>
    %cst_204 = arith.constant 1.06140542 : f32
    %697 = vector.broadcast %cst_204 : f32 to vector<8x128xf32>
    %698 = arith.mulf %697, %696 : vector<8x128xf32>
    %cst_205 = arith.constant -1.45315206 : f32
    %699 = vector.broadcast %cst_205 : f32 to vector<8x128xf32>
    %700 = arith.addf %698, %699 : vector<8x128xf32>
    %701 = arith.mulf %700, %696 : vector<8x128xf32>
    %cst_206 = arith.constant 1.42141378 : f32
    %702 = vector.broadcast %cst_206 : f32 to vector<8x128xf32>
    %703 = arith.addf %701, %702 : vector<8x128xf32>
    %704 = arith.mulf %703, %696 : vector<8x128xf32>
    %cst_207 = arith.constant -0.284496725 : f32
    %705 = vector.broadcast %cst_207 : f32 to vector<8x128xf32>
    %706 = arith.addf %704, %705 : vector<8x128xf32>
    %707 = arith.mulf %706, %696 : vector<8x128xf32>
    %cst_208 = arith.constant 0.254829586 : f32
    %708 = vector.broadcast %cst_208 : f32 to vector<8x128xf32>
    %709 = arith.addf %707, %708 : vector<8x128xf32>
    %710 = arith.mulf %709, %696 : vector<8x128xf32>
    %711 = arith.mulf %710, %681 : vector<8x128xf32>
    %cst_209 = arith.constant 1.000000e+00 : f32
    %712 = vector.broadcast %cst_209 : f32 to vector<8x128xf32>
    %713 = arith.subf %712, %711 : vector<8x128xf32>
    %714 = arith.mulf %686, %713 : vector<8x128xf32>
    %715 = vector.broadcast %440 : f32 to vector<8x128xf32>
    %716 = arith.mulf %28, %715 : vector<8x128xf32>
    %717 = arith.mulf %716, %716 : vector<8x128xf32>
    %cst_210 = arith.constant 0.000000e+00 : f32
    %718 = vector.broadcast %cst_210 : f32 to vector<8x128xf32>
    %719 = arith.subf %718, %717 : vector<8x128xf32>
    %720 = math.exp %719 : vector<8x128xf32>
    %cst_211 = arith.constant 0.000000e+00 : f32
    %721 = vector.broadcast %cst_211 : f32 to vector<8x128xf32>
    %722 = arith.cmpf olt, %716, %721 : vector<8x128xf32>
    %cst_212 = arith.constant -1.000000e+00 : f32
    %cst_213 = arith.constant 1.000000e+00 : f32
    %723 = vector.broadcast %cst_212 : f32 to vector<8x128xf32>
    %724 = vector.broadcast %cst_213 : f32 to vector<8x128xf32>
    %725 = arith.select %722, %723, %724 : vector<8x128xi1>, vector<8x128xf32>
    %726 = math.absf %716 : vector<8x128xf32>
    %cst_214 = arith.constant 0.327591091 : f32
    %727 = vector.broadcast %cst_214 : f32 to vector<8x128xf32>
    %728 = arith.mulf %727, %726 : vector<8x128xf32>
    %cst_215 = arith.constant 1.000000e+00 : f32
    %729 = vector.broadcast %cst_215 : f32 to vector<8x128xf32>
    %730 = arith.addf %729, %728 : vector<8x128xf32>
    %731 = tpu.reciprocal %730 {approx = true} : vector<8x128xf32> -> vector<8x128xf32>
    %732 = arith.mulf %730, %731 : vector<8x128xf32>
    %cst_216 = arith.constant 2.000000e+00 : f32
    %733 = vector.broadcast %cst_216 : f32 to vector<8x128xf32>
    %734 = arith.subf %733, %732 : vector<8x128xf32>
    %735 = arith.mulf %731, %734 : vector<8x128xf32>
    %cst_217 = arith.constant 1.06140542 : f32
    %736 = vector.broadcast %cst_217 : f32 to vector<8x128xf32>
    %737 = arith.mulf %736, %735 : vector<8x128xf32>
    %cst_218 = arith.constant -1.45315206 : f32
    %738 = vector.broadcast %cst_218 : f32 to vector<8x128xf32>
    %739 = arith.addf %737, %738 : vector<8x128xf32>
    %740 = arith.mulf %739, %735 : vector<8x128xf32>
    %cst_219 = arith.constant 1.42141378 : f32
    %741 = vector.broadcast %cst_219 : f32 to vector<8x128xf32>
    %742 = arith.addf %740, %741 : vector<8x128xf32>
    %743 = arith.mulf %742, %735 : vector<8x128xf32>
    %cst_220 = arith.constant -0.284496725 : f32
    %744 = vector.broadcast %cst_220 : f32 to vector<8x128xf32>
    %745 = arith.addf %743, %744 : vector<8x128xf32>
    %746 = arith.mulf %745, %735 : vector<8x128xf32>
    %cst_221 = arith.constant 0.254829586 : f32
    %747 = vector.broadcast %cst_221 : f32 to vector<8x128xf32>
    %748 = arith.addf %746, %747 : vector<8x128xf32>
    %749 = arith.mulf %748, %735 : vector<8x128xf32>
    %750 = arith.mulf %749, %720 : vector<8x128xf32>
    %cst_222 = arith.constant 1.000000e+00 : f32
    %751 = vector.broadcast %cst_222 : f32 to vector<8x128xf32>
    %752 = arith.subf %751, %750 : vector<8x128xf32>
    %753 = arith.mulf %725, %752 : vector<8x128xf32>
    %754 = vector.broadcast %440 : f32 to vector<8x128xf32>
    %755 = arith.mulf %29, %754 : vector<8x128xf32>
    %756 = arith.mulf %755, %755 : vector<8x128xf32>
    %cst_223 = arith.constant 0.000000e+00 : f32
    %757 = vector.broadcast %cst_223 : f32 to vector<8x128xf32>
    %758 = arith.subf %757, %756 : vector<8x128xf32>
    %759 = math.exp %758 : vector<8x128xf32>
    %cst_224 = arith.constant 0.000000e+00 : f32
    %760 = vector.broadcast %cst_224 : f32 to vector<8x128xf32>
    %761 = arith.cmpf olt, %755, %760 : vector<8x128xf32>
    %cst_225 = arith.constant -1.000000e+00 : f32
    %cst_226 = arith.constant 1.000000e+00 : f32
    %762 = vector.broadcast %cst_225 : f32 to vector<8x128xf32>
    %763 = vector.broadcast %cst_226 : f32 to vector<8x128xf32>
    %764 = arith.select %761, %762, %763 : vector<8x128xi1>, vector<8x128xf32>
    %765 = math.absf %755 : vector<8x128xf32>
    %cst_227 = arith.constant 0.327591091 : f32
    %766 = vector.broadcast %cst_227 : f32 to vector<8x128xf32>
    %767 = arith.mulf %766, %765 : vector<8x128xf32>
    %cst_228 = arith.constant 1.000000e+00 : f32
    %768 = vector.broadcast %cst_228 : f32 to vector<8x128xf32>
    %769 = arith.addf %768, %767 : vector<8x128xf32>
    %770 = tpu.reciprocal %769 {approx = true} : vector<8x128xf32> -> vector<8x128xf32>
    %771 = arith.mulf %769, %770 : vector<8x128xf32>
    %cst_229 = arith.constant 2.000000e+00 : f32
    %772 = vector.broadcast %cst_229 : f32 to vector<8x128xf32>
    %773 = arith.subf %772, %771 : vector<8x128xf32>
    %774 = arith.mulf %770, %773 : vector<8x128xf32>
    %cst_230 = arith.constant 1.06140542 : f32
    %775 = vector.broadcast %cst_230 : f32 to vector<8x128xf32>
    %776 = arith.mulf %775, %774 : vector<8x128xf32>
    %cst_231 = arith.constant -1.45315206 : f32
    %777 = vector.broadcast %cst_231 : f32 to vector<8x128xf32>
    %778 = arith.addf %776, %777 : vector<8x128xf32>
    %779 = arith.mulf %778, %774 : vector<8x128xf32>
    %cst_232 = arith.constant 1.42141378 : f32
    %780 = vector.broadcast %cst_232 : f32 to vector<8x128xf32>
    %781 = arith.addf %779, %780 : vector<8x128xf32>
    %782 = arith.mulf %781, %774 : vector<8x128xf32>
    %cst_233 = arith.constant -0.284496725 : f32
    %783 = vector.broadcast %cst_233 : f32 to vector<8x128xf32>
    %784 = arith.addf %782, %783 : vector<8x128xf32>
    %785 = arith.mulf %784, %774 : vector<8x128xf32>
    %cst_234 = arith.constant 0.254829586 : f32
    %786 = vector.broadcast %cst_234 : f32 to vector<8x128xf32>
    %787 = arith.addf %785, %786 : vector<8x128xf32>
    %788 = arith.mulf %787, %774 : vector<8x128xf32>
    %789 = arith.mulf %788, %759 : vector<8x128xf32>
    %cst_235 = arith.constant 1.000000e+00 : f32
    %790 = vector.broadcast %cst_235 : f32 to vector<8x128xf32>
    %791 = arith.subf %790, %789 : vector<8x128xf32>
    %792 = arith.mulf %764, %791 : vector<8x128xf32>
    %793 = arith.subf %642, %681 : vector<8x128xf32>
    %794 = arith.addf %642, %681 : vector<8x128xf32>
    %795 = arith.subf %720, %759 : vector<8x128xf32>
    %796 = arith.addf %720, %759 : vector<8x128xf32>
    %797 = arith.subf %675, %714 : vector<8x128xf32>
    %798 = arith.addf %675, %714 : vector<8x128xf32>
    %799 = arith.subf %753, %792 : vector<8x128xf32>
    %800 = arith.addf %753, %792 : vector<8x128xf32>
    %801 = arith.subf %798, %800 : vector<8x128xf32>
    %802 = arith.subf %793, %795 : vector<8x128xf32>
    %803 = vector.broadcast %441 : f32 to vector<8x128xf32>
    %804 = arith.mulf %803, %802 : vector<8x128xf32>
    %805 = arith.mulf %35, %801 : vector<8x128xf32>
    %806 = arith.subf %804, %805 : vector<8x128xf32>
    %807 = vector.broadcast %442 : f32 to vector<8x128xf32>
    %808 = arith.addf %32, %807 : vector<8x128xf32>
    %809 = vector.broadcast %442 : f32 to vector<8x128xf32>
    %810 = arith.addf %33, %809 : vector<8x128xf32>
    %811 = vector.broadcast %443 : f32 to vector<8x128xf32>
    %812 = arith.addf %25, %811 : vector<8x128xf32>
    %813 = arith.mulf %9, %812 : vector<8x128xf32>
    %814 = arith.mulf %810, %795 : vector<8x128xf32>
    %815 = arith.mulf %31, %796 : vector<8x128xf32>
    %816 = arith.addf %814, %815 : vector<8x128xf32>
    %817 = arith.mulf %808, %793 : vector<8x128xf32>
    %818 = arith.subf %816, %817 : vector<8x128xf32>
    %819 = arith.mulf %30, %794 : vector<8x128xf32>
    %820 = arith.subf %818, %819 : vector<8x128xf32>
    %821 = vector.broadcast %444 : f32 to vector<8x128xf32>
    %822 = arith.mulf %821, %820 : vector<8x128xf32>
    %823 = arith.mulf %13, %799 : vector<8x128xf32>
    %824 = arith.mulf %12, %797 : vector<8x128xf32>
    %825 = arith.subf %823, %824 : vector<8x128xf32>
    %826 = arith.mulf %813, %801 : vector<8x128xf32>
    %827 = arith.addf %825, %826 : vector<8x128xf32>
    %828 = arith.addf %822, %827 : vector<8x128xf32>
    %829 = arith.subf %614, %806 : vector<8x128xf32>
    %830 = vector.broadcast %438 : f32 to vector<8x128xf32>
    %831 = arith.mulf %830, %829 : vector<8x128xf32>
    %832 = arith.subf %636, %828 : vector<8x128xf32>
    %833 = vector.broadcast %439 : f32 to vector<8x128xf32>
    %834 = arith.mulf %833, %832 : vector<8x128xf32>
    %835 = arith.addf %831, %834 : vector<8x128xf32>
    %c1_236 = arith.constant 1 : index
    %836 = arith.index_cast %1 : i32 to index
    %c0_237 = arith.constant 0 : index
    %837 = vector.load %arg6[%c1_236, %836, %c0_237] : memref<5x8x128xf32, #tpu.memory_space<vmem>>, vector<1x8x128xf32>
    %838 = vector.shape_cast %837 : vector<1x8x128xf32> to vector<8x128xf32>
    %839 = vector.shape_cast %835 : vector<8x128xf32> to vector<1x8x128xf32>
    tpu.vector_store %arg6[%c1_236, %836, %c0_237], %839 {strides = array<i32>} : memref<5x8x128xf32, #tpu.memory_space<vmem>>, vector<1x8x128xf32>,
    %c0_238 = arith.constant 0 : index
    %c2_239 = arith.constant 2 : index
    %840 = memref.load %arg1[%c0_238, %c2_239] : memref<7x5xf32, #tpu.memory_space<smem>>
    %c1_240 = arith.constant 1 : index
    %c2_241 = arith.constant 2 : index
    %841 = memref.load %arg1[%c1_240, %c2_241] : memref<7x5xf32, #tpu.memory_space<smem>>
    %c2_242 = arith.constant 2 : index
    %c2_243 = arith.constant 2 : index
    %842 = memref.load %arg1[%c2_242, %c2_243] : memref<7x5xf32, #tpu.memory_space<smem>>
    %c3_244 = arith.constant 3 : index
    %c2_245 = arith.constant 2 : index
    %843 = memref.load %arg1[%c3_244, %c2_245] : memref<7x5xf32, #tpu.memory_space<smem>>
    %c4_246 = arith.constant 4 : index
    %c2_247 = arith.constant 2 : index
    %844 = memref.load %arg1[%c4_246, %c2_247] : memref<7x5xf32, #tpu.memory_space<smem>>
    %c5_248 = arith.constant 5 : index
    %c2_249 = arith.constant 2 : index
    %845 = memref.load %arg1[%c5_248, %c2_249] : memref<7x5xf32, #tpu.memory_space<smem>>
    %c6_250 = arith.constant 6 : index
    %c2_251 = arith.constant 2 : index
    %846 = memref.load %arg1[%c6_250, %c2_251] : memref<7x5xf32, #tpu.memory_space<smem>>
    %847 = vector.broadcast %842 : f32 to vector<8x128xf32>
    %848 = arith.mulf %15, %847 : vector<8x128xf32>
    %849 = arith.mulf %848, %848 : vector<8x128xf32>
    %cst_252 = arith.constant 0.000000e+00 : f32
    %850 = vector.broadcast %cst_252 : f32 to vector<8x128xf32>
    %851 = arith.subf %850, %849 : vector<8x128xf32>
    %852 = math.exp %851 : vector<8x128xf32>
    %cst_253 = arith.constant 0.000000e+00 : f32
    %853 = vector.broadcast %cst_253 : f32 to vector<8x128xf32>
    %854 = arith.cmpf olt, %848, %853 : vector<8x128xf32>
    %cst_254 = arith.constant -1.000000e+00 : f32
    %cst_255 = arith.constant 1.000000e+00 : f32
    %855 = vector.broadcast %cst_254 : f32 to vector<8x128xf32>
    %856 = vector.broadcast %cst_255 : f32 to vector<8x128xf32>
    %857 = arith.select %854, %855, %856 : vector<8x128xi1>, vector<8x128xf32>
    %858 = math.absf %848 : vector<8x128xf32>
    %cst_256 = arith.constant 0.327591091 : f32
    %859 = vector.broadcast %cst_256 : f32 to vector<8x128xf32>
    %860 = arith.mulf %859, %858 : vector<8x128xf32>
    %cst_257 = arith.constant 1.000000e+00 : f32
    %861 = vector.broadcast %cst_257 : f32 to vector<8x128xf32>
    %862 = arith.addf %861, %860 : vector<8x128xf32>
    %863 = tpu.reciprocal %862 {approx = true} : vector<8x128xf32> -> vector<8x128xf32>
    %864 = arith.mulf %862, %863 : vector<8x128xf32>
    %cst_258 = arith.constant 2.000000e+00 : f32
    %865 = vector.broadcast %cst_258 : f32 to vector<8x128xf32>
    %866 = arith.subf %865, %864 : vector<8x128xf32>
    %867 = arith.mulf %863, %866 : vector<8x128xf32>
    %cst_259 = arith.constant 1.06140542 : f32
    %868 = vector.broadcast %cst_259 : f32 to vector<8x128xf32>
    %869 = arith.mulf %868, %867 : vector<8x128xf32>
    %cst_260 = arith.constant -1.45315206 : f32
    %870 = vector.broadcast %cst_260 : f32 to vector<8x128xf32>
    %871 = arith.addf %869, %870 : vector<8x128xf32>
    %872 = arith.mulf %871, %867 : vector<8x128xf32>
    %cst_261 = arith.constant 1.42141378 : f32
    %873 = vector.broadcast %cst_261 : f32 to vector<8x128xf32>
    %874 = arith.addf %872, %873 : vector<8x128xf32>
    %875 = arith.mulf %874, %867 : vector<8x128xf32>
    %cst_262 = arith.constant -0.284496725 : f32
    %876 = vector.broadcast %cst_262 : f32 to vector<8x128xf32>
    %877 = arith.addf %875, %876 : vector<8x128xf32>
    %878 = arith.mulf %877, %867 : vector<8x128xf32>
    %cst_263 = arith.constant 0.254829586 : f32
    %879 = vector.broadcast %cst_263 : f32 to vector<8x128xf32>
    %880 = arith.addf %878, %879 : vector<8x128xf32>
    %881 = arith.mulf %880, %867 : vector<8x128xf32>
    %882 = arith.mulf %881, %852 : vector<8x128xf32>
    %cst_264 = arith.constant 1.000000e+00 : f32
    %883 = vector.broadcast %cst_264 : f32 to vector<8x128xf32>
    %884 = arith.subf %883, %882 : vector<8x128xf32>
    %885 = arith.mulf %857, %884 : vector<8x128xf32>
    %886 = vector.broadcast %842 : f32 to vector<8x128xf32>
    %887 = arith.mulf %16, %886 : vector<8x128xf32>
    %888 = arith.mulf %887, %887 : vector<8x128xf32>
    %cst_265 = arith.constant 0.000000e+00 : f32
    %889 = vector.broadcast %cst_265 : f32 to vector<8x128xf32>
    %890 = arith.subf %889, %888 : vector<8x128xf32>
    %891 = math.exp %890 : vector<8x128xf32>
    %cst_266 = arith.constant 0.000000e+00 : f32
    %892 = vector.broadcast %cst_266 : f32 to vector<8x128xf32>
    %893 = arith.cmpf olt, %887, %892 : vector<8x128xf32>
    %cst_267 = arith.constant -1.000000e+00 : f32
    %cst_268 = arith.constant 1.000000e+00 : f32
    %894 = vector.broadcast %cst_267 : f32 to vector<8x128xf32>
    %895 = vector.broadcast %cst_268 : f32 to vector<8x128xf32>
    %896 = arith.select %893, %894, %895 : vector<8x128xi1>, vector<8x128xf32>
    %897 = math.absf %887 : vector<8x128xf32>
    %cst_269 = arith.constant 0.327591091 : f32
    %898 = vector.broadcast %cst_269 : f32 to vector<8x128xf32>
    %899 = arith.mulf %898, %897 : vector<8x128xf32>
    %cst_270 = arith.constant 1.000000e+00 : f32
    %900 = vector.broadcast %cst_270 : f32 to vector<8x128xf32>
    %901 = arith.addf %900, %899 : vector<8x128xf32>
    %902 = tpu.reciprocal %901 {approx = true} : vector<8x128xf32> -> vector<8x128xf32>
    %903 = arith.mulf %901, %902 : vector<8x128xf32>
    %cst_271 = arith.constant 2.000000e+00 : f32
    %904 = vector.broadcast %cst_271 : f32 to vector<8x128xf32>
    %905 = arith.subf %904, %903 : vector<8x128xf32>
    %906 = arith.mulf %902, %905 : vector<8x128xf32>
    %cst_272 = arith.constant 1.06140542 : f32
    %907 = vector.broadcast %cst_272 : f32 to vector<8x128xf32>
    %908 = arith.mulf %907, %906 : vector<8x128xf32>
    %cst_273 = arith.constant -1.45315206 : f32
    %909 = vector.broadcast %cst_273 : f32 to vector<8x128xf32>
    %910 = arith.addf %908, %909 : vector<8x128xf32>
    %911 = arith.mulf %910, %906 : vector<8x128xf32>
    %cst_274 = arith.constant 1.42141378 : f32
    %912 = vector.broadcast %cst_274 : f32 to vector<8x128xf32>
    %913 = arith.addf %911, %912 : vector<8x128xf32>
    %914 = arith.mulf %913, %906 : vector<8x128xf32>
    %cst_275 = arith.constant -0.284496725 : f32
    %915 = vector.broadcast %cst_275 : f32 to vector<8x128xf32>
    %916 = arith.addf %914, %915 : vector<8x128xf32>
    %917 = arith.mulf %916, %906 : vector<8x128xf32>
    %cst_276 = arith.constant 0.254829586 : f32
    %918 = vector.broadcast %cst_276 : f32 to vector<8x128xf32>
    %919 = arith.addf %917, %918 : vector<8x128xf32>
    %920 = arith.mulf %919, %906 : vector<8x128xf32>
    %921 = arith.mulf %920, %891 : vector<8x128xf32>
    %cst_277 = arith.constant 1.000000e+00 : f32
    %922 = vector.broadcast %cst_277 : f32 to vector<8x128xf32>
    %923 = arith.subf %922, %921 : vector<8x128xf32>
    %924 = arith.mulf %896, %923 : vector<8x128xf32>
    %925 = vector.broadcast %842 : f32 to vector<8x128xf32>
    %926 = arith.mulf %17, %925 : vector<8x128xf32>
    %927 = arith.mulf %926, %926 : vector<8x128xf32>
    %cst_278 = arith.constant 0.000000e+00 : f32
    %928 = vector.broadcast %cst_278 : f32 to vector<8x128xf32>
    %929 = arith.subf %928, %927 : vector<8x128xf32>
    %930 = math.exp %929 : vector<8x128xf32>
    %cst_279 = arith.constant 0.000000e+00 : f32
    %931 = vector.broadcast %cst_279 : f32 to vector<8x128xf32>
    %932 = arith.cmpf olt, %926, %931 : vector<8x128xf32>
    %cst_280 = arith.constant -1.000000e+00 : f32
    %cst_281 = arith.constant 1.000000e+00 : f32
    %933 = vector.broadcast %cst_280 : f32 to vector<8x128xf32>
    %934 = vector.broadcast %cst_281 : f32 to vector<8x128xf32>
    %935 = arith.select %932, %933, %934 : vector<8x128xi1>, vector<8x128xf32>
    %936 = math.absf %926 : vector<8x128xf32>
    %cst_282 = arith.constant 0.327591091 : f32
    %937 = vector.broadcast %cst_282 : f32 to vector<8x128xf32>
    %938 = arith.mulf %937, %936 : vector<8x128xf32>
    %cst_283 = arith.constant 1.000000e+00 : f32
    %939 = vector.broadcast %cst_283 : f32 to vector<8x128xf32>
    %940 = arith.addf %939, %938 : vector<8x128xf32>
    %941 = tpu.reciprocal %940 {approx = true} : vector<8x128xf32> -> vector<8x128xf32>
    %942 = arith.mulf %940, %941 : vector<8x128xf32>
    %cst_284 = arith.constant 2.000000e+00 : f32
    %943 = vector.broadcast %cst_284 : f32 to vector<8x128xf32>
    %944 = arith.subf %943, %942 : vector<8x128xf32>
    %945 = arith.mulf %941, %944 : vector<8x128xf32>
    %cst_285 = arith.constant 1.06140542 : f32
    %946 = vector.broadcast %cst_285 : f32 to vector<8x128xf32>
    %947 = arith.mulf %946, %945 : vector<8x128xf32>
    %cst_286 = arith.constant -1.45315206 : f32
    %948 = vector.broadcast %cst_286 : f32 to vector<8x128xf32>
    %949 = arith.addf %947, %948 : vector<8x128xf32>
    %950 = arith.mulf %949, %945 : vector<8x128xf32>
    %cst_287 = arith.constant 1.42141378 : f32
    %951 = vector.broadcast %cst_287 : f32 to vector<8x128xf32>
    %952 = arith.addf %950, %951 : vector<8x128xf32>
    %953 = arith.mulf %952, %945 : vector<8x128xf32>
    %cst_288 = arith.constant -0.284496725 : f32
    %954 = vector.broadcast %cst_288 : f32 to vector<8x128xf32>
    %955 = arith.addf %953, %954 : vector<8x128xf32>
    %956 = arith.mulf %955, %945 : vector<8x128xf32>
    %cst_289 = arith.constant 0.254829586 : f32
    %957 = vector.broadcast %cst_289 : f32 to vector<8x128xf32>
    %958 = arith.addf %956, %957 : vector<8x128xf32>
    %959 = arith.mulf %958, %945 : vector<8x128xf32>
    %960 = arith.mulf %959, %930 : vector<8x128xf32>
    %cst_290 = arith.constant 1.000000e+00 : f32
    %961 = vector.broadcast %cst_290 : f32 to vector<8x128xf32>
    %962 = arith.subf %961, %960 : vector<8x128xf32>
    %963 = arith.mulf %935, %962 : vector<8x128xf32>
    %964 = vector.broadcast %842 : f32 to vector<8x128xf32>
    %965 = arith.mulf %18, %964 : vector<8x128xf32>
    %966 = arith.mulf %965, %965 : vector<8x128xf32>
    %cst_291 = arith.constant 0.000000e+00 : f32
    %967 = vector.broadcast %cst_291 : f32 to vector<8x128xf32>
    %968 = arith.subf %967, %966 : vector<8x128xf32>
    %969 = math.exp %968 : vector<8x128xf32>
    %cst_292 = arith.constant 0.000000e+00 : f32
    %970 = vector.broadcast %cst_292 : f32 to vector<8x128xf32>
    %971 = arith.cmpf olt, %965, %970 : vector<8x128xf32>
    %cst_293 = arith.constant -1.000000e+00 : f32
    %cst_294 = arith.constant 1.000000e+00 : f32
    %972 = vector.broadcast %cst_293 : f32 to vector<8x128xf32>
    %973 = vector.broadcast %cst_294 : f32 to vector<8x128xf32>
    %974 = arith.select %971, %972, %973 : vector<8x128xi1>, vector<8x128xf32>
    %975 = math.absf %965 : vector<8x128xf32>
    %cst_295 = arith.constant 0.327591091 : f32
    %976 = vector.broadcast %cst_295 : f32 to vector<8x128xf32>
    %977 = arith.mulf %976, %975 : vector<8x128xf32>
    %cst_296 = arith.constant 1.000000e+00 : f32
    %978 = vector.broadcast %cst_296 : f32 to vector<8x128xf32>
    %979 = arith.addf %978, %977 : vector<8x128xf32>
    %980 = tpu.reciprocal %979 {approx = true} : vector<8x128xf32> -> vector<8x128xf32>
    %981 = arith.mulf %979, %980 : vector<8x128xf32>
    %cst_297 = arith.constant 2.000000e+00 : f32
    %982 = vector.broadcast %cst_297 : f32 to vector<8x128xf32>
    %983 = arith.subf %982, %981 : vector<8x128xf32>
    %984 = arith.mulf %980, %983 : vector<8x128xf32>
    %cst_298 = arith.constant 1.06140542 : f32
    %985 = vector.broadcast %cst_298 : f32 to vector<8x128xf32>
    %986 = arith.mulf %985, %984 : vector<8x128xf32>
    %cst_299 = arith.constant -1.45315206 : f32
    %987 = vector.broadcast %cst_299 : f32 to vector<8x128xf32>
    %988 = arith.addf %986, %987 : vector<8x128xf32>
    %989 = arith.mulf %988, %984 : vector<8x128xf32>
    %cst_300 = arith.constant 1.42141378 : f32
    %990 = vector.broadcast %cst_300 : f32 to vector<8x128xf32>
    %991 = arith.addf %989, %990 : vector<8x128xf32>
    %992 = arith.mulf %991, %984 : vector<8x128xf32>
    %cst_301 = arith.constant -0.284496725 : f32
    %993 = vector.broadcast %cst_301 : f32 to vector<8x128xf32>
    %994 = arith.addf %992, %993 : vector<8x128xf32>
    %995 = arith.mulf %994, %984 : vector<8x128xf32>
    %cst_302 = arith.constant 0.254829586 : f32
    %996 = vector.broadcast %cst_302 : f32 to vector<8x128xf32>
    %997 = arith.addf %995, %996 : vector<8x128xf32>
    %998 = arith.mulf %997, %984 : vector<8x128xf32>
    %999 = arith.mulf %998, %969 : vector<8x128xf32>
    %cst_303 = arith.constant 1.000000e+00 : f32
    %1000 = vector.broadcast %cst_303 : f32 to vector<8x128xf32>
    %1001 = arith.subf %1000, %999 : vector<8x128xf32>
    %1002 = arith.mulf %974, %1001 : vector<8x128xf32>
    %1003 = arith.subf %852, %891 : vector<8x128xf32>
    %1004 = arith.addf %852, %891 : vector<8x128xf32>
    %1005 = arith.subf %930, %969 : vector<8x128xf32>
    %1006 = arith.addf %930, %969 : vector<8x128xf32>
    %1007 = arith.subf %885, %924 : vector<8x128xf32>
    %1008 = arith.addf %885, %924 : vector<8x128xf32>
    %1009 = arith.subf %963, %1002 : vector<8x128xf32>
    %1010 = arith.addf %963, %1002 : vector<8x128xf32>
    %1011 = arith.subf %1008, %1010 : vector<8x128xf32>
    %1012 = arith.subf %1003, %1005 : vector<8x128xf32>
    %1013 = vector.broadcast %843 : f32 to vector<8x128xf32>
    %1014 = arith.mulf %1013, %1012 : vector<8x128xf32>
    %1015 = arith.mulf %24, %1011 : vector<8x128xf32>
    %1016 = arith.subf %1014, %1015 : vector<8x128xf32>
    %1017 = vector.broadcast %844 : f32 to vector<8x128xf32>
    %1018 = arith.addf %21, %1017 : vector<8x128xf32>
    %1019 = vector.broadcast %844 : f32 to vector<8x128xf32>
    %1020 = arith.addf %22, %1019 : vector<8x128xf32>
    %1021 = vector.broadcast %845 : f32 to vector<8x128xf32>
    %1022 = arith.addf %14, %1021 : vector<8x128xf32>
    %1023 = arith.mulf %7, %1022 : vector<8x128xf32>
    %1024 = arith.mulf %1020, %1005 : vector<8x128xf32>
    %1025 = arith.mulf %20, %1006 : vector<8x128xf32>
    %1026 = arith.addf %1024, %1025 : vector<8x128xf32>
    %1027 = arith.mulf %1018, %1003 : vector<8x128xf32>
    %1028 = arith.subf %1026, %1027 : vector<8x128xf32>
    %1029 = arith.mulf %19, %1004 : vector<8x128xf32>
    %1030 = arith.subf %1028, %1029 : vector<8x128xf32>
    %1031 = vector.broadcast %846 : f32 to vector<8x128xf32>
    %1032 = arith.mulf %1031, %1030 : vector<8x128xf32>
    %1033 = arith.mulf %13, %1009 : vector<8x128xf32>
    %1034 = arith.mulf %12, %1007 : vector<8x128xf32>
    %1035 = arith.subf %1033, %1034 : vector<8x128xf32>
    %1036 = arith.mulf %1023, %1011 : vector<8x128xf32>
    %1037 = arith.addf %1035, %1036 : vector<8x128xf32>
    %1038 = arith.addf %1032, %1037 : vector<8x128xf32>
    %1039 = vector.broadcast %842 : f32 to vector<8x128xf32>
    %1040 = arith.mulf %26, %1039 : vector<8x128xf32>
    %1041 = arith.mulf %1040, %1040 : vector<8x128xf32>
    %cst_304 = arith.constant 0.000000e+00 : f32
    %1042 = vector.broadcast %cst_304 : f32 to vector<8x128xf32>
    %1043 = arith.subf %1042, %1041 : vector<8x128xf32>
    %1044 = math.exp %1043 : vector<8x128xf32>
    %cst_305 = arith.constant 0.000000e+00 : f32
    %1045 = vector.broadcast %cst_305 : f32 to vector<8x128xf32>
    %1046 = arith.cmpf olt, %1040, %1045 : vector<8x128xf32>
    %cst_306 = arith.constant -1.000000e+00 : f32
    %cst_307 = arith.constant 1.000000e+00 : f32
    %1047 = vector.broadcast %cst_306 : f32 to vector<8x128xf32>
    %1048 = vector.broadcast %cst_307 : f32 to vector<8x128xf32>
    %1049 = arith.select %1046, %1047, %1048 : vector<8x128xi1>, vector<8x128xf32>
    %1050 = math.absf %1040 : vector<8x128xf32>
    %cst_308 = arith.constant 0.327591091 : f32
    %1051 = vector.broadcast %cst_308 : f32 to vector<8x128xf32>
    %1052 = arith.mulf %1051, %1050 : vector<8x128xf32>
    %cst_309 = arith.constant 1.000000e+00 : f32
    %1053 = vector.broadcast %cst_309 : f32 to vector<8x128xf32>
    %1054 = arith.addf %1053, %1052 : vector<8x128xf32>
    %1055 = tpu.reciprocal %1054 {approx = true} : vector<8x128xf32> -> vector<8x128xf32>
    %1056 = arith.mulf %1054, %1055 : vector<8x128xf32>
    %cst_310 = arith.constant 2.000000e+00 : f32
    %1057 = vector.broadcast %cst_310 : f32 to vector<8x128xf32>
    %1058 = arith.subf %1057, %1056 : vector<8x128xf32>
    %1059 = arith.mulf %1055, %1058 : vector<8x128xf32>
    %cst_311 = arith.constant 1.06140542 : f32
    %1060 = vector.broadcast %cst_311 : f32 to vector<8x128xf32>
    %1061 = arith.mulf %1060, %1059 : vector<8x128xf32>
    %cst_312 = arith.constant -1.45315206 : f32
    %1062 = vector.broadcast %cst_312 : f32 to vector<8x128xf32>
    %1063 = arith.addf %1061, %1062 : vector<8x128xf32>
    %1064 = arith.mulf %1063, %1059 : vector<8x128xf32>
    %cst_313 = arith.constant 1.42141378 : f32
    %1065 = vector.broadcast %cst_313 : f32 to vector<8x128xf32>
    %1066 = arith.addf %1064, %1065 : vector<8x128xf32>
    %1067 = arith.mulf %1066, %1059 : vector<8x128xf32>
    %cst_314 = arith.constant -0.284496725 : f32
    %1068 = vector.broadcast %cst_314 : f32 to vector<8x128xf32>
    %1069 = arith.addf %1067, %1068 : vector<8x128xf32>
    %1070 = arith.mulf %1069, %1059 : vector<8x128xf32>
    %cst_315 = arith.constant 0.254829586 : f32
    %1071 = vector.broadcast %cst_315 : f32 to vector<8x128xf32>
    %1072 = arith.addf %1070, %1071 : vector<8x128xf32>
    %1073 = arith.mulf %1072, %1059 : vector<8x128xf32>
    %1074 = arith.mulf %1073, %1044 : vector<8x128xf32>
    %cst_316 = arith.constant 1.000000e+00 : f32
    %1075 = vector.broadcast %cst_316 : f32 to vector<8x128xf32>
    %1076 = arith.subf %1075, %1074 : vector<8x128xf32>
    %1077 = arith.mulf %1049, %1076 : vector<8x128xf32>
    %1078 = vector.broadcast %842 : f32 to vector<8x128xf32>
    %1079 = arith.mulf %27, %1078 : vector<8x128xf32>
    %1080 = arith.mulf %1079, %1079 : vector<8x128xf32>
    %cst_317 = arith.constant 0.000000e+00 : f32
    %1081 = vector.broadcast %cst_317 : f32 to vector<8x128xf32>
    %1082 = arith.subf %1081, %1080 : vector<8x128xf32>
    %1083 = math.exp %1082 : vector<8x128xf32>
    %cst_318 = arith.constant 0.000000e+00 : f32
    %1084 = vector.broadcast %cst_318 : f32 to vector<8x128xf32>
    %1085 = arith.cmpf olt, %1079, %1084 : vector<8x128xf32>
    %cst_319 = arith.constant -1.000000e+00 : f32
    %cst_320 = arith.constant 1.000000e+00 : f32
    %1086 = vector.broadcast %cst_319 : f32 to vector<8x128xf32>
    %1087 = vector.broadcast %cst_320 : f32 to vector<8x128xf32>
    %1088 = arith.select %1085, %1086, %1087 : vector<8x128xi1>, vector<8x128xf32>
    %1089 = math.absf %1079 : vector<8x128xf32>
    %cst_321 = arith.constant 0.327591091 : f32
    %1090 = vector.broadcast %cst_321 : f32 to vector<8x128xf32>
    %1091 = arith.mulf %1090, %1089 : vector<8x128xf32>
    %cst_322 = arith.constant 1.000000e+00 : f32
    %1092 = vector.broadcast %cst_322 : f32 to vector<8x128xf32>
    %1093 = arith.addf %1092, %1091 : vector<8x128xf32>
    %1094 = tpu.reciprocal %1093 {approx = true} : vector<8x128xf32> -> vector<8x128xf32>
    %1095 = arith.mulf %1093, %1094 : vector<8x128xf32>
    %cst_323 = arith.constant 2.000000e+00 : f32
    %1096 = vector.broadcast %cst_323 : f32 to vector<8x128xf32>
    %1097 = arith.subf %1096, %1095 : vector<8x128xf32>
    %1098 = arith.mulf %1094, %1097 : vector<8x128xf32>
    %cst_324 = arith.constant 1.06140542 : f32
    %1099 = vector.broadcast %cst_324 : f32 to vector<8x128xf32>
    %1100 = arith.mulf %1099, %1098 : vector<8x128xf32>
    %cst_325 = arith.constant -1.45315206 : f32
    %1101 = vector.broadcast %cst_325 : f32 to vector<8x128xf32>
    %1102 = arith.addf %1100, %1101 : vector<8x128xf32>
    %1103 = arith.mulf %1102, %1098 : vector<8x128xf32>
    %cst_326 = arith.constant 1.42141378 : f32
    %1104 = vector.broadcast %cst_326 : f32 to vector<8x128xf32>
    %1105 = arith.addf %1103, %1104 : vector<8x128xf32>
    %1106 = arith.mulf %1105, %1098 : vector<8x128xf32>
    %cst_327 = arith.constant -0.284496725 : f32
    %1107 = vector.broadcast %cst_327 : f32 to vector<8x128xf32>
    %1108 = arith.addf %1106, %1107 : vector<8x128xf32>
    %1109 = arith.mulf %1108, %1098 : vector<8x128xf32>
    %cst_328 = arith.constant 0.254829586 : f32
    %1110 = vector.broadcast %cst_328 : f32 to vector<8x128xf32>
    %1111 = arith.addf %1109, %1110 : vector<8x128xf32>
    %1112 = arith.mulf %1111, %1098 : vector<8x128xf32>
    %1113 = arith.mulf %1112, %1083 : vector<8x128xf32>
    %cst_329 = arith.constant 1.000000e+00 : f32
    %1114 = vector.broadcast %cst_329 : f32 to vector<8x128xf32>
    %1115 = arith.subf %1114, %1113 : vector<8x128xf32>
    %1116 = arith.mulf %1088, %1115 : vector<8x128xf32>
    %1117 = vector.broadcast %842 : f32 to vector<8x128xf32>
    %1118 = arith.mulf %28, %1117 : vector<8x128xf32>
    %1119 = arith.mulf %1118, %1118 : vector<8x128xf32>
    %cst_330 = arith.constant 0.000000e+00 : f32
    %1120 = vector.broadcast %cst_330 : f32 to vector<8x128xf32>
    %1121 = arith.subf %1120, %1119 : vector<8x128xf32>
    %1122 = math.exp %1121 : vector<8x128xf32>
    %cst_331 = arith.constant 0.000000e+00 : f32
    %1123 = vector.broadcast %cst_331 : f32 to vector<8x128xf32>
    %1124 = arith.cmpf olt, %1118, %1123 : vector<8x128xf32>
    %cst_332 = arith.constant -1.000000e+00 : f32
    %cst_333 = arith.constant 1.000000e+00 : f32
    %1125 = vector.broadcast %cst_332 : f32 to vector<8x128xf32>
    %1126 = vector.broadcast %cst_333 : f32 to vector<8x128xf32>
    %1127 = arith.select %1124, %1125, %1126 : vector<8x128xi1>, vector<8x128xf32>
    %1128 = math.absf %1118 : vector<8x128xf32>
    %cst_334 = arith.constant 0.327591091 : f32
    %1129 = vector.broadcast %cst_334 : f32 to vector<8x128xf32>
    %1130 = arith.mulf %1129, %1128 : vector<8x128xf32>
    %cst_335 = arith.constant 1.000000e+00 : f32
    %1131 = vector.broadcast %cst_335 : f32 to vector<8x128xf32>
    %1132 = arith.addf %1131, %1130 : vector<8x128xf32>
    %1133 = tpu.reciprocal %1132 {approx = true} : vector<8x128xf32> -> vector<8x128xf32>
    %1134 = arith.mulf %1132, %1133 : vector<8x128xf32>
    %cst_336 = arith.constant 2.000000e+00 : f32
    %1135 = vector.broadcast %cst_336 : f32 to vector<8x128xf32>
    %1136 = arith.subf %1135, %1134 : vector<8x128xf32>
    %1137 = arith.mulf %1133, %1136 : vector<8x128xf32>
    %cst_337 = arith.constant 1.06140542 : f32
    %1138 = vector.broadcast %cst_337 : f32 to vector<8x128xf32>
    %1139 = arith.mulf %1138, %1137 : vector<8x128xf32>
    %cst_338 = arith.constant -1.45315206 : f32
    %1140 = vector.broadcast %cst_338 : f32 to vector<8x128xf32>
    %1141 = arith.addf %1139, %1140 : vector<8x128xf32>
    %1142 = arith.mulf %1141, %1137 : vector<8x128xf32>
    %cst_339 = arith.constant 1.42141378 : f32
    %1143 = vector.broadcast %cst_339 : f32 to vector<8x128xf32>
    %1144 = arith.addf %1142, %1143 : vector<8x128xf32>
    %1145 = arith.mulf %1144, %1137 : vector<8x128xf32>
    %cst_340 = arith.constant -0.284496725 : f32
    %1146 = vector.broadcast %cst_340 : f32 to vector<8x128xf32>
    %1147 = arith.addf %1145, %1146 : vector<8x128xf32>
    %1148 = arith.mulf %1147, %1137 : vector<8x128xf32>
    %cst_341 = arith.constant 0.254829586 : f32
    %1149 = vector.broadcast %cst_341 : f32 to vector<8x128xf32>
    %1150 = arith.addf %1148, %1149 : vector<8x128xf32>
    %1151 = arith.mulf %1150, %1137 : vector<8x128xf32>
    %1152 = arith.mulf %1151, %1122 : vector<8x128xf32>
    %cst_342 = arith.constant 1.000000e+00 : f32
    %1153 = vector.broadcast %cst_342 : f32 to vector<8x128xf32>
    %1154 = arith.subf %1153, %1152 : vector<8x128xf32>
    %1155 = arith.mulf %1127, %1154 : vector<8x128xf32>
    %1156 = vector.broadcast %842 : f32 to vector<8x128xf32>
    %1157 = arith.mulf %29, %1156 : vector<8x128xf32>
    %1158 = arith.mulf %1157, %1157 : vector<8x128xf32>
    %cst_343 = arith.constant 0.000000e+00 : f32
    %1159 = vector.broadcast %cst_343 : f32 to vector<8x128xf32>
    %1160 = arith.subf %1159, %1158 : vector<8x128xf32>
    %1161 = math.exp %1160 : vector<8x128xf32>
    %cst_344 = arith.constant 0.000000e+00 : f32
    %1162 = vector.broadcast %cst_344 : f32 to vector<8x128xf32>
    %1163 = arith.cmpf olt, %1157, %1162 : vector<8x128xf32>
    %cst_345 = arith.constant -1.000000e+00 : f32
    %cst_346 = arith.constant 1.000000e+00 : f32
    %1164 = vector.broadcast %cst_345 : f32 to vector<8x128xf32>
    %1165 = vector.broadcast %cst_346 : f32 to vector<8x128xf32>
    %1166 = arith.select %1163, %1164, %1165 : vector<8x128xi1>, vector<8x128xf32>
    %1167 = math.absf %1157 : vector<8x128xf32>
    %cst_347 = arith.constant 0.327591091 : f32
    %1168 = vector.broadcast %cst_347 : f32 to vector<8x128xf32>
    %1169 = arith.mulf %1168, %1167 : vector<8x128xf32>
    %cst_348 = arith.constant 1.000000e+00 : f32
    %1170 = vector.broadcast %cst_348 : f32 to vector<8x128xf32>
    %1171 = arith.addf %1170, %1169 : vector<8x128xf32>
    %1172 = tpu.reciprocal %1171 {approx = true} : vector<8x128xf32> -> vector<8x128xf32>
    %1173 = arith.mulf %1171, %1172 : vector<8x128xf32>
    %cst_349 = arith.constant 2.000000e+00 : f32
    %1174 = vector.broadcast %cst_349 : f32 to vector<8x128xf32>
    %1175 = arith.subf %1174, %1173 : vector<8x128xf32>
    %1176 = arith.mulf %1172, %1175 : vector<8x128xf32>
    %cst_350 = arith.constant 1.06140542 : f32
    %1177 = vector.broadcast %cst_350 : f32 to vector<8x128xf32>
    %1178 = arith.mulf %1177, %1176 : vector<8x128xf32>
    %cst_351 = arith.constant -1.45315206 : f32
    %1179 = vector.broadcast %cst_351 : f32 to vector<8x128xf32>
    %1180 = arith.addf %1178, %1179 : vector<8x128xf32>
    %1181 = arith.mulf %1180, %1176 : vector<8x128xf32>
    %cst_352 = arith.constant 1.42141378 : f32
    %1182 = vector.broadcast %cst_352 : f32 to vector<8x128xf32>
    %1183 = arith.addf %1181, %1182 : vector<8x128xf32>
    %1184 = arith.mulf %1183, %1176 : vector<8x128xf32>
    %cst_353 = arith.constant -0.284496725 : f32
    %1185 = vector.broadcast %cst_353 : f32 to vector<8x128xf32>
    %1186 = arith.addf %1184, %1185 : vector<8x128xf32>
    %1187 = arith.mulf %1186, %1176 : vector<8x128xf32>
    %cst_354 = arith.constant 0.254829586 : f32
    %1188 = vector.broadcast %cst_354 : f32 to vector<8x128xf32>
    %1189 = arith.addf %1187, %1188 : vector<8x128xf32>
    %1190 = arith.mulf %1189, %1176 : vector<8x128xf32>
    %1191 = arith.mulf %1190, %1161 : vector<8x128xf32>
    %cst_355 = arith.constant 1.000000e+00 : f32
    %1192 = vector.broadcast %cst_355 : f32 to vector<8x128xf32>
    %1193 = arith.subf %1192, %1191 : vector<8x128xf32>
    %1194 = arith.mulf %1166, %1193 : vector<8x128xf32>
    %1195 = arith.subf %1044, %1083 : vector<8x128xf32>
    %1196 = arith.addf %1044, %1083 : vector<8x128xf32>
    %1197 = arith.subf %1122, %1161 : vector<8x128xf32>
    %1198 = arith.addf %1122, %1161 : vector<8x128xf32>
    %1199 = arith.subf %1077, %1116 : vector<8x128xf32>
    %1200 = arith.addf %1077, %1116 : vector<8x128xf32>
    %1201 = arith.subf %1155, %1194 : vector<8x128xf32>
    %1202 = arith.addf %1155, %1194 : vector<8x128xf32>
    %1203 = arith.subf %1200, %1202 : vector<8x128xf32>
    %1204 = arith.subf %1195, %1197 : vector<8x128xf32>
    %1205 = vector.broadcast %843 : f32 to vector<8x128xf32>
    %1206 = arith.mulf %1205, %1204 : vector<8x128xf32>
    %1207 = arith.mulf %35, %1203 : vector<8x128xf32>
    %1208 = arith.subf %1206, %1207 : vector<8x128xf32>
    %1209 = vector.broadcast %844 : f32 to vector<8x128xf32>
    %1210 = arith.addf %32, %1209 : vector<8x128xf32>
    %1211 = vector.broadcast %844 : f32 to vector<8x128xf32>
    %1212 = arith.addf %33, %1211 : vector<8x128xf32>
    %1213 = vector.broadcast %845 : f32 to vector<8x128xf32>
    %1214 = arith.addf %25, %1213 : vector<8x128xf32>
    %1215 = arith.mulf %9, %1214 : vector<8x128xf32>
    %1216 = arith.mulf %1212, %1197 : vector<8x128xf32>
    %1217 = arith.mulf %31, %1198 : vector<8x128xf32>
    %1218 = arith.addf %1216, %1217 : vector<8x128xf32>
    %1219 = arith.mulf %1210, %1195 : vector<8x128xf32>
    %1220 = arith.subf %1218, %1219 : vector<8x128xf32>
    %1221 = arith.mulf %30, %1196 : vector<8x128xf32>
    %1222 = arith.subf %1220, %1221 : vector<8x128xf32>
    %1223 = vector.broadcast %846 : f32 to vector<8x128xf32>
    %1224 = arith.mulf %1223, %1222 : vector<8x128xf32>
    %1225 = arith.mulf %13, %1201 : vector<8x128xf32>
    %1226 = arith.mulf %12, %1199 : vector<8x128xf32>
    %1227 = arith.subf %1225, %1226 : vector<8x128xf32>
    %1228 = arith.mulf %1215, %1203 : vector<8x128xf32>
    %1229 = arith.addf %1227, %1228 : vector<8x128xf32>
    %1230 = arith.addf %1224, %1229 : vector<8x128xf32>
    %1231 = arith.subf %1016, %1208 : vector<8x128xf32>
    %1232 = vector.broadcast %840 : f32 to vector<8x128xf32>
    %1233 = arith.mulf %1232, %1231 : vector<8x128xf32>
    %1234 = arith.subf %1038, %1230 : vector<8x128xf32>
    %1235 = vector.broadcast %841 : f32 to vector<8x128xf32>
    %1236 = arith.mulf %1235, %1234 : vector<8x128xf32>
    %1237 = arith.addf %1233, %1236 : vector<8x128xf32>
    %c2_356 = arith.constant 2 : index
    %1238 = arith.index_cast %1 : i32 to index
    %c0_357 = arith.constant 0 : index
    %1239 = vector.load %arg6[%c2_356, %1238, %c0_357] : memref<5x8x128xf32, #tpu.memory_space<vmem>>, vector<1x8x128xf32>
    %1240 = vector.shape_cast %1239 : vector<1x8x128xf32> to vector<8x128xf32>
    %1241 = vector.shape_cast %1237 : vector<8x128xf32> to vector<1x8x128xf32>
    tpu.vector_store %arg6[%c2_356, %1238, %c0_357], %1241 {strides = array<i32>} : memref<5x8x128xf32, #tpu.memory_space<vmem>>, vector<1x8x128xf32>,
    %c0_358 = arith.constant 0 : index
    %c3_359 = arith.constant 3 : index
    %1242 = memref.load %arg1[%c0_358, %c3_359] : memref<7x5xf32, #tpu.memory_space<smem>>
    %c1_360 = arith.constant 1 : index
    %c3_361 = arith.constant 3 : index
    %1243 = memref.load %arg1[%c1_360, %c3_361] : memref<7x5xf32, #tpu.memory_space<smem>>
    %c2_362 = arith.constant 2 : index
    %c3_363 = arith.constant 3 : index
    %1244 = memref.load %arg1[%c2_362, %c3_363] : memref<7x5xf32, #tpu.memory_space<smem>>
    %c3_364 = arith.constant 3 : index
    %c3_365 = arith.constant 3 : index
    %1245 = memref.load %arg1[%c3_364, %c3_365] : memref<7x5xf32, #tpu.memory_space<smem>>
    %c4_366 = arith.constant 4 : index
    %c3_367 = arith.constant 3 : index
    %1246 = memref.load %arg1[%c4_366, %c3_367] : memref<7x5xf32, #tpu.memory_space<smem>>
    %c5_368 = arith.constant 5 : index
    %c3_369 = arith.constant 3 : index
    %1247 = memref.load %arg1[%c5_368, %c3_369] : memref<7x5xf32, #tpu.memory_space<smem>>
    %c6_370 = arith.constant 6 : index
    %c3_371 = arith.constant 3 : index
    %1248 = memref.load %arg1[%c6_370, %c3_371] : memref<7x5xf32, #tpu.memory_space<smem>>
    %1249 = vector.broadcast %1244 : f32 to vector<8x128xf32>
    %1250 = arith.mulf %15, %1249 : vector<8x128xf32>
    %1251 = arith.mulf %1250, %1250 : vector<8x128xf32>
    %cst_372 = arith.constant 0.000000e+00 : f32
    %1252 = vector.broadcast %cst_372 : f32 to vector<8x128xf32>
    %1253 = arith.subf %1252, %1251 : vector<8x128xf32>
    %1254 = math.exp %1253 : vector<8x128xf32>
    %cst_373 = arith.constant 0.000000e+00 : f32
    %1255 = vector.broadcast %cst_373 : f32 to vector<8x128xf32>
    %1256 = arith.cmpf olt, %1250, %1255 : vector<8x128xf32>
    %cst_374 = arith.constant -1.000000e+00 : f32
    %cst_375 = arith.constant 1.000000e+00 : f32
    %1257 = vector.broadcast %cst_374 : f32 to vector<8x128xf32>
    %1258 = vector.broadcast %cst_375 : f32 to vector<8x128xf32>
    %1259 = arith.select %1256, %1257, %1258 : vector<8x128xi1>, vector<8x128xf32>
    %1260 = math.absf %1250 : vector<8x128xf32>
    %cst_376 = arith.constant 0.327591091 : f32
    %1261 = vector.broadcast %cst_376 : f32 to vector<8x128xf32>
    %1262 = arith.mulf %1261, %1260 : vector<8x128xf32>
    %cst_377 = arith.constant 1.000000e+00 : f32
    %1263 = vector.broadcast %cst_377 : f32 to vector<8x128xf32>
    %1264 = arith.addf %1263, %1262 : vector<8x128xf32>
    %1265 = tpu.reciprocal %1264 {approx = true} : vector<8x128xf32> -> vector<8x128xf32>
    %1266 = arith.mulf %1264, %1265 : vector<8x128xf32>
    %cst_378 = arith.constant 2.000000e+00 : f32
    %1267 = vector.broadcast %cst_378 : f32 to vector<8x128xf32>
    %1268 = arith.subf %1267, %1266 : vector<8x128xf32>
    %1269 = arith.mulf %1265, %1268 : vector<8x128xf32>
    %cst_379 = arith.constant 1.06140542 : f32
    %1270 = vector.broadcast %cst_379 : f32 to vector<8x128xf32>
    %1271 = arith.mulf %1270, %1269 : vector<8x128xf32>
    %cst_380 = arith.constant -1.45315206 : f32
    %1272 = vector.broadcast %cst_380 : f32 to vector<8x128xf32>
    %1273 = arith.addf %1271, %1272 : vector<8x128xf32>
    %1274 = arith.mulf %1273, %1269 : vector<8x128xf32>
    %cst_381 = arith.constant 1.42141378 : f32
    %1275 = vector.broadcast %cst_381 : f32 to vector<8x128xf32>
    %1276 = arith.addf %1274, %1275 : vector<8x128xf32>
    %1277 = arith.mulf %1276, %1269 : vector<8x128xf32>
    %cst_382 = arith.constant -0.284496725 : f32
    %1278 = vector.broadcast %cst_382 : f32 to vector<8x128xf32>
    %1279 = arith.addf %1277, %1278 : vector<8x128xf32>
    %1280 = arith.mulf %1279, %1269 : vector<8x128xf32>
    %cst_383 = arith.constant 0.254829586 : f32
    %1281 = vector.broadcast %cst_383 : f32 to vector<8x128xf32>
    %1282 = arith.addf %1280, %1281 : vector<8x128xf32>
    %1283 = arith.mulf %1282, %1269 : vector<8x128xf32>
    %1284 = arith.mulf %1283, %1254 : vector<8x128xf32>
    %cst_384 = arith.constant 1.000000e+00 : f32
    %1285 = vector.broadcast %cst_384 : f32 to vector<8x128xf32>
    %1286 = arith.subf %1285, %1284 : vector<8x128xf32>
    %1287 = arith.mulf %1259, %1286 : vector<8x128xf32>
    %1288 = vector.broadcast %1244 : f32 to vector<8x128xf32>
    %1289 = arith.mulf %16, %1288 : vector<8x128xf32>
    %1290 = arith.mulf %1289, %1289 : vector<8x128xf32>
    %cst_385 = arith.constant 0.000000e+00 : f32
    %1291 = vector.broadcast %cst_385 : f32 to vector<8x128xf32>
    %1292 = arith.subf %1291, %1290 : vector<8x128xf32>
    %1293 = math.exp %1292 : vector<8x128xf32>
    %cst_386 = arith.constant 0.000000e+00 : f32
    %1294 = vector.broadcast %cst_386 : f32 to vector<8x128xf32>
    %1295 = arith.cmpf olt, %1289, %1294 : vector<8x128xf32>
    %cst_387 = arith.constant -1.000000e+00 : f32
    %cst_388 = arith.constant 1.000000e+00 : f32
    %1296 = vector.broadcast %cst_387 : f32 to vector<8x128xf32>
    %1297 = vector.broadcast %cst_388 : f32 to vector<8x128xf32>
    %1298 = arith.select %1295, %1296, %1297 : vector<8x128xi1>, vector<8x128xf32>
    %1299 = math.absf %1289 : vector<8x128xf32>
    %cst_389 = arith.constant 0.327591091 : f32
    %1300 = vector.broadcast %cst_389 : f32 to vector<8x128xf32>
    %1301 = arith.mulf %1300, %1299 : vector<8x128xf32>
    %cst_390 = arith.constant 1.000000e+00 : f32
    %1302 = vector.broadcast %cst_390 : f32 to vector<8x128xf32>
    %1303 = arith.addf %1302, %1301 : vector<8x128xf32>
    %1304 = tpu.reciprocal %1303 {approx = true} : vector<8x128xf32> -> vector<8x128xf32>
    %1305 = arith.mulf %1303, %1304 : vector<8x128xf32>
    %cst_391 = arith.constant 2.000000e+00 : f32
    %1306 = vector.broadcast %cst_391 : f32 to vector<8x128xf32>
    %1307 = arith.subf %1306, %1305 : vector<8x128xf32>
    %1308 = arith.mulf %1304, %1307 : vector<8x128xf32>
    %cst_392 = arith.constant 1.06140542 : f32
    %1309 = vector.broadcast %cst_392 : f32 to vector<8x128xf32>
    %1310 = arith.mulf %1309, %1308 : vector<8x128xf32>
    %cst_393 = arith.constant -1.45315206 : f32
    %1311 = vector.broadcast %cst_393 : f32 to vector<8x128xf32>
    %1312 = arith.addf %1310, %1311 : vector<8x128xf32>
    %1313 = arith.mulf %1312, %1308 : vector<8x128xf32>
    %cst_394 = arith.constant 1.42141378 : f32
    %1314 = vector.broadcast %cst_394 : f32 to vector<8x128xf32>
    %1315 = arith.addf %1313, %1314 : vector<8x128xf32>
    %1316 = arith.mulf %1315, %1308 : vector<8x128xf32>
    %cst_395 = arith.constant -0.284496725 : f32
    %1317 = vector.broadcast %cst_395 : f32 to vector<8x128xf32>
    %1318 = arith.addf %1316, %1317 : vector<8x128xf32>
    %1319 = arith.mulf %1318, %1308 : vector<8x128xf32>
    %cst_396 = arith.constant 0.254829586 : f32
    %1320 = vector.broadcast %cst_396 : f32 to vector<8x128xf32>
    %1321 = arith.addf %1319, %1320 : vector<8x128xf32>
    %1322 = arith.mulf %1321, %1308 : vector<8x128xf32>
    %1323 = arith.mulf %1322, %1293 : vector<8x128xf32>
    %cst_397 = arith.constant 1.000000e+00 : f32
    %1324 = vector.broadcast %cst_397 : f32 to vector<8x128xf32>
    %1325 = arith.subf %1324, %1323 : vector<8x128xf32>
    %1326 = arith.mulf %1298, %1325 : vector<8x128xf32>
    %1327 = vector.broadcast %1244 : f32 to vector<8x128xf32>
    %1328 = arith.mulf %17, %1327 : vector<8x128xf32>
    %1329 = arith.mulf %1328, %1328 : vector<8x128xf32>
    %cst_398 = arith.constant 0.000000e+00 : f32
    %1330 = vector.broadcast %cst_398 : f32 to vector<8x128xf32>
    %1331 = arith.subf %1330, %1329 : vector<8x128xf32>
    %1332 = math.exp %1331 : vector<8x128xf32>
    %cst_399 = arith.constant 0.000000e+00 : f32
    %1333 = vector.broadcast %cst_399 : f32 to vector<8x128xf32>
    %1334 = arith.cmpf olt, %1328, %1333 : vector<8x128xf32>
    %cst_400 = arith.constant -1.000000e+00 : f32
    %cst_401 = arith.constant 1.000000e+00 : f32
    %1335 = vector.broadcast %cst_400 : f32 to vector<8x128xf32>
    %1336 = vector.broadcast %cst_401 : f32 to vector<8x128xf32>
    %1337 = arith.select %1334, %1335, %1336 : vector<8x128xi1>, vector<8x128xf32>
    %1338 = math.absf %1328 : vector<8x128xf32>
    %cst_402 = arith.constant 0.327591091 : f32
    %1339 = vector.broadcast %cst_402 : f32 to vector<8x128xf32>
    %1340 = arith.mulf %1339, %1338 : vector<8x128xf32>
    %cst_403 = arith.constant 1.000000e+00 : f32
    %1341 = vector.broadcast %cst_403 : f32 to vector<8x128xf32>
    %1342 = arith.addf %1341, %1340 : vector<8x128xf32>
    %1343 = tpu.reciprocal %1342 {approx = true} : vector<8x128xf32> -> vector<8x128xf32>
    %1344 = arith.mulf %1342, %1343 : vector<8x128xf32>
    %cst_404 = arith.constant 2.000000e+00 : f32
    %1345 = vector.broadcast %cst_404 : f32 to vector<8x128xf32>
    %1346 = arith.subf %1345, %1344 : vector<8x128xf32>
    %1347 = arith.mulf %1343, %1346 : vector<8x128xf32>
    %cst_405 = arith.constant 1.06140542 : f32
    %1348 = vector.broadcast %cst_405 : f32 to vector<8x128xf32>
    %1349 = arith.mulf %1348, %1347 : vector<8x128xf32>
    %cst_406 = arith.constant -1.45315206 : f32
    %1350 = vector.broadcast %cst_406 : f32 to vector<8x128xf32>
    %1351 = arith.addf %1349, %1350 : vector<8x128xf32>
    %1352 = arith.mulf %1351, %1347 : vector<8x128xf32>
    %cst_407 = arith.constant 1.42141378 : f32
    %1353 = vector.broadcast %cst_407 : f32 to vector<8x128xf32>
    %1354 = arith.addf %1352, %1353 : vector<8x128xf32>
    %1355 = arith.mulf %1354, %1347 : vector<8x128xf32>
    %cst_408 = arith.constant -0.284496725 : f32
    %1356 = vector.broadcast %cst_408 : f32 to vector<8x128xf32>
    %1357 = arith.addf %1355, %1356 : vector<8x128xf32>
    %1358 = arith.mulf %1357, %1347 : vector<8x128xf32>
    %cst_409 = arith.constant 0.254829586 : f32
    %1359 = vector.broadcast %cst_409 : f32 to vector<8x128xf32>
    %1360 = arith.addf %1358, %1359 : vector<8x128xf32>
    %1361 = arith.mulf %1360, %1347 : vector<8x128xf32>
    %1362 = arith.mulf %1361, %1332 : vector<8x128xf32>
    %cst_410 = arith.constant 1.000000e+00 : f32
    %1363 = vector.broadcast %cst_410 : f32 to vector<8x128xf32>
    %1364 = arith.subf %1363, %1362 : vector<8x128xf32>
    %1365 = arith.mulf %1337, %1364 : vector<8x128xf32>
    %1366 = vector.broadcast %1244 : f32 to vector<8x128xf32>
    %1367 = arith.mulf %18, %1366 : vector<8x128xf32>
    %1368 = arith.mulf %1367, %1367 : vector<8x128xf32>
    %cst_411 = arith.constant 0.000000e+00 : f32
    %1369 = vector.broadcast %cst_411 : f32 to vector<8x128xf32>
    %1370 = arith.subf %1369, %1368 : vector<8x128xf32>
    %1371 = math.exp %1370 : vector<8x128xf32>
    %cst_412 = arith.constant 0.000000e+00 : f32
    %1372 = vector.broadcast %cst_412 : f32 to vector<8x128xf32>
    %1373 = arith.cmpf olt, %1367, %1372 : vector<8x128xf32>
    %cst_413 = arith.constant -1.000000e+00 : f32
    %cst_414 = arith.constant 1.000000e+00 : f32
    %1374 = vector.broadcast %cst_413 : f32 to vector<8x128xf32>
    %1375 = vector.broadcast %cst_414 : f32 to vector<8x128xf32>
    %1376 = arith.select %1373, %1374, %1375 : vector<8x128xi1>, vector<8x128xf32>
    %1377 = math.absf %1367 : vector<8x128xf32>
    %cst_415 = arith.constant 0.327591091 : f32
    %1378 = vector.broadcast %cst_415 : f32 to vector<8x128xf32>
    %1379 = arith.mulf %1378, %1377 : vector<8x128xf32>
    %cst_416 = arith.constant 1.000000e+00 : f32
    %1380 = vector.broadcast %cst_416 : f32 to vector<8x128xf32>
    %1381 = arith.addf %1380, %1379 : vector<8x128xf32>
    %1382 = tpu.reciprocal %1381 {approx = true} : vector<8x128xf32> -> vector<8x128xf32>
    %1383 = arith.mulf %1381, %1382 : vector<8x128xf32>
    %cst_417 = arith.constant 2.000000e+00 : f32
    %1384 = vector.broadcast %cst_417 : f32 to vector<8x128xf32>
    %1385 = arith.subf %1384, %1383 : vector<8x128xf32>
    %1386 = arith.mulf %1382, %1385 : vector<8x128xf32>
    %cst_418 = arith.constant 1.06140542 : f32
    %1387 = vector.broadcast %cst_418 : f32 to vector<8x128xf32>
    %1388 = arith.mulf %1387, %1386 : vector<8x128xf32>
    %cst_419 = arith.constant -1.45315206 : f32
    %1389 = vector.broadcast %cst_419 : f32 to vector<8x128xf32>
    %1390 = arith.addf %1388, %1389 : vector<8x128xf32>
    %1391 = arith.mulf %1390, %1386 : vector<8x128xf32>
    %cst_420 = arith.constant 1.42141378 : f32
    %1392 = vector.broadcast %cst_420 : f32 to vector<8x128xf32>
    %1393 = arith.addf %1391, %1392 : vector<8x128xf32>
    %1394 = arith.mulf %1393, %1386 : vector<8x128xf32>
    %cst_421 = arith.constant -0.284496725 : f32
    %1395 = vector.broadcast %cst_421 : f32 to vector<8x128xf32>
    %1396 = arith.addf %1394, %1395 : vector<8x128xf32>
    %1397 = arith.mulf %1396, %1386 : vector<8x128xf32>
    %cst_422 = arith.constant 0.254829586 : f32
    %1398 = vector.broadcast %cst_422 : f32 to vector<8x128xf32>
    %1399 = arith.addf %1397, %1398 : vector<8x128xf32>
    %1400 = arith.mulf %1399, %1386 : vector<8x128xf32>
    %1401 = arith.mulf %1400, %1371 : vector<8x128xf32>
    %cst_423 = arith.constant 1.000000e+00 : f32
    %1402 = vector.broadcast %cst_423 : f32 to vector<8x128xf32>
    %1403 = arith.subf %1402, %1401 : vector<8x128xf32>
    %1404 = arith.mulf %1376, %1403 : vector<8x128xf32>
    %1405 = arith.subf %1254, %1293 : vector<8x128xf32>
    %1406 = arith.addf %1254, %1293 : vector<8x128xf32>
    %1407 = arith.subf %1332, %1371 : vector<8x128xf32>
    %1408 = arith.addf %1332, %1371 : vector<8x128xf32>
    %1409 = arith.subf %1287, %1326 : vector<8x128xf32>
    %1410 = arith.addf %1287, %1326 : vector<8x128xf32>
    %1411 = arith.subf %1365, %1404 : vector<8x128xf32>
    %1412 = arith.addf %1365, %1404 : vector<8x128xf32>
    %1413 = arith.subf %1410, %1412 : vector<8x128xf32>
    %1414 = arith.subf %1405, %1407 : vector<8x128xf32>
    %1415 = vector.broadcast %1245 : f32 to vector<8x128xf32>
    %1416 = arith.mulf %1415, %1414 : vector<8x128xf32>
    %1417 = arith.mulf %24, %1413 : vector<8x128xf32>
    %1418 = arith.subf %1416, %1417 : vector<8x128xf32>
    %1419 = vector.broadcast %1246 : f32 to vector<8x128xf32>
    %1420 = arith.addf %21, %1419 : vector<8x128xf32>
    %1421 = vector.broadcast %1246 : f32 to vector<8x128xf32>
    %1422 = arith.addf %22, %1421 : vector<8x128xf32>
    %1423 = vector.broadcast %1247 : f32 to vector<8x128xf32>
    %1424 = arith.addf %14, %1423 : vector<8x128xf32>
    %1425 = arith.mulf %7, %1424 : vector<8x128xf32>
    %1426 = arith.mulf %1422, %1407 : vector<8x128xf32>
    %1427 = arith.mulf %20, %1408 : vector<8x128xf32>
    %1428 = arith.addf %1426, %1427 : vector<8x128xf32>
    %1429 = arith.mulf %1420, %1405 : vector<8x128xf32>
    %1430 = arith.subf %1428, %1429 : vector<8x128xf32>
    %1431 = arith.mulf %19, %1406 : vector<8x128xf32>
    %1432 = arith.subf %1430, %1431 : vector<8x128xf32>
    %1433 = vector.broadcast %1248 : f32 to vector<8x128xf32>
    %1434 = arith.mulf %1433, %1432 : vector<8x128xf32>
    %1435 = arith.mulf %13, %1411 : vector<8x128xf32>
    %1436 = arith.mulf %12, %1409 : vector<8x128xf32>
    %1437 = arith.subf %1435, %1436 : vector<8x128xf32>
    %1438 = arith.mulf %1425, %1413 : vector<8x128xf32>
    %1439 = arith.addf %1437, %1438 : vector<8x128xf32>
    %1440 = arith.addf %1434, %1439 : vector<8x128xf32>
    %1441 = vector.broadcast %1244 : f32 to vector<8x128xf32>
    %1442 = arith.mulf %26, %1441 : vector<8x128xf32>
    %1443 = arith.mulf %1442, %1442 : vector<8x128xf32>
    %cst_424 = arith.constant 0.000000e+00 : f32
    %1444 = vector.broadcast %cst_424 : f32 to vector<8x128xf32>
    %1445 = arith.subf %1444, %1443 : vector<8x128xf32>
    %1446 = math.exp %1445 : vector<8x128xf32>
    %cst_425 = arith.constant 0.000000e+00 : f32
    %1447 = vector.broadcast %cst_425 : f32 to vector<8x128xf32>
    %1448 = arith.cmpf olt, %1442, %1447 : vector<8x128xf32>
    %cst_426 = arith.constant -1.000000e+00 : f32
    %cst_427 = arith.constant 1.000000e+00 : f32
    %1449 = vector.broadcast %cst_426 : f32 to vector<8x128xf32>
    %1450 = vector.broadcast %cst_427 : f32 to vector<8x128xf32>
    %1451 = arith.select %1448, %1449, %1450 : vector<8x128xi1>, vector<8x128xf32>
    %1452 = math.absf %1442 : vector<8x128xf32>
    %cst_428 = arith.constant 0.327591091 : f32
    %1453 = vector.broadcast %cst_428 : f32 to vector<8x128xf32>
    %1454 = arith.mulf %1453, %1452 : vector<8x128xf32>
    %cst_429 = arith.constant 1.000000e+00 : f32
    %1455 = vector.broadcast %cst_429 : f32 to vector<8x128xf32>
    %1456 = arith.addf %1455, %1454 : vector<8x128xf32>
    %1457 = tpu.reciprocal %1456 {approx = true} : vector<8x128xf32> -> vector<8x128xf32>
    %1458 = arith.mulf %1456, %1457 : vector<8x128xf32>
    %cst_430 = arith.constant 2.000000e+00 : f32
    %1459 = vector.broadcast %cst_430 : f32 to vector<8x128xf32>
    %1460 = arith.subf %1459, %1458 : vector<8x128xf32>
    %1461 = arith.mulf %1457, %1460 : vector<8x128xf32>
    %cst_431 = arith.constant 1.06140542 : f32
    %1462 = vector.broadcast %cst_431 : f32 to vector<8x128xf32>
    %1463 = arith.mulf %1462, %1461 : vector<8x128xf32>
    %cst_432 = arith.constant -1.45315206 : f32
    %1464 = vector.broadcast %cst_432 : f32 to vector<8x128xf32>
    %1465 = arith.addf %1463, %1464 : vector<8x128xf32>
    %1466 = arith.mulf %1465, %1461 : vector<8x128xf32>
    %cst_433 = arith.constant 1.42141378 : f32
    %1467 = vector.broadcast %cst_433 : f32 to vector<8x128xf32>
    %1468 = arith.addf %1466, %1467 : vector<8x128xf32>
    %1469 = arith.mulf %1468, %1461 : vector<8x128xf32>
    %cst_434 = arith.constant -0.284496725 : f32
    %1470 = vector.broadcast %cst_434 : f32 to vector<8x128xf32>
    %1471 = arith.addf %1469, %1470 : vector<8x128xf32>
    %1472 = arith.mulf %1471, %1461 : vector<8x128xf32>
    %cst_435 = arith.constant 0.254829586 : f32
    %1473 = vector.broadcast %cst_435 : f32 to vector<8x128xf32>
    %1474 = arith.addf %1472, %1473 : vector<8x128xf32>
    %1475 = arith.mulf %1474, %1461 : vector<8x128xf32>
    %1476 = arith.mulf %1475, %1446 : vector<8x128xf32>
    %cst_436 = arith.constant 1.000000e+00 : f32
    %1477 = vector.broadcast %cst_436 : f32 to vector<8x128xf32>
    %1478 = arith.subf %1477, %1476 : vector<8x128xf32>
    %1479 = arith.mulf %1451, %1478 : vector<8x128xf32>
    %1480 = vector.broadcast %1244 : f32 to vector<8x128xf32>
    %1481 = arith.mulf %27, %1480 : vector<8x128xf32>
    %1482 = arith.mulf %1481, %1481 : vector<8x128xf32>
    %cst_437 = arith.constant 0.000000e+00 : f32
    %1483 = vector.broadcast %cst_437 : f32 to vector<8x128xf32>
    %1484 = arith.subf %1483, %1482 : vector<8x128xf32>
    %1485 = math.exp %1484 : vector<8x128xf32>
    %cst_438 = arith.constant 0.000000e+00 : f32
    %1486 = vector.broadcast %cst_438 : f32 to vector<8x128xf32>
    %1487 = arith.cmpf olt, %1481, %1486 : vector<8x128xf32>
    %cst_439 = arith.constant -1.000000e+00 : f32
    %cst_440 = arith.constant 1.000000e+00 : f32
    %1488 = vector.broadcast %cst_439 : f32 to vector<8x128xf32>
    %1489 = vector.broadcast %cst_440 : f32 to vector<8x128xf32>
    %1490 = arith.select %1487, %1488, %1489 : vector<8x128xi1>, vector<8x128xf32>
    %1491 = math.absf %1481 : vector<8x128xf32>
    %cst_441 = arith.constant 0.327591091 : f32
    %1492 = vector.broadcast %cst_441 : f32 to vector<8x128xf32>
    %1493 = arith.mulf %1492, %1491 : vector<8x128xf32>
    %cst_442 = arith.constant 1.000000e+00 : f32
    %1494 = vector.broadcast %cst_442 : f32 to vector<8x128xf32>
    %1495 = arith.addf %1494, %1493 : vector<8x128xf32>
    %1496 = tpu.reciprocal %1495 {approx = true} : vector<8x128xf32> -> vector<8x128xf32>
    %1497 = arith.mulf %1495, %1496 : vector<8x128xf32>
    %cst_443 = arith.constant 2.000000e+00 : f32
    %1498 = vector.broadcast %cst_443 : f32 to vector<8x128xf32>
    %1499 = arith.subf %1498, %1497 : vector<8x128xf32>
    %1500 = arith.mulf %1496, %1499 : vector<8x128xf32>
    %cst_444 = arith.constant 1.06140542 : f32
    %1501 = vector.broadcast %cst_444 : f32 to vector<8x128xf32>
    %1502 = arith.mulf %1501, %1500 : vector<8x128xf32>
    %cst_445 = arith.constant -1.45315206 : f32
    %1503 = vector.broadcast %cst_445 : f32 to vector<8x128xf32>
    %1504 = arith.addf %1502, %1503 : vector<8x128xf32>
    %1505 = arith.mulf %1504, %1500 : vector<8x128xf32>
    %cst_446 = arith.constant 1.42141378 : f32
    %1506 = vector.broadcast %cst_446 : f32 to vector<8x128xf32>
    %1507 = arith.addf %1505, %1506 : vector<8x128xf32>
    %1508 = arith.mulf %1507, %1500 : vector<8x128xf32>
    %cst_447 = arith.constant -0.284496725 : f32
    %1509 = vector.broadcast %cst_447 : f32 to vector<8x128xf32>
    %1510 = arith.addf %1508, %1509 : vector<8x128xf32>
    %1511 = arith.mulf %1510, %1500 : vector<8x128xf32>
    %cst_448 = arith.constant 0.254829586 : f32
    %1512 = vector.broadcast %cst_448 : f32 to vector<8x128xf32>
    %1513 = arith.addf %1511, %1512 : vector<8x128xf32>
    %1514 = arith.mulf %1513, %1500 : vector<8x128xf32>
    %1515 = arith.mulf %1514, %1485 : vector<8x128xf32>
    %cst_449 = arith.constant 1.000000e+00 : f32
    %1516 = vector.broadcast %cst_449 : f32 to vector<8x128xf32>
    %1517 = arith.subf %1516, %1515 : vector<8x128xf32>
    %1518 = arith.mulf %1490, %1517 : vector<8x128xf32>
    %1519 = vector.broadcast %1244 : f32 to vector<8x128xf32>
    %1520 = arith.mulf %28, %1519 : vector<8x128xf32>
    %1521 = arith.mulf %1520, %1520 : vector<8x128xf32>
    %cst_450 = arith.constant 0.000000e+00 : f32
    %1522 = vector.broadcast %cst_450 : f32 to vector<8x128xf32>
    %1523 = arith.subf %1522, %1521 : vector<8x128xf32>
    %1524 = math.exp %1523 : vector<8x128xf32>
    %cst_451 = arith.constant 0.000000e+00 : f32
    %1525 = vector.broadcast %cst_451 : f32 to vector<8x128xf32>
    %1526 = arith.cmpf olt, %1520, %1525 : vector<8x128xf32>
    %cst_452 = arith.constant -1.000000e+00 : f32
    %cst_453 = arith.constant 1.000000e+00 : f32
    %1527 = vector.broadcast %cst_452 : f32 to vector<8x128xf32>
    %1528 = vector.broadcast %cst_453 : f32 to vector<8x128xf32>
    %1529 = arith.select %1526, %1527, %1528 : vector<8x128xi1>, vector<8x128xf32>
    %1530 = math.absf %1520 : vector<8x128xf32>
    %cst_454 = arith.constant 0.327591091 : f32
    %1531 = vector.broadcast %cst_454 : f32 to vector<8x128xf32>
    %1532 = arith.mulf %1531, %1530 : vector<8x128xf32>
    %cst_455 = arith.constant 1.000000e+00 : f32
    %1533 = vector.broadcast %cst_455 : f32 to vector<8x128xf32>
    %1534 = arith.addf %1533, %1532 : vector<8x128xf32>
    %1535 = tpu.reciprocal %1534 {approx = true} : vector<8x128xf32> -> vector<8x128xf32>
    %1536 = arith.mulf %1534, %1535 : vector<8x128xf32>
    %cst_456 = arith.constant 2.000000e+00 : f32
    %1537 = vector.broadcast %cst_456 : f32 to vector<8x128xf32>
    %1538 = arith.subf %1537, %1536 : vector<8x128xf32>
    %1539 = arith.mulf %1535, %1538 : vector<8x128xf32>
    %cst_457 = arith.constant 1.06140542 : f32
    %1540 = vector.broadcast %cst_457 : f32 to vector<8x128xf32>
    %1541 = arith.mulf %1540, %1539 : vector<8x128xf32>
    %cst_458 = arith.constant -1.45315206 : f32
    %1542 = vector.broadcast %cst_458 : f32 to vector<8x128xf32>
    %1543 = arith.addf %1541, %1542 : vector<8x128xf32>
    %1544 = arith.mulf %1543, %1539 : vector<8x128xf32>
    %cst_459 = arith.constant 1.42141378 : f32
    %1545 = vector.broadcast %cst_459 : f32 to vector<8x128xf32>
    %1546 = arith.addf %1544, %1545 : vector<8x128xf32>
    %1547 = arith.mulf %1546, %1539 : vector<8x128xf32>
    %cst_460 = arith.constant -0.284496725 : f32
    %1548 = vector.broadcast %cst_460 : f32 to vector<8x128xf32>
    %1549 = arith.addf %1547, %1548 : vector<8x128xf32>
    %1550 = arith.mulf %1549, %1539 : vector<8x128xf32>
    %cst_461 = arith.constant 0.254829586 : f32
    %1551 = vector.broadcast %cst_461 : f32 to vector<8x128xf32>
    %1552 = arith.addf %1550, %1551 : vector<8x128xf32>
    %1553 = arith.mulf %1552, %1539 : vector<8x128xf32>
    %1554 = arith.mulf %1553, %1524 : vector<8x128xf32>
    %cst_462 = arith.constant 1.000000e+00 : f32
    %1555 = vector.broadcast %cst_462 : f32 to vector<8x128xf32>
    %1556 = arith.subf %1555, %1554 : vector<8x128xf32>
    %1557 = arith.mulf %1529, %1556 : vector<8x128xf32>
    %1558 = vector.broadcast %1244 : f32 to vector<8x128xf32>
    %1559 = arith.mulf %29, %1558 : vector<8x128xf32>
    %1560 = arith.mulf %1559, %1559 : vector<8x128xf32>
    %cst_463 = arith.constant 0.000000e+00 : f32
    %1561 = vector.broadcast %cst_463 : f32 to vector<8x128xf32>
    %1562 = arith.subf %1561, %1560 : vector<8x128xf32>
    %1563 = math.exp %1562 : vector<8x128xf32>
    %cst_464 = arith.constant 0.000000e+00 : f32
    %1564 = vector.broadcast %cst_464 : f32 to vector<8x128xf32>
    %1565 = arith.cmpf olt, %1559, %1564 : vector<8x128xf32>
    %cst_465 = arith.constant -1.000000e+00 : f32
    %cst_466 = arith.constant 1.000000e+00 : f32
    %1566 = vector.broadcast %cst_465 : f32 to vector<8x128xf32>
    %1567 = vector.broadcast %cst_466 : f32 to vector<8x128xf32>
    %1568 = arith.select %1565, %1566, %1567 : vector<8x128xi1>, vector<8x128xf32>
    %1569 = math.absf %1559 : vector<8x128xf32>
    %cst_467 = arith.constant 0.327591091 : f32
    %1570 = vector.broadcast %cst_467 : f32 to vector<8x128xf32>
    %1571 = arith.mulf %1570, %1569 : vector<8x128xf32>
    %cst_468 = arith.constant 1.000000e+00 : f32
    %1572 = vector.broadcast %cst_468 : f32 to vector<8x128xf32>
    %1573 = arith.addf %1572, %1571 : vector<8x128xf32>
    %1574 = tpu.reciprocal %1573 {approx = true} : vector<8x128xf32> -> vector<8x128xf32>
    %1575 = arith.mulf %1573, %1574 : vector<8x128xf32>
    %cst_469 = arith.constant 2.000000e+00 : f32
    %1576 = vector.broadcast %cst_469 : f32 to vector<8x128xf32>
    %1577 = arith.subf %1576, %1575 : vector<8x128xf32>
    %1578 = arith.mulf %1574, %1577 : vector<8x128xf32>
    %cst_470 = arith.constant 1.06140542 : f32
    %1579 = vector.broadcast %cst_470 : f32 to vector<8x128xf32>
    %1580 = arith.mulf %1579, %1578 : vector<8x128xf32>
    %cst_471 = arith.constant -1.45315206 : f32
    %1581 = vector.broadcast %cst_471 : f32 to vector<8x128xf32>
    %1582 = arith.addf %1580, %1581 : vector<8x128xf32>
    %1583 = arith.mulf %1582, %1578 : vector<8x128xf32>
    %cst_472 = arith.constant 1.42141378 : f32
    %1584 = vector.broadcast %cst_472 : f32 to vector<8x128xf32>
    %1585 = arith.addf %1583, %1584 : vector<8x128xf32>
    %1586 = arith.mulf %1585, %1578 : vector<8x128xf32>
    %cst_473 = arith.constant -0.284496725 : f32
    %1587 = vector.broadcast %cst_473 : f32 to vector<8x128xf32>
    %1588 = arith.addf %1586, %1587 : vector<8x128xf32>
    %1589 = arith.mulf %1588, %1578 : vector<8x128xf32>
    %cst_474 = arith.constant 0.254829586 : f32
    %1590 = vector.broadcast %cst_474 : f32 to vector<8x128xf32>
    %1591 = arith.addf %1589, %1590 : vector<8x128xf32>
    %1592 = arith.mulf %1591, %1578 : vector<8x128xf32>
    %1593 = arith.mulf %1592, %1563 : vector<8x128xf32>
    %cst_475 = arith.constant 1.000000e+00 : f32
    %1594 = vector.broadcast %cst_475 : f32 to vector<8x128xf32>
    %1595 = arith.subf %1594, %1593 : vector<8x128xf32>
    %1596 = arith.mulf %1568, %1595 : vector<8x128xf32>
    %1597 = arith.subf %1446, %1485 : vector<8x128xf32>
    %1598 = arith.addf %1446, %1485 : vector<8x128xf32>
    %1599 = arith.subf %1524, %1563 : vector<8x128xf32>
    %1600 = arith.addf %1524, %1563 : vector<8x128xf32>
    %1601 = arith.subf %1479, %1518 : vector<8x128xf32>
    %1602 = arith.addf %1479, %1518 : vector<8x128xf32>
    %1603 = arith.subf %1557, %1596 : vector<8x128xf32>
    %1604 = arith.addf %1557, %1596 : vector<8x128xf32>
    %1605 = arith.subf %1602, %1604 : vector<8x128xf32>
    %1606 = arith.subf %1597, %1599 : vector<8x128xf32>
    %1607 = vector.broadcast %1245 : f32 to vector<8x128xf32>
    %1608 = arith.mulf %1607, %1606 : vector<8x128xf32>
    %1609 = arith.mulf %35, %1605 : vector<8x128xf32>
    %1610 = arith.subf %1608, %1609 : vector<8x128xf32>
    %1611 = vector.broadcast %1246 : f32 to vector<8x128xf32>
    %1612 = arith.addf %32, %1611 : vector<8x128xf32>
    %1613 = vector.broadcast %1246 : f32 to vector<8x128xf32>
    %1614 = arith.addf %33, %1613 : vector<8x128xf32>
    %1615 = vector.broadcast %1247 : f32 to vector<8x128xf32>
    %1616 = arith.addf %25, %1615 : vector<8x128xf32>
    %1617 = arith.mulf %9, %1616 : vector<8x128xf32>
    %1618 = arith.mulf %1614, %1599 : vector<8x128xf32>
    %1619 = arith.mulf %31, %1600 : vector<8x128xf32>
    %1620 = arith.addf %1618, %1619 : vector<8x128xf32>
    %1621 = arith.mulf %1612, %1597 : vector<8x128xf32>
    %1622 = arith.subf %1620, %1621 : vector<8x128xf32>
    %1623 = arith.mulf %30, %1598 : vector<8x128xf32>
    %1624 = arith.subf %1622, %1623 : vector<8x128xf32>
    %1625 = vector.broadcast %1248 : f32 to vector<8x128xf32>
    %1626 = arith.mulf %1625, %1624 : vector<8x128xf32>
    %1627 = arith.mulf %13, %1603 : vector<8x128xf32>
    %1628 = arith.mulf %12, %1601 : vector<8x128xf32>
    %1629 = arith.subf %1627, %1628 : vector<8x128xf32>
    %1630 = arith.mulf %1617, %1605 : vector<8x128xf32>
    %1631 = arith.addf %1629, %1630 : vector<8x128xf32>
    %1632 = arith.addf %1626, %1631 : vector<8x128xf32>
    %1633 = arith.subf %1418, %1610 : vector<8x128xf32>
    %1634 = vector.broadcast %1242 : f32 to vector<8x128xf32>
    %1635 = arith.mulf %1634, %1633 : vector<8x128xf32>
    %1636 = arith.subf %1440, %1632 : vector<8x128xf32>
    %1637 = vector.broadcast %1243 : f32 to vector<8x128xf32>
    %1638 = arith.mulf %1637, %1636 : vector<8x128xf32>
    %1639 = arith.addf %1635, %1638 : vector<8x128xf32>
    %c3_476 = arith.constant 3 : index
    %1640 = arith.index_cast %1 : i32 to index
    %c0_477 = arith.constant 0 : index
    %1641 = vector.load %arg6[%c3_476, %1640, %c0_477] : memref<5x8x128xf32, #tpu.memory_space<vmem>>, vector<1x8x128xf32>
    %1642 = vector.shape_cast %1641 : vector<1x8x128xf32> to vector<8x128xf32>
    %1643 = vector.shape_cast %1639 : vector<8x128xf32> to vector<1x8x128xf32>
    tpu.vector_store %arg6[%c3_476, %1640, %c0_477], %1643 {strides = array<i32>} : memref<5x8x128xf32, #tpu.memory_space<vmem>>, vector<1x8x128xf32>,
    %c0_478 = arith.constant 0 : index
    %c4_479 = arith.constant 4 : index
    %1644 = memref.load %arg1[%c0_478, %c4_479] : memref<7x5xf32, #tpu.memory_space<smem>>
    %c1_480 = arith.constant 1 : index
    %c4_481 = arith.constant 4 : index
    %1645 = memref.load %arg1[%c1_480, %c4_481] : memref<7x5xf32, #tpu.memory_space<smem>>
    %c2_482 = arith.constant 2 : index
    %c4_483 = arith.constant 4 : index
    %1646 = memref.load %arg1[%c2_482, %c4_483] : memref<7x5xf32, #tpu.memory_space<smem>>
    %c3_484 = arith.constant 3 : index
    %c4_485 = arith.constant 4 : index
    %1647 = memref.load %arg1[%c3_484, %c4_485] : memref<7x5xf32, #tpu.memory_space<smem>>
    %c4_486 = arith.constant 4 : index
    %c4_487 = arith.constant 4 : index
    %1648 = memref.load %arg1[%c4_486, %c4_487] : memref<7x5xf32, #tpu.memory_space<smem>>
    %c5_488 = arith.constant 5 : index
    %c4_489 = arith.constant 4 : index
    %1649 = memref.load %arg1[%c5_488, %c4_489] : memref<7x5xf32, #tpu.memory_space<smem>>
    %c6_490 = arith.constant 6 : index
    %c4_491 = arith.constant 4 : index
    %1650 = memref.load %arg1[%c6_490, %c4_491] : memref<7x5xf32, #tpu.memory_space<smem>>
    %1651 = vector.broadcast %1646 : f32 to vector<8x128xf32>
    %1652 = arith.mulf %15, %1651 : vector<8x128xf32>
    %1653 = arith.mulf %1652, %1652 : vector<8x128xf32>
    %cst_492 = arith.constant 0.000000e+00 : f32
    %1654 = vector.broadcast %cst_492 : f32 to vector<8x128xf32>
    %1655 = arith.subf %1654, %1653 : vector<8x128xf32>
    %1656 = math.exp %1655 : vector<8x128xf32>
    %cst_493 = arith.constant 0.000000e+00 : f32
    %1657 = vector.broadcast %cst_493 : f32 to vector<8x128xf32>
    %1658 = arith.cmpf olt, %1652, %1657 : vector<8x128xf32>
    %cst_494 = arith.constant -1.000000e+00 : f32
    %cst_495 = arith.constant 1.000000e+00 : f32
    %1659 = vector.broadcast %cst_494 : f32 to vector<8x128xf32>
    %1660 = vector.broadcast %cst_495 : f32 to vector<8x128xf32>
    %1661 = arith.select %1658, %1659, %1660 : vector<8x128xi1>, vector<8x128xf32>
    %1662 = math.absf %1652 : vector<8x128xf32>
    %cst_496 = arith.constant 0.327591091 : f32
    %1663 = vector.broadcast %cst_496 : f32 to vector<8x128xf32>
    %1664 = arith.mulf %1663, %1662 : vector<8x128xf32>
    %cst_497 = arith.constant 1.000000e+00 : f32
    %1665 = vector.broadcast %cst_497 : f32 to vector<8x128xf32>
    %1666 = arith.addf %1665, %1664 : vector<8x128xf32>
    %1667 = tpu.reciprocal %1666 {approx = true} : vector<8x128xf32> -> vector<8x128xf32>
    %1668 = arith.mulf %1666, %1667 : vector<8x128xf32>
    %cst_498 = arith.constant 2.000000e+00 : f32
    %1669 = vector.broadcast %cst_498 : f32 to vector<8x128xf32>
    %1670 = arith.subf %1669, %1668 : vector<8x128xf32>
    %1671 = arith.mulf %1667, %1670 : vector<8x128xf32>
    %cst_499 = arith.constant 1.06140542 : f32
    %1672 = vector.broadcast %cst_499 : f32 to vector<8x128xf32>
    %1673 = arith.mulf %1672, %1671 : vector<8x128xf32>
    %cst_500 = arith.constant -1.45315206 : f32
    %1674 = vector.broadcast %cst_500 : f32 to vector<8x128xf32>
    %1675 = arith.addf %1673, %1674 : vector<8x128xf32>
    %1676 = arith.mulf %1675, %1671 : vector<8x128xf32>
    %cst_501 = arith.constant 1.42141378 : f32
    %1677 = vector.broadcast %cst_501 : f32 to vector<8x128xf32>
    %1678 = arith.addf %1676, %1677 : vector<8x128xf32>
    %1679 = arith.mulf %1678, %1671 : vector<8x128xf32>
    %cst_502 = arith.constant -0.284496725 : f32
    %1680 = vector.broadcast %cst_502 : f32 to vector<8x128xf32>
    %1681 = arith.addf %1679, %1680 : vector<8x128xf32>
    %1682 = arith.mulf %1681, %1671 : vector<8x128xf32>
    %cst_503 = arith.constant 0.254829586 : f32
    %1683 = vector.broadcast %cst_503 : f32 to vector<8x128xf32>
    %1684 = arith.addf %1682, %1683 : vector<8x128xf32>
    %1685 = arith.mulf %1684, %1671 : vector<8x128xf32>
    %1686 = arith.mulf %1685, %1656 : vector<8x128xf32>
    %cst_504 = arith.constant 1.000000e+00 : f32
    %1687 = vector.broadcast %cst_504 : f32 to vector<8x128xf32>
    %1688 = arith.subf %1687, %1686 : vector<8x128xf32>
    %1689 = arith.mulf %1661, %1688 : vector<8x128xf32>
    %1690 = vector.broadcast %1646 : f32 to vector<8x128xf32>
    %1691 = arith.mulf %16, %1690 : vector<8x128xf32>
    %1692 = arith.mulf %1691, %1691 : vector<8x128xf32>
    %cst_505 = arith.constant 0.000000e+00 : f32
    %1693 = vector.broadcast %cst_505 : f32 to vector<8x128xf32>
    %1694 = arith.subf %1693, %1692 : vector<8x128xf32>
    %1695 = math.exp %1694 : vector<8x128xf32>
    %cst_506 = arith.constant 0.000000e+00 : f32
    %1696 = vector.broadcast %cst_506 : f32 to vector<8x128xf32>
    %1697 = arith.cmpf olt, %1691, %1696 : vector<8x128xf32>
    %cst_507 = arith.constant -1.000000e+00 : f32
    %cst_508 = arith.constant 1.000000e+00 : f32
    %1698 = vector.broadcast %cst_507 : f32 to vector<8x128xf32>
    %1699 = vector.broadcast %cst_508 : f32 to vector<8x128xf32>
    %1700 = arith.select %1697, %1698, %1699 : vector<8x128xi1>, vector<8x128xf32>
    %1701 = math.absf %1691 : vector<8x128xf32>
    %cst_509 = arith.constant 0.327591091 : f32
    %1702 = vector.broadcast %cst_509 : f32 to vector<8x128xf32>
    %1703 = arith.mulf %1702, %1701 : vector<8x128xf32>
    %cst_510 = arith.constant 1.000000e+00 : f32
    %1704 = vector.broadcast %cst_510 : f32 to vector<8x128xf32>
    %1705 = arith.addf %1704, %1703 : vector<8x128xf32>
    %1706 = tpu.reciprocal %1705 {approx = true} : vector<8x128xf32> -> vector<8x128xf32>
    %1707 = arith.mulf %1705, %1706 : vector<8x128xf32>
    %cst_511 = arith.constant 2.000000e+00 : f32
    %1708 = vector.broadcast %cst_511 : f32 to vector<8x128xf32>
    %1709 = arith.subf %1708, %1707 : vector<8x128xf32>
    %1710 = arith.mulf %1706, %1709 : vector<8x128xf32>
    %cst_512 = arith.constant 1.06140542 : f32
    %1711 = vector.broadcast %cst_512 : f32 to vector<8x128xf32>
    %1712 = arith.mulf %1711, %1710 : vector<8x128xf32>
    %cst_513 = arith.constant -1.45315206 : f32
    %1713 = vector.broadcast %cst_513 : f32 to vector<8x128xf32>
    %1714 = arith.addf %1712, %1713 : vector<8x128xf32>
    %1715 = arith.mulf %1714, %1710 : vector<8x128xf32>
    %cst_514 = arith.constant 1.42141378 : f32
    %1716 = vector.broadcast %cst_514 : f32 to vector<8x128xf32>
    %1717 = arith.addf %1715, %1716 : vector<8x128xf32>
    %1718 = arith.mulf %1717, %1710 : vector<8x128xf32>
    %cst_515 = arith.constant -0.284496725 : f32
    %1719 = vector.broadcast %cst_515 : f32 to vector<8x128xf32>
    %1720 = arith.addf %1718, %1719 : vector<8x128xf32>
    %1721 = arith.mulf %1720, %1710 : vector<8x128xf32>
    %cst_516 = arith.constant 0.254829586 : f32
    %1722 = vector.broadcast %cst_516 : f32 to vector<8x128xf32>
    %1723 = arith.addf %1721, %1722 : vector<8x128xf32>
    %1724 = arith.mulf %1723, %1710 : vector<8x128xf32>
    %1725 = arith.mulf %1724, %1695 : vector<8x128xf32>
    %cst_517 = arith.constant 1.000000e+00 : f32
    %1726 = vector.broadcast %cst_517 : f32 to vector<8x128xf32>
    %1727 = arith.subf %1726, %1725 : vector<8x128xf32>
    %1728 = arith.mulf %1700, %1727 : vector<8x128xf32>
    %1729 = vector.broadcast %1646 : f32 to vector<8x128xf32>
    %1730 = arith.mulf %17, %1729 : vector<8x128xf32>
    %1731 = arith.mulf %1730, %1730 : vector<8x128xf32>
    %cst_518 = arith.constant 0.000000e+00 : f32
    %1732 = vector.broadcast %cst_518 : f32 to vector<8x128xf32>
    %1733 = arith.subf %1732, %1731 : vector<8x128xf32>
    %1734 = math.exp %1733 : vector<8x128xf32>
    %cst_519 = arith.constant 0.000000e+00 : f32
    %1735 = vector.broadcast %cst_519 : f32 to vector<8x128xf32>
    %1736 = arith.cmpf olt, %1730, %1735 : vector<8x128xf32>
    %cst_520 = arith.constant -1.000000e+00 : f32
    %cst_521 = arith.constant 1.000000e+00 : f32
    %1737 = vector.broadcast %cst_520 : f32 to vector<8x128xf32>
    %1738 = vector.broadcast %cst_521 : f32 to vector<8x128xf32>
    %1739 = arith.select %1736, %1737, %1738 : vector<8x128xi1>, vector<8x128xf32>
    %1740 = math.absf %1730 : vector<8x128xf32>
    %cst_522 = arith.constant 0.327591091 : f32
    %1741 = vector.broadcast %cst_522 : f32 to vector<8x128xf32>
    %1742 = arith.mulf %1741, %1740 : vector<8x128xf32>
    %cst_523 = arith.constant 1.000000e+00 : f32
    %1743 = vector.broadcast %cst_523 : f32 to vector<8x128xf32>
    %1744 = arith.addf %1743, %1742 : vector<8x128xf32>
    %1745 = tpu.reciprocal %1744 {approx = true} : vector<8x128xf32> -> vector<8x128xf32>
    %1746 = arith.mulf %1744, %1745 : vector<8x128xf32>
    %cst_524 = arith.constant 2.000000e+00 : f32
    %1747 = vector.broadcast %cst_524 : f32 to vector<8x128xf32>
    %1748 = arith.subf %1747, %1746 : vector<8x128xf32>
    %1749 = arith.mulf %1745, %1748 : vector<8x128xf32>
    %cst_525 = arith.constant 1.06140542 : f32
    %1750 = vector.broadcast %cst_525 : f32 to vector<8x128xf32>
    %1751 = arith.mulf %1750, %1749 : vector<8x128xf32>
    %cst_526 = arith.constant -1.45315206 : f32
    %1752 = vector.broadcast %cst_526 : f32 to vector<8x128xf32>
    %1753 = arith.addf %1751, %1752 : vector<8x128xf32>
    %1754 = arith.mulf %1753, %1749 : vector<8x128xf32>
    %cst_527 = arith.constant 1.42141378 : f32
    %1755 = vector.broadcast %cst_527 : f32 to vector<8x128xf32>
    %1756 = arith.addf %1754, %1755 : vector<8x128xf32>
    %1757 = arith.mulf %1756, %1749 : vector<8x128xf32>
    %cst_528 = arith.constant -0.284496725 : f32
    %1758 = vector.broadcast %cst_528 : f32 to vector<8x128xf32>
    %1759 = arith.addf %1757, %1758 : vector<8x128xf32>
    %1760 = arith.mulf %1759, %1749 : vector<8x128xf32>
    %cst_529 = arith.constant 0.254829586 : f32
    %1761 = vector.broadcast %cst_529 : f32 to vector<8x128xf32>
    %1762 = arith.addf %1760, %1761 : vector<8x128xf32>
    %1763 = arith.mulf %1762, %1749 : vector<8x128xf32>
    %1764 = arith.mulf %1763, %1734 : vector<8x128xf32>
    %cst_530 = arith.constant 1.000000e+00 : f32
    %1765 = vector.broadcast %cst_530 : f32 to vector<8x128xf32>
    %1766 = arith.subf %1765, %1764 : vector<8x128xf32>
    %1767 = arith.mulf %1739, %1766 : vector<8x128xf32>
    %1768 = vector.broadcast %1646 : f32 to vector<8x128xf32>
    %1769 = arith.mulf %18, %1768 : vector<8x128xf32>
    %1770 = arith.mulf %1769, %1769 : vector<8x128xf32>
    %cst_531 = arith.constant 0.000000e+00 : f32
    %1771 = vector.broadcast %cst_531 : f32 to vector<8x128xf32>
    %1772 = arith.subf %1771, %1770 : vector<8x128xf32>
    %1773 = math.exp %1772 : vector<8x128xf32>
    %cst_532 = arith.constant 0.000000e+00 : f32
    %1774 = vector.broadcast %cst_532 : f32 to vector<8x128xf32>
    %1775 = arith.cmpf olt, %1769, %1774 : vector<8x128xf32>
    %cst_533 = arith.constant -1.000000e+00 : f32
    %cst_534 = arith.constant 1.000000e+00 : f32
    %1776 = vector.broadcast %cst_533 : f32 to vector<8x128xf32>
    %1777 = vector.broadcast %cst_534 : f32 to vector<8x128xf32>
    %1778 = arith.select %1775, %1776, %1777 : vector<8x128xi1>, vector<8x128xf32>
    %1779 = math.absf %1769 : vector<8x128xf32>
    %cst_535 = arith.constant 0.327591091 : f32
    %1780 = vector.broadcast %cst_535 : f32 to vector<8x128xf32>
    %1781 = arith.mulf %1780, %1779 : vector<8x128xf32>
    %cst_536 = arith.constant 1.000000e+00 : f32
    %1782 = vector.broadcast %cst_536 : f32 to vector<8x128xf32>
    %1783 = arith.addf %1782, %1781 : vector<8x128xf32>
    %1784 = tpu.reciprocal %1783 {approx = true} : vector<8x128xf32> -> vector<8x128xf32>
    %1785 = arith.mulf %1783, %1784 : vector<8x128xf32>
    %cst_537 = arith.constant 2.000000e+00 : f32
    %1786 = vector.broadcast %cst_537 : f32 to vector<8x128xf32>
    %1787 = arith.subf %1786, %1785 : vector<8x128xf32>
    %1788 = arith.mulf %1784, %1787 : vector<8x128xf32>
    %cst_538 = arith.constant 1.06140542 : f32
    %1789 = vector.broadcast %cst_538 : f32 to vector<8x128xf32>
    %1790 = arith.mulf %1789, %1788 : vector<8x128xf32>
    %cst_539 = arith.constant -1.45315206 : f32
    %1791 = vector.broadcast %cst_539 : f32 to vector<8x128xf32>
    %1792 = arith.addf %1790, %1791 : vector<8x128xf32>
    %1793 = arith.mulf %1792, %1788 : vector<8x128xf32>
    %cst_540 = arith.constant 1.42141378 : f32
    %1794 = vector.broadcast %cst_540 : f32 to vector<8x128xf32>
    %1795 = arith.addf %1793, %1794 : vector<8x128xf32>
    %1796 = arith.mulf %1795, %1788 : vector<8x128xf32>
    %cst_541 = arith.constant -0.284496725 : f32
    %1797 = vector.broadcast %cst_541 : f32 to vector<8x128xf32>
    %1798 = arith.addf %1796, %1797 : vector<8x128xf32>
    %1799 = arith.mulf %1798, %1788 : vector<8x128xf32>
    %cst_542 = arith.constant 0.254829586 : f32
    %1800 = vector.broadcast %cst_542 : f32 to vector<8x128xf32>
    %1801 = arith.addf %1799, %1800 : vector<8x128xf32>
    %1802 = arith.mulf %1801, %1788 : vector<8x128xf32>
    %1803 = arith.mulf %1802, %1773 : vector<8x128xf32>
    %cst_543 = arith.constant 1.000000e+00 : f32
    %1804 = vector.broadcast %cst_543 : f32 to vector<8x128xf32>
    %1805 = arith.subf %1804, %1803 : vector<8x128xf32>
    %1806 = arith.mulf %1778, %1805 : vector<8x128xf32>
    %1807 = arith.subf %1656, %1695 : vector<8x128xf32>
    %1808 = arith.addf %1656, %1695 : vector<8x128xf32>
    %1809 = arith.subf %1734, %1773 : vector<8x128xf32>
    %1810 = arith.addf %1734, %1773 : vector<8x128xf32>
    %1811 = arith.subf %1689, %1728 : vector<8x128xf32>
    %1812 = arith.addf %1689, %1728 : vector<8x128xf32>
    %1813 = arith.subf %1767, %1806 : vector<8x128xf32>
    %1814 = arith.addf %1767, %1806 : vector<8x128xf32>
    %1815 = arith.subf %1812, %1814 : vector<8x128xf32>
    %1816 = arith.subf %1807, %1809 : vector<8x128xf32>
    %1817 = vector.broadcast %1647 : f32 to vector<8x128xf32>
    %1818 = arith.mulf %1817, %1816 : vector<8x128xf32>
    %1819 = arith.mulf %24, %1815 : vector<8x128xf32>
    %1820 = arith.subf %1818, %1819 : vector<8x128xf32>
    %1821 = vector.broadcast %1648 : f32 to vector<8x128xf32>
    %1822 = arith.addf %21, %1821 : vector<8x128xf32>
    %1823 = vector.broadcast %1648 : f32 to vector<8x128xf32>
    %1824 = arith.addf %22, %1823 : vector<8x128xf32>
    %1825 = vector.broadcast %1649 : f32 to vector<8x128xf32>
    %1826 = arith.addf %14, %1825 : vector<8x128xf32>
    %1827 = arith.mulf %7, %1826 : vector<8x128xf32>
    %1828 = arith.mulf %1824, %1809 : vector<8x128xf32>
    %1829 = arith.mulf %20, %1810 : vector<8x128xf32>
    %1830 = arith.addf %1828, %1829 : vector<8x128xf32>
    %1831 = arith.mulf %1822, %1807 : vector<8x128xf32>
    %1832 = arith.subf %1830, %1831 : vector<8x128xf32>
    %1833 = arith.mulf %19, %1808 : vector<8x128xf32>
    %1834 = arith.subf %1832, %1833 : vector<8x128xf32>
    %1835 = vector.broadcast %1650 : f32 to vector<8x128xf32>
    %1836 = arith.mulf %1835, %1834 : vector<8x128xf32>
    %1837 = arith.mulf %13, %1813 : vector<8x128xf32>
    %1838 = arith.mulf %12, %1811 : vector<8x128xf32>
    %1839 = arith.subf %1837, %1838 : vector<8x128xf32>
    %1840 = arith.mulf %1827, %1815 : vector<8x128xf32>
    %1841 = arith.addf %1839, %1840 : vector<8x128xf32>
    %1842 = arith.addf %1836, %1841 : vector<8x128xf32>
    %1843 = vector.broadcast %1646 : f32 to vector<8x128xf32>
    %1844 = arith.mulf %26, %1843 : vector<8x128xf32>
    %1845 = arith.mulf %1844, %1844 : vector<8x128xf32>
    %cst_544 = arith.constant 0.000000e+00 : f32
    %1846 = vector.broadcast %cst_544 : f32 to vector<8x128xf32>
    %1847 = arith.subf %1846, %1845 : vector<8x128xf32>
    %1848 = math.exp %1847 : vector<8x128xf32>
    %cst_545 = arith.constant 0.000000e+00 : f32
    %1849 = vector.broadcast %cst_545 : f32 to vector<8x128xf32>
    %1850 = arith.cmpf olt, %1844, %1849 : vector<8x128xf32>
    %cst_546 = arith.constant -1.000000e+00 : f32
    %cst_547 = arith.constant 1.000000e+00 : f32
    %1851 = vector.broadcast %cst_546 : f32 to vector<8x128xf32>
    %1852 = vector.broadcast %cst_547 : f32 to vector<8x128xf32>
    %1853 = arith.select %1850, %1851, %1852 : vector<8x128xi1>, vector<8x128xf32>
    %1854 = math.absf %1844 : vector<8x128xf32>
    %cst_548 = arith.constant 0.327591091 : f32
    %1855 = vector.broadcast %cst_548 : f32 to vector<8x128xf32>
    %1856 = arith.mulf %1855, %1854 : vector<8x128xf32>
    %cst_549 = arith.constant 1.000000e+00 : f32
    %1857 = vector.broadcast %cst_549 : f32 to vector<8x128xf32>
    %1858 = arith.addf %1857, %1856 : vector<8x128xf32>
    %1859 = tpu.reciprocal %1858 {approx = true} : vector<8x128xf32> -> vector<8x128xf32>
    %1860 = arith.mulf %1858, %1859 : vector<8x128xf32>
    %cst_550 = arith.constant 2.000000e+00 : f32
    %1861 = vector.broadcast %cst_550 : f32 to vector<8x128xf32>
    %1862 = arith.subf %1861, %1860 : vector<8x128xf32>
    %1863 = arith.mulf %1859, %1862 : vector<8x128xf32>
    %cst_551 = arith.constant 1.06140542 : f32
    %1864 = vector.broadcast %cst_551 : f32 to vector<8x128xf32>
    %1865 = arith.mulf %1864, %1863 : vector<8x128xf32>
    %cst_552 = arith.constant -1.45315206 : f32
    %1866 = vector.broadcast %cst_552 : f32 to vector<8x128xf32>
    %1867 = arith.addf %1865, %1866 : vector<8x128xf32>
    %1868 = arith.mulf %1867, %1863 : vector<8x128xf32>
    %cst_553 = arith.constant 1.42141378 : f32
    %1869 = vector.broadcast %cst_553 : f32 to vector<8x128xf32>
    %1870 = arith.addf %1868, %1869 : vector<8x128xf32>
    %1871 = arith.mulf %1870, %1863 : vector<8x128xf32>
    %cst_554 = arith.constant -0.284496725 : f32
    %1872 = vector.broadcast %cst_554 : f32 to vector<8x128xf32>
    %1873 = arith.addf %1871, %1872 : vector<8x128xf32>
    %1874 = arith.mulf %1873, %1863 : vector<8x128xf32>
    %cst_555 = arith.constant 0.254829586 : f32
    %1875 = vector.broadcast %cst_555 : f32 to vector<8x128xf32>
    %1876 = arith.addf %1874, %1875 : vector<8x128xf32>
    %1877 = arith.mulf %1876, %1863 : vector<8x128xf32>
    %1878 = arith.mulf %1877, %1848 : vector<8x128xf32>
    %cst_556 = arith.constant 1.000000e+00 : f32
    %1879 = vector.broadcast %cst_556 : f32 to vector<8x128xf32>
    %1880 = arith.subf %1879, %1878 : vector<8x128xf32>
    %1881 = arith.mulf %1853, %1880 : vector<8x128xf32>
    %1882 = vector.broadcast %1646 : f32 to vector<8x128xf32>
    %1883 = arith.mulf %27, %1882 : vector<8x128xf32>
    %1884 = arith.mulf %1883, %1883 : vector<8x128xf32>
    %cst_557 = arith.constant 0.000000e+00 : f32
    %1885 = vector.broadcast %cst_557 : f32 to vector<8x128xf32>
    %1886 = arith.subf %1885, %1884 : vector<8x128xf32>
    %1887 = math.exp %1886 : vector<8x128xf32>
    %cst_558 = arith.constant 0.000000e+00 : f32
    %1888 = vector.broadcast %cst_558 : f32 to vector<8x128xf32>
    %1889 = arith.cmpf olt, %1883, %1888 : vector<8x128xf32>
    %cst_559 = arith.constant -1.000000e+00 : f32
    %cst_560 = arith.constant 1.000000e+00 : f32
    %1890 = vector.broadcast %cst_559 : f32 to vector<8x128xf32>
    %1891 = vector.broadcast %cst_560 : f32 to vector<8x128xf32>
    %1892 = arith.select %1889, %1890, %1891 : vector<8x128xi1>, vector<8x128xf32>
    %1893 = math.absf %1883 : vector<8x128xf32>
    %cst_561 = arith.constant 0.327591091 : f32
    %1894 = vector.broadcast %cst_561 : f32 to vector<8x128xf32>
    %1895 = arith.mulf %1894, %1893 : vector<8x128xf32>
    %cst_562 = arith.constant 1.000000e+00 : f32
    %1896 = vector.broadcast %cst_562 : f32 to vector<8x128xf32>
    %1897 = arith.addf %1896, %1895 : vector<8x128xf32>
    %1898 = tpu.reciprocal %1897 {approx = true} : vector<8x128xf32> -> vector<8x128xf32>
    %1899 = arith.mulf %1897, %1898 : vector<8x128xf32>
    %cst_563 = arith.constant 2.000000e+00 : f32
    %1900 = vector.broadcast %cst_563 : f32 to vector<8x128xf32>
    %1901 = arith.subf %1900, %1899 : vector<8x128xf32>
    %1902 = arith.mulf %1898, %1901 : vector<8x128xf32>
    %cst_564 = arith.constant 1.06140542 : f32
    %1903 = vector.broadcast %cst_564 : f32 to vector<8x128xf32>
    %1904 = arith.mulf %1903, %1902 : vector<8x128xf32>
    %cst_565 = arith.constant -1.45315206 : f32
    %1905 = vector.broadcast %cst_565 : f32 to vector<8x128xf32>
    %1906 = arith.addf %1904, %1905 : vector<8x128xf32>
    %1907 = arith.mulf %1906, %1902 : vector<8x128xf32>
    %cst_566 = arith.constant 1.42141378 : f32
    %1908 = vector.broadcast %cst_566 : f32 to vector<8x128xf32>
    %1909 = arith.addf %1907, %1908 : vector<8x128xf32>
    %1910 = arith.mulf %1909, %1902 : vector<8x128xf32>
    %cst_567 = arith.constant -0.284496725 : f32
    %1911 = vector.broadcast %cst_567 : f32 to vector<8x128xf32>
    %1912 = arith.addf %1910, %1911 : vector<8x128xf32>
    %1913 = arith.mulf %1912, %1902 : vector<8x128xf32>
    %cst_568 = arith.constant 0.254829586 : f32
    %1914 = vector.broadcast %cst_568 : f32 to vector<8x128xf32>
    %1915 = arith.addf %1913, %1914 : vector<8x128xf32>
    %1916 = arith.mulf %1915, %1902 : vector<8x128xf32>
    %1917 = arith.mulf %1916, %1887 : vector<8x128xf32>
    %cst_569 = arith.constant 1.000000e+00 : f32
    %1918 = vector.broadcast %cst_569 : f32 to vector<8x128xf32>
    %1919 = arith.subf %1918, %1917 : vector<8x128xf32>
    %1920 = arith.mulf %1892, %1919 : vector<8x128xf32>
    %1921 = vector.broadcast %1646 : f32 to vector<8x128xf32>
    %1922 = arith.mulf %28, %1921 : vector<8x128xf32>
    %1923 = arith.mulf %1922, %1922 : vector<8x128xf32>
    %cst_570 = arith.constant 0.000000e+00 : f32
    %1924 = vector.broadcast %cst_570 : f32 to vector<8x128xf32>
    %1925 = arith.subf %1924, %1923 : vector<8x128xf32>
    %1926 = math.exp %1925 : vector<8x128xf32>
    %cst_571 = arith.constant 0.000000e+00 : f32
    %1927 = vector.broadcast %cst_571 : f32 to vector<8x128xf32>
    %1928 = arith.cmpf olt, %1922, %1927 : vector<8x128xf32>
    %cst_572 = arith.constant -1.000000e+00 : f32
    %cst_573 = arith.constant 1.000000e+00 : f32
    %1929 = vector.broadcast %cst_572 : f32 to vector<8x128xf32>
    %1930 = vector.broadcast %cst_573 : f32 to vector<8x128xf32>
    %1931 = arith.select %1928, %1929, %1930 : vector<8x128xi1>, vector<8x128xf32>
    %1932 = math.absf %1922 : vector<8x128xf32>
    %cst_574 = arith.constant 0.327591091 : f32
    %1933 = vector.broadcast %cst_574 : f32 to vector<8x128xf32>
    %1934 = arith.mulf %1933, %1932 : vector<8x128xf32>
    %cst_575 = arith.constant 1.000000e+00 : f32
    %1935 = vector.broadcast %cst_575 : f32 to vector<8x128xf32>
    %1936 = arith.addf %1935, %1934 : vector<8x128xf32>
    %1937 = tpu.reciprocal %1936 {approx = true} : vector<8x128xf32> -> vector<8x128xf32>
    %1938 = arith.mulf %1936, %1937 : vector<8x128xf32>
    %cst_576 = arith.constant 2.000000e+00 : f32
    %1939 = vector.broadcast %cst_576 : f32 to vector<8x128xf32>
    %1940 = arith.subf %1939, %1938 : vector<8x128xf32>
    %1941 = arith.mulf %1937, %1940 : vector<8x128xf32>
    %cst_577 = arith.constant 1.06140542 : f32
    %1942 = vector.broadcast %cst_577 : f32 to vector<8x128xf32>
    %1943 = arith.mulf %1942, %1941 : vector<8x128xf32>
    %cst_578 = arith.constant -1.45315206 : f32
    %1944 = vector.broadcast %cst_578 : f32 to vector<8x128xf32>
    %1945 = arith.addf %1943, %1944 : vector<8x128xf32>
    %1946 = arith.mulf %1945, %1941 : vector<8x128xf32>
    %cst_579 = arith.constant 1.42141378 : f32
    %1947 = vector.broadcast %cst_579 : f32 to vector<8x128xf32>
    %1948 = arith.addf %1946, %1947 : vector<8x128xf32>
    %1949 = arith.mulf %1948, %1941 : vector<8x128xf32>
    %cst_580 = arith.constant -0.284496725 : f32
    %1950 = vector.broadcast %cst_580 : f32 to vector<8x128xf32>
    %1951 = arith.addf %1949, %1950 : vector<8x128xf32>
    %1952 = arith.mulf %1951, %1941 : vector<8x128xf32>
    %cst_581 = arith.constant 0.254829586 : f32
    %1953 = vector.broadcast %cst_581 : f32 to vector<8x128xf32>
    %1954 = arith.addf %1952, %1953 : vector<8x128xf32>
    %1955 = arith.mulf %1954, %1941 : vector<8x128xf32>
    %1956 = arith.mulf %1955, %1926 : vector<8x128xf32>
    %cst_582 = arith.constant 1.000000e+00 : f32
    %1957 = vector.broadcast %cst_582 : f32 to vector<8x128xf32>
    %1958 = arith.subf %1957, %1956 : vector<8x128xf32>
    %1959 = arith.mulf %1931, %1958 : vector<8x128xf32>
    %1960 = vector.broadcast %1646 : f32 to vector<8x128xf32>
    %1961 = arith.mulf %29, %1960 : vector<8x128xf32>
    %1962 = arith.mulf %1961, %1961 : vector<8x128xf32>
    %cst_583 = arith.constant 0.000000e+00 : f32
    %1963 = vector.broadcast %cst_583 : f32 to vector<8x128xf32>
    %1964 = arith.subf %1963, %1962 : vector<8x128xf32>
    %1965 = math.exp %1964 : vector<8x128xf32>
    %cst_584 = arith.constant 0.000000e+00 : f32
    %1966 = vector.broadcast %cst_584 : f32 to vector<8x128xf32>
    %1967 = arith.cmpf olt, %1961, %1966 : vector<8x128xf32>
    %cst_585 = arith.constant -1.000000e+00 : f32
    %cst_586 = arith.constant 1.000000e+00 : f32
    %1968 = vector.broadcast %cst_585 : f32 to vector<8x128xf32>
    %1969 = vector.broadcast %cst_586 : f32 to vector<8x128xf32>
    %1970 = arith.select %1967, %1968, %1969 : vector<8x128xi1>, vector<8x128xf32>
    %1971 = math.absf %1961 : vector<8x128xf32>
    %cst_587 = arith.constant 0.327591091 : f32
    %1972 = vector.broadcast %cst_587 : f32 to vector<8x128xf32>
    %1973 = arith.mulf %1972, %1971 : vector<8x128xf32>
    %cst_588 = arith.constant 1.000000e+00 : f32
    %1974 = vector.broadcast %cst_588 : f32 to vector<8x128xf32>
    %1975 = arith.addf %1974, %1973 : vector<8x128xf32>
    %1976 = tpu.reciprocal %1975 {approx = true} : vector<8x128xf32> -> vector<8x128xf32>
    %1977 = arith.mulf %1975, %1976 : vector<8x128xf32>
    %cst_589 = arith.constant 2.000000e+00 : f32
    %1978 = vector.broadcast %cst_589 : f32 to vector<8x128xf32>
    %1979 = arith.subf %1978, %1977 : vector<8x128xf32>
    %1980 = arith.mulf %1976, %1979 : vector<8x128xf32>
    %cst_590 = arith.constant 1.06140542 : f32
    %1981 = vector.broadcast %cst_590 : f32 to vector<8x128xf32>
    %1982 = arith.mulf %1981, %1980 : vector<8x128xf32>
    %cst_591 = arith.constant -1.45315206 : f32
    %1983 = vector.broadcast %cst_591 : f32 to vector<8x128xf32>
    %1984 = arith.addf %1982, %1983 : vector<8x128xf32>
    %1985 = arith.mulf %1984, %1980 : vector<8x128xf32>
    %cst_592 = arith.constant 1.42141378 : f32
    %1986 = vector.broadcast %cst_592 : f32 to vector<8x128xf32>
    %1987 = arith.addf %1985, %1986 : vector<8x128xf32>
    %1988 = arith.mulf %1987, %1980 : vector<8x128xf32>
    %cst_593 = arith.constant -0.284496725 : f32
    %1989 = vector.broadcast %cst_593 : f32 to vector<8x128xf32>
    %1990 = arith.addf %1988, %1989 : vector<8x128xf32>
    %1991 = arith.mulf %1990, %1980 : vector<8x128xf32>
    %cst_594 = arith.constant 0.254829586 : f32
    %1992 = vector.broadcast %cst_594 : f32 to vector<8x128xf32>
    %1993 = arith.addf %1991, %1992 : vector<8x128xf32>
    %1994 = arith.mulf %1993, %1980 : vector<8x128xf32>
    %1995 = arith.mulf %1994, %1965 : vector<8x128xf32>
    %cst_595 = arith.constant 1.000000e+00 : f32
    %1996 = vector.broadcast %cst_595 : f32 to vector<8x128xf32>
    %1997 = arith.subf %1996, %1995 : vector<8x128xf32>
    %1998 = arith.mulf %1970, %1997 : vector<8x128xf32>
    %1999 = arith.subf %1848, %1887 : vector<8x128xf32>
    %2000 = arith.addf %1848, %1887 : vector<8x128xf32>
    %2001 = arith.subf %1926, %1965 : vector<8x128xf32>
    %2002 = arith.addf %1926, %1965 : vector<8x128xf32>
    %2003 = arith.subf %1881, %1920 : vector<8x128xf32>
    %2004 = arith.addf %1881, %1920 : vector<8x128xf32>
    %2005 = arith.subf %1959, %1998 : vector<8x128xf32>
    %2006 = arith.addf %1959, %1998 : vector<8x128xf32>
    %2007 = arith.subf %2004, %2006 : vector<8x128xf32>
    %2008 = arith.subf %1999, %2001 : vector<8x128xf32>
    %2009 = vector.broadcast %1647 : f32 to vector<8x128xf32>
    %2010 = arith.mulf %2009, %2008 : vector<8x128xf32>
    %2011 = arith.mulf %35, %2007 : vector<8x128xf32>
    %2012 = arith.subf %2010, %2011 : vector<8x128xf32>
    %2013 = vector.broadcast %1648 : f32 to vector<8x128xf32>
    %2014 = arith.addf %32, %2013 : vector<8x128xf32>
    %2015 = vector.broadcast %1648 : f32 to vector<8x128xf32>
    %2016 = arith.addf %33, %2015 : vector<8x128xf32>
    %2017 = vector.broadcast %1649 : f32 to vector<8x128xf32>
    %2018 = arith.addf %25, %2017 : vector<8x128xf32>
    %2019 = arith.mulf %9, %2018 : vector<8x128xf32>
    %2020 = arith.mulf %2016, %2001 : vector<8x128xf32>
    %2021 = arith.mulf %31, %2002 : vector<8x128xf32>
    %2022 = arith.addf %2020, %2021 : vector<8x128xf32>
    %2023 = arith.mulf %2014, %1999 : vector<8x128xf32>
    %2024 = arith.subf %2022, %2023 : vector<8x128xf32>
    %2025 = arith.mulf %30, %2000 : vector<8x128xf32>
    %2026 = arith.subf %2024, %2025 : vector<8x128xf32>
    %2027 = vector.broadcast %1650 : f32 to vector<8x128xf32>
    %2028 = arith.mulf %2027, %2026 : vector<8x128xf32>
    %2029 = arith.mulf %13, %2005 : vector<8x128xf32>
    %2030 = arith.mulf %12, %2003 : vector<8x128xf32>
    %2031 = arith.subf %2029, %2030 : vector<8x128xf32>
    %2032 = arith.mulf %2019, %2007 : vector<8x128xf32>
    %2033 = arith.addf %2031, %2032 : vector<8x128xf32>
    %2034 = arith.addf %2028, %2033 : vector<8x128xf32>
    %2035 = arith.subf %1820, %2012 : vector<8x128xf32>
    %2036 = vector.broadcast %1644 : f32 to vector<8x128xf32>
    %2037 = arith.mulf %2036, %2035 : vector<8x128xf32>
    %2038 = arith.subf %1842, %2034 : vector<8x128xf32>
    %2039 = vector.broadcast %1645 : f32 to vector<8x128xf32>
    %2040 = arith.mulf %2039, %2038 : vector<8x128xf32>
    %2041 = arith.addf %2037, %2040 : vector<8x128xf32>
    %c4_596 = arith.constant 4 : index
    %2042 = arith.index_cast %1 : i32 to index
    %c0_597 = arith.constant 0 : index
    %2043 = vector.load %arg6[%c4_596, %2042, %c0_597] : memref<5x8x128xf32, #tpu.memory_space<vmem>>, vector<1x8x128xf32>
    %2044 = vector.shape_cast %2043 : vector<1x8x128xf32> to vector<8x128xf32>
    %2045 = vector.shape_cast %2041 : vector<8x128xf32> to vector<1x8x128xf32>
    tpu.vector_store %arg6[%c4_596, %2042, %c0_597], %2045 {strides = array<i32>} : memref<5x8x128xf32, #tpu.memory_space<vmem>>, vector<1x8x128xf32>,
    %c1_i32 = arith.constant 1 : i32
    return
  }
  func.func @transform_0(%arg0: i32) -> (i32, i32) {
    %c0_i32 = arith.constant 0 : i32
    %c0_i32_0 = arith.constant 0 : i32
    %c0_i32_1 = arith.constant 0 : i32
    return %c0_i32, %c0_i32_0 : i32, i32
  }
  func.func @transform_1(%arg0: i32) -> (i32, i32) {
    %c0_i32 = arith.constant 0 : i32
    %c0_i32_0 = arith.constant 0 : i32
    return %arg0, %c0_i32 : i32, i32
  }
  func.func @transform_2(%arg0: i32) -> (i32, i32) {
    %c0_i32 = arith.constant 0 : i32
    %c0_i32_0 = arith.constant 0 : i32
    return %arg0, %c0_i32 : i32, i32
  }
  func.func @transform_3(%arg0: i32) -> (i32, i32) {
    %c0_i32 = arith.constant 0 : i32
    %c0_i32_0 = arith.constant 0 : i32
    return %arg0, %c0_i32 : i32, i32
  }
  func.func @transform_4(%arg0: i32) -> (i32, i32) {
    %c0_i32 = arith.constant 0 : i32
    %c0_i32_0 = arith.constant 0 : i32
    return %arg0, %c0_i32 : i32, i32
  }
  func.func @transform_5(%arg0: i32) -> (i32, i32, i32) {
    %c0_i32 = arith.constant 0 : i32
    %c0_i32_0 = arith.constant 0 : i32
    %c0_i32_1 = arith.constant 0 : i32
    return %c0_i32, %arg0, %c0_i32_0 : i32, i32, i32
  }
}

</mosaic_0001>

<bundles_post_ra>
// kernel: interaction_block_forward.1
= control target key start
LH: loop header
LB: loop body
LE: loop exit
PB: predicated region body
PF: predicated region fallthrough
CT: control target
= control target key end

     0   :  { %10 = vsyncpa [#allocation3], 0  ;;  %s2255_s18 = smov 0   ;;  %s2257_s19 = smov 0   ;;  %s3817_s0 = inlined_call_operand.vmem [shape: f32[7,5], index: 0, kind: input, shape index: {}]   ;;  %s3818_s1 = inlined_call_operand.vmem [shape: f32[16,128], index: 1, kind: input, shape index: {}]   ;;  %s3819_s2 = inlined_call_operand.vmem [shape: f32[16,128], index: 2, kind: input, shape index: {}]   ;;  %s3820_s3 = inlined_call_operand.vmem [shape: f32[16,128], index: 3, kind: input, shape index: {}]   ;;  %s3821_s4 = inlined_call_operand.vmem [shape: f32[16,128], index: 4, kind: input, shape index: {}]   ;;  %s3822_s5 = inlined_call_operand.vmem [shape: f32[5,16,128], index: 5, kind: output, shape index: {}]  }
   0x1   :  { %s2259_s20 = smov 0  }
   0x2 LB: > { %s2268_s21 = sadd.s32 4294967295, %s2221_s20   ;;  %s2270_s22 = sadd.s32 1, %s2221_s20   ;;  %s2221_s20 = sphi %s2259_s20, %s3950_s20   ;;  %s2217_s19 = sphi %s2257_s19, %s3949_s19   ;;  %s2213_s18 = sphi %s2255_s18, %s3948_s18  }
   0x3   : > { %s145_s23 = ssub.s32 %s2221_s20, %s2270_s22  ;;  %s148_s24 = sadd.s32 1, %s2217_s19 }
   0x4   : > { %p146_p0 = scmp.eq.s32.totalorder %s145_s23, 0  ;;  %p158_p1 = scmp.ne.s32.totalorder %s2217_s19, %s2213_s18 }
   0x5   : > { %p159_p2 = scmp.eq.s32.totalorder %s2268_s21, 1  ;;  %p1929_p3 = scmp.ge.s32.totalorder %s2221_s20, 1 }
   0x6   : > { %s2278_s25 = scalar_select %p146_p0, %s2217_s19, %s148_s24  }
   0x7   : > { %p2280_p4 = por %p159_p2, %p158_p1  ;;  %p172_p5 = scmp.lt.s32.totalorder %s2221_s20, 3 }
   0x8   : > { %p1988_p6 = scmp.eq.s32.totalorder %s2268_s21, 0  ;;  %s185_s30 = sshll.u32 %s3817_s0, 4  ;;  %s186_s30 = int_to_ptr.vmem [resolvable:$true] %s185_s30 }
   0x9   : > { %p2285_p7 = pnand %p1929_p3, %p172_p5  ;;  %s2180_s6 = scalar_lea.vmem %s186_s30, 128 }
   0xa   : > { %p2181_p10 = scmp.ne.s32.totalorder %s186_s30, %s2180_s6  ;;  %p2188_p0 = scmp.lt.s32.totalorder %s186_s30, %s186_s30 }
   0xb   : > { %p1984_p8 = pneg %p2285_p7  ;;  %p2189_p1 = scmp.lt.s32.totalorder %s2180_s6, %s2180_s6 }
   0xd   : > { %p1985_p9 = pnand %p1988_p6, %p1984_p8  ;;  %p2190_p2 = por %p2189_p1, %p2188_p0 }
   0xf   : > { %p2182_p11 = pneg %p1985_p9 }
  0x11   : > { %p2183_p12 = pnand %p2182_p11, %p2181_p10 }
  0x13   : > { %p2184_p13 = pneg %p2183_p12 }
  0x15   : > { %p2191_p3 = pnand %p2190_p2, %p2184_p13 }
  0x17   : > { %2194 = shalt.err (!%p2191_p3)
}
  0x18   : > { %s2223_s7 = smov [#allocation2]   ;;  %226 = sbr.rel (%p2285_p7) target bundleno = 424 (0x1a8), region = 40 }
  0x19   : > { %1987 = dma.vmem_to_smem (!%p1985_p9), %s186_s30, 128, %s2223_s7, [#allocation3]  }
  0x1d   : > { %2208 = dma.done.wait (%p1988_p6), [#allocation3], 128  }
  0x1e   : > { %2210 = vsyncadd (%p1988_p6), [#allocation3], 4294967168 }
  0x1f   : > { %232 = sfence }
  0x20   : > { %p265_p5 = scmp.lt.s32.totalorder %s2268_s21, 1  ;;  %s1939_s10 = sld [smem:[#allocation2 + $0x100]]  ;;  %v3823_v61 = vmov 1.0  }
  0x21   : > { %s2359_s29 = sld [smem:[#allocation2 + $0x180]]  ;;  %s262_s11 = sand.u32 1, %s2213_s18  }
  0x22   : > { %s266_s8 = scalar_select %p265_p5, %s2268_s21, 1 }
  0x23   : > { %s2370_s30 = sld [smem:[#allocation2 + $0x200]]  ;;  %s1979_s12 = smul.u32 40, %s262_s11 }
  0x24   : > { %s1934_s9 = sshll.u32 %s266_s8, 3  ;;  %s2378_s6 = sld [smem:[#allocation2 + $0x280]] }
  0x25   : > { %s268_s13 = scalar_lea.vmem %s3818_s1, %s1934_s9  ;;  %s272_s16 = scalar_lea.vmem %s3819_s2, %s1934_s9 }
  0x26   : > { %s2313_s23 = scalar_lea.vmem %s3820_s3, %s1934_s9  ;;  %v281_v0 = vld [vmem:[%s268_s13] sm:$0xff]  ;;  %s2330_s28 = scalar_lea.vmem %s3821_s4, %s1934_s9  ;;  %v2336_v9 = vstv %s1939_s10 }
  0x27   : > { %v2316_v1 = vld [vmem:[%s2313_s23] sm:$0xff]  ;;  %v285_v6 = vmul.f32 %v281_v0, %v281_v0  ;;  %s2436_s7 = sld [smem:[#allocation2 + $0x300]]  ;;  %s2732_s18 = scalar_lea.vmem [#allocation4], %s1979_s12 }
  0x28   : > { %v282_v2 = vld [vmem:[%s272_s16] sm:$0xff]  ;;  %v2319_v3 = vsub.f32 %v281_v0, %v2316_v1  ;;  %v2322_v4 = vadd.f32 %v2316_v1, %v281_v0  ;;  %v2334_v8 = vmul.f32 %v2316_v1, %v2316_v1  ;;  %v2357_v17 = vmul.f32 %v2316_v1, %v281_v0  ;;  %s2507_s8 = sld [smem:[#allocation2 + $0x101]] }
  0x29   : > { %v2325_v5 = vsub.f32 %v282_v2, %v2316_v1  ;;  %v286_v7 = vmul.f32 %v282_v2, %v282_v2  ;;  %v2339_v10 = vadd.f32 %v2316_v1, %v282_v2  ;;  %v2346_v13 = vld [vmem:[%s2330_s28] sm:$0xff]  ;;  %v2352_v15 = vmul.f32 %v285_v6, %v281_v0  ;;  %s2697_s9 = sld [smem:[#allocation2]] }
  0x2a   : > { %3868 = vst [vmem:[#allocation6_spill] sm:$0xff] %v2319_v3  ;;  %3869 = vst [vmem:[#allocation7_spill] sm:$0xff] %v2322_v4  ;;  %v317_v11 = vmul.f32 %v2336_v9, %v2319_v3  ;;  %v343_v12 = vmul.f32 %v2336_v9, %v2322_v4  ;;  %v2362_v19 = vmul.f32 %v2316_v1, %v282_v2  ;;  %v2373_v23 = vmul.f32 2.5066283, %v2316_v1  ;;  %s2705_s10 = sld [smem:[#allocation2 + $0x80]] }
  0x2b   : > { %3870 = vst [vmem:[#allocation8_spill] sm:$0xff] %v2325_v5  ;;  %3871 = vst [vmem:[#allocation9_spill] sm:$0xff] %v2334_v8  ;;  %v2350_v14 = vmul.f32 %v2336_v9, %v2325_v5  ;;  %v2354_v16 = vmul.f32 %v286_v7, %v282_v2  ;;  %v2365_v20 = vadd.f32 %v2334_v8, %v285_v6  ;;  %v2409_v40 = vmul.f32 2.5066283, %v2346_v13  ;;  %s2747_s13 = sld [smem:[#allocation2 + $0x181]] }
  0x2c   : > { %3872 = vst [vmem:[#allocation10_spill] sm:$0xff] %v2339_v10  ;;  %3873 = vst [vmem:[#allocation11_spill] sm:$0xff] %v2357_v17  ;;  %v324_v18 = vand.u32 2147483647, %v317_v11  ;;  %v2368_v21 = vadd.f32 %v2334_v8, %v286_v7  ;;  %v350_v22 = vand.u32 2147483647, %v343_v12  ;;  %v2376_v24 = vsub.f32 %v281_v0, %v2346_v13 }
  0x2d   : > { %3874 = vst [vmem:[#allocation12_spill] sm:$0xff] %v2362_v19  ;;  %3875 = vst [vmem:[#allocation13_spill] sm:$0xff] %v2365_v20  ;;  %v2382_v26 = vmul.f32 %v2336_v9, %v2339_v10  ;;  %v2386_v27 = vmul.f32 %v2346_v13, %v2346_v13  ;;  %v318_v28 = vmul.f32 %v317_v11, %v317_v11  ;;  %v376_v30 = vand.u32 2147483647, %v2350_v14  ;;  %s2755_s14 = sld [smem:[#allocation2 + $0x201]] }
  0x2e   : > { %3876 = vst [vmem:[#allocation14_spill] sm:$0xff] %v2368_v21  ;;  %3877 = vst [vmem:[#allocation15_spill] sm:$0xff] %v2376_v24  ;;  %v325_v25 = vmul.f32 0.3275911, %v324_v18  ;;  %v351_v29 = vmul.f32 0.3275911, %v350_v22  ;;  %v2390_v31 = vadd.f32 %v2346_v13, %v281_v0  ;;  %v2393_v32 = vsub.f32 %v282_v2, %v2346_v13 }
  0x2f   : > { %3878 = vst [vmem:[#allocation16_spill] sm:$0xff] %v2386_v27  ;;  %v344_v34 = vmul.f32 %v343_v12, %v343_v12  ;;  %v2398_v35 = vadd.f32 %v2346_v13, %v282_v2  ;;  %v2401_v36 = vmul.f32 %v2346_v13, %v281_v0  ;;  %v377_v38 = vmul.f32 0.3275911, %v376_v30  ;;  %s2786_s15 = sld [smem:[#allocation2 + $0x281]] }
  0x30   : > { %3879 = vst [vmem:[#allocation17_spill] sm:$0xff] %v2390_v31  ;;  %3880 = vst [vmem:[#allocation18_spill] sm:$0xff] %v2393_v32  ;;  %v2395_v33 = vadd.f32 1.0, %v325_v25  ;;  %v2403_v37 = vadd.f32 1.0, %v351_v29  ;;  %v2406_v39 = vmul.f32 %v2346_v13, %v282_v2  ;;  %v402_v41 = vand.u32 2147483647, %v2382_v26 }
  0x31   : > { %3881 = vst [vmem:[#allocation19_spill] sm:$0xff] %v2398_v35  ;;  %v2414_v42 = vmul.f32 %v2336_v9, %v2376_v24  ;;  %v319_v43 = vsub.f32 0.0, %v318_v28  ;;  %v370_v44 = vmul.f32 %v2350_v14, %v2350_v14  ;;  %v2419_v45 = vadd.f32 1.0, %v377_v38  ;;  %s2805_s16 = sld [smem:[#allocation2 + $0x301]] }
  0x32   : > { %2016 = vrcp.f32 %v2395_v33  ;;  %v2422_v46 = vadd.f32 %v2386_v27, %v285_v6  ;;  %v345_v47 = vsub.f32 0.0, %v344_v34  ;;  %v403_v48 = vmul.f32 0.3275911, %v402_v41  ;;  %s2854_s17 = sld [smem:[#allocation2 + $0x102]] }
  0x33   : > { %v2426_v49 = vmul.f32 %v2336_v9, %v2390_v31  ;;  %v2429_v50 = vadd.f32 %v2386_v27, %v286_v7  ;;  %2018 = vrcp.f32 %v2403_v37  ;;  %v2434_v52 = vstv %s2370_s30  ;;  %s2994_s20 = sld [smem:[#allocation2 + $0x1]] }
  0x34   : > { %3882 = vst [vmem:[#allocation20_spill] sm:$0xff] %v2422_v46  ;;  %vm322_vm0 = vcmp.lt.f32.partialorder %v317_v11, 0.0  ;;  %vm348_vm1 = vcmp.lt.f32.partialorder %v343_v12, 0.0  ;;  %v2438_v53 = vadd.f32 1.0, %v403_v48  ;;  %v438_v54 = vstv %s2378_s6  ;;  %s3008_s24 = sld [smem:[#allocation2 + $0x81]] }
  0x35   : > { %3883 = vst [vmem:[#allocation21_spill] sm:$0xff] %v2429_v50  ;;  %v320_v55 = vmul.f32 1.442695, %v319_v43  ;;  %v371_v56 = vsub.f32 0.0, %v370_v44  ;;  %2020 = vrcp.f32 %v2419_v45  ;;  %v463_v57 = vand.u32 2147483647, %v2414_v42 }
  0x36   : > { %v346_v58 = vmul.f32 1.442695, %v345_v47  ;;  %vm374_vm2 = vcmp.lt.f32.partialorder %v2350_v14, 0.0  ;;  %v396_v59 = vmul.f32 %v2382_v26, %v2382_v26  ;;  %v489_v60 = vand.u32 2147483647, %v2426_v49  ;;  %s3052_s27 = sld [smem:[#allocation2 + $0x202]] }
  0x37   : > { %v2448_v62 = vsel %vm322_vm0, -1.0, %v3823_v61  ;;  %v2451_v63 = vsel %vm348_vm1, -1.0, %v3823_v61  ;;  %2022 = vrcp.f32 %v2438_v53  ;;  %v464_v0 = vmul.f32 0.3275911, %v463_v57  ;;  %s3062_s30 = sld [smem:[#allocation2 + $0x282]] }
  0x38   : > { %v457_v2 = vmul.f32 %v2414_v42, %v2414_v42  ;;  %v490_v6 = vmul.f32 0.3275911, %v489_v60  ;;  %v508_v7 = vmul.f32 %v2336_v9, %v2393_v32  ;;  %v2460_v11 = vmul.f32 %v2336_v9, %v2398_v35  ;;  %s3088_s6 = sld [smem:[#allocation2 + $0x302]] }
  0x39   : > { %2024 = vpow2.f32 %v320_v55  ;;  %v2463_v12 = vsel %vm374_vm2, -1.0, %v3823_v61  ;;  %vm400_vm3 = vcmp.lt.f32.partialorder %v2382_v26, 0.0  ;;  %v2466_v14 = vadd.f32 1.0, %v464_v0  ;;  %s3360_s11 = sld [smem:[#allocation2 + $0x183]] }
  0x3a   : > { %2026 = vpow2.f32 %v346_v58  ;;  %v372_v18 = vmul.f32 1.442695, %v371_v56  ;;  %v397_v22 = vsub.f32 0.0, %v396_v59  ;;  %v2468_v25 = vadd.f32 1.0, %v490_v6  ;;  %s3366_s12 = sld [smem:[#allocation2 + $0x203]] }
  0x3b   : > { %v2472_v28 = vadd.f32 %v2434_v52, %v2365_v20  ;;  %v439_v9 = vadd.f32 %v438_v54, %v2334_v8  ;;  %2028 = vrcp.f32 %v2466_v14  ;;  %v515_v29 = vand.u32 2147483647, %v508_v7 }
  0x3c   : > { %v2479_v26 = vsel %vm400_vm3, -1.0, %v3823_v61  ;;  %v458_v30 = vsub.f32 0.0, %v457_v2  ;;  %v483_v34 = vmul.f32 %v2426_v49, %v2426_v49  ;;  %v541_v38 = vand.u32 2147483647, %v2460_v11 }
  0x3d   : > { %v2486_v41 = vadd.f32 %v2434_v52, %v2368_v21  ;;  %vm461_vm4 = vcmp.lt.f32.partialorder %v2414_v42, 0.0  ;;  %2030 = vrcp.f32 %v2468_v25  ;;  %v516_v43 = vmul.f32 0.3275911, %v515_v29 }
  0x3e   : > { %v398_v47 = vmul.f32 1.442695, %v397_v22  ;;  %v509_v55 = vmul.f32 %v508_v7, %v508_v7  ;;  %v542_v56 = vmul.f32 0.3275911, %v541_v38  ;;  %2032 = vpow2.f32 %v372_v18 }
  0x3f   : > { %v2017_v44 = vpop.eup %2016  ;;  %v2493_v58 = vmul.f32 %v439_v9, %v2316_v1  ;;  %v2495_v59 = vadd.f32 1.0, %v516_v43  ;;  %v459_v0 = vmul.f32 1.442695, %v458_v30  ;;  %v2498_v42 = vsel %vm461_vm4, -1.0, %v3823_v61 }
  0x40   : > { %v328_v57 = vmul.f32 %v2017_v44, %v2395_v33  ;;  %v2019_v60 = vpop.eup %2018  ;;  %v484_v2 = vsub.f32 0.0, %v483_v34  ;;  %v2500_v6 = vadd.f32 1.0, %v542_v56  ;;  %vm487_vm5 = vcmp.lt.f32.partialorder %v2426_v49, 0.0 }
  0x41   : > { %v354_v29 = vmul.f32 %v2019_v60, %v2403_v37  ;;  %2034 = vrcp.f32 %v2495_v59  ;;  %v510_v1 = vsub.f32 0.0, %v509_v55  ;;  %vm513_vm6 = vcmp.lt.f32.partialorder %v508_v7, 0.0 }
  0x42   : > { %v329_v22 = vsub.f32 2.0, %v328_v57  ;;  %v2021_v33 = vpop.eup %2020  ;;  %2036 = vpow2.f32 %v398_v47  ;;  %v535_v18 = vmul.f32 %v2460_v11, %v2460_v11  ;;  %v485_v49 = vmul.f32 1.442695, %v484_v2 }
  0x43   : > { %v355_v30 = vsub.f32 2.0, %v354_v29  ;;  %v380_v34 = vmul.f32 %v2021_v33, %v2419_v45  ;;  %2038 = vrcp.f32 %v2500_v6  ;;  %v2514_v38 = vsel %vm487_vm5, -1.0, %v3823_v61 }
  0x44   : > { %v2509_v9 = vmul.f32 %v2017_v44, %v329_v22  ;;  %v2023_v37 = vpop.eup %2022  ;;  %2040 = vpow2.f32 %v459_v0  ;;  %v2518_v43 = vadd.f32 %v2434_v52, %v2422_v46  ;;  %v511_v57 = vmul.f32 1.442695, %v510_v1 }
  0x45   : > { %v2521_v55 = vmul.f32 %v2019_v60, %v355_v30  ;;  %v381_v44 = vsub.f32 2.0, %v380_v34  ;;  %v406_v45 = vmul.f32 %v2023_v37, %v2438_v53  ;;  %v2528_v0 = vsel %vm513_vm6, -1.0, %v3823_v61 }
  0x46   : > { %v331_v47 = vmul.f32 1.0614054, %v2509_v9  ;;  %v2524_v56 = vpop.eup %2024  ;;  %v536_v2 = vsub.f32 0.0, %v535_v18  ;;  %v2532_v22 = vadd.f32 %v2434_v52, %v2429_v50  ;;  %2042 = vpow2.f32 %v485_v49 }
  0x47   : > { %v2534_v29 = vpop.eup %2026  ;;  %v357_v30 = vmul.f32 1.0614054, %v2521_v55  ;;  %v2537_v34 = vmul.f32 %v2021_v33, %v381_v44  ;;  %v407_v53 = vsub.f32 2.0, %v406_v45  ;;  %v2548_v52 = vadd.f32 %v438_v54, %v2386_v27 }
  0x48   : > { %v332_v60 = vadd.f32 -1.4531521, %v331_v47  ;;  %v2029_v48 = vpop.eup %2028  ;;  %v2541_v7 = vsub.f32 %v2524_v56, %v2534_v29  ;;  %v422_v1 = vadd.f32 %v2534_v29, %v2524_v56  ;;  %2044 = vpow2.f32 %v511_v57 }
  0x49   : > { %v358_v47 = vadd.f32 -1.4531521, %v357_v30  ;;  %v383_v33 = vmul.f32 1.0614054, %v2537_v34  ;;  %v2552_v44 = vmul.f32 %v2023_v37, %v407_v53  ;;  %v467_v51 = vmul.f32 %v2029_v48, %v2466_v14 }
  0x4a   : > { %v333_v18 = vmul.f32 %v332_v60, %v2509_v9  ;;  %v2031_v45 = vpop.eup %2030  ;;  %v537_v61 = vmul.f32 1.442695, %v536_v2  ;;  %v2556_v50 = vstv %s2507_s8  ;;  %v2564_v60 = vmul.f32 %v2472_v28, %v2541_v7  ;;  %s3308_s8 = sld [smem:[#allocation2 + $0x2]] }
  0x4b   : > { %v359_v49 = vmul.f32 %v358_v47, %v2521_v55  ;;  %v384_v8 = vadd.f32 -1.4531521, %v383_v33  ;;  %v409_v54 = vmul.f32 1.0614054, %v2552_v44  ;;  %v2560_v27 = vpop.eup %2032  ;;  %v2567_v37 = vmul.f32 %v422_v1, %v2357_v17 }
  0x4c   : > { %v334_v46 = vadd.f32 1.4214138, %v333_v18  ;;  %v468_v14 = vsub.f32 2.0, %v467_v51  ;;  %v493_v57 = vmul.f32 %v2031_v45, %v2468_v25  ;;  %2046 = vpow2.f32 %v537_v61 }
  0x4d   : > { %v360_v30 = vadd.f32 1.4214138, %v359_v49  ;;  %v385_v53 = vmul.f32 %v384_v8, %v2537_v34  ;;  %v410_v18 = vadd.f32 -1.4531521, %v409_v54  ;;  %v2576_v28 = vmul.f32 %v2556_v50, %v2319_v3 }
  0x4e   : > { %v335_v2 = vmul.f32 %v334_v46, %v2509_v9  ;;  %v2035_v47 = vpop.eup %2034  ;;  %v2572_v33 = vmul.f32 %v2029_v48, %v468_v14  ;;  %v494_v21 = vsub.f32 2.0, %v493_v57  ;;  %vm539_vm7 = vcmp.lt.f32.partialorder %v2460_v11, 0.0 }
  0x4f   : > { %v2578_v1 = vpop.eup %2036  ;;  %v361_v25 = vmul.f32 %v360_v30, %v2521_v55  ;;  %v386_v17 = vadd.f32 1.4214138, %v385_v53  ;;  %v411_v46 = vmul.f32 %v410_v18, %v2552_v44  ;;  %v519_v54 = vmul.f32 %v2035_v47, %v2495_v59 }
  0x50   : > { %v336_v51 = vadd.f32 -0.28449672, %v335_v2  ;;  %v2039_v49 = vpop.eup %2038  ;;  %v2584_v8 = vsub.f32 %v2560_v27, %v2578_v1  ;;  %v470_v48 = vmul.f32 1.0614054, %v2572_v33  ;;  %v2587_v61 = vmul.f32 %v2031_v45, %v494_v21 }
  0x51   : > { %v2590_v14 = vpop.eup %2040  ;;  %v362_v2 = vadd.f32 -0.28449672, %v361_v25  ;;  %v387_v30 = vmul.f32 %v386_v17, %v2537_v34  ;;  %v412_v53 = vadd.f32 1.4214138, %v411_v46  ;;  %v520_v20 = vsub.f32 2.0, %v519_v54 }
  0x52   : > { %v337_v57 = vmul.f32 %v336_v51, %v2509_v9  ;;  %v471_v18 = vadd.f32 -1.4531521, %v470_v48  ;;  %v496_v3 = vmul.f32 1.0614054, %v2587_v61  ;;  %v545_v35 = vmul.f32 %v2039_v49, %v2500_v6 }
  0x53   : > { %v363_v21 = vmul.f32 %v362_v2, %v2521_v55  ;;  %v388_v45 = vadd.f32 -0.28449672, %v387_v30  ;;  %v413_v59 = vmul.f32 %v412_v53, %v2552_v44  ;;  %v2599_v51 = vmul.f32 %v2035_v47, %v520_v20  ;;  %v2601_v17 = vpop.eup %2042 }
  0x54   : > { %v338_v32 = vadd.f32 0.2548296, %v337_v57  ;;  %v472_v31 = vmul.f32 %v471_v18, %v2572_v33  ;;  %v497_v24 = vadd.f32 -1.4531521, %v496_v3  ;;  %v546_v25 = vsub.f32 2.0, %v545_v35 }
  0x55   : > { %v364_v48 = vadd.f32 0.2548296, %v363_v21  ;;  %v389_v54 = vmul.f32 %v388_v45, %v2537_v34  ;;  %v414_v6 = vadd.f32 -0.28449672, %v413_v59  ;;  %v522_v30 = vmul.f32 1.0614054, %v2599_v51  ;;  %v2609_v18 = vpop.eup %2044 }
  0x56   : > { %v339_v46 = vmul.f32 %v338_v32, %v2509_v9  ;;  %v473_v57 = vadd.f32 1.4214138, %v472_v31  ;;  %v498_v2 = vmul.f32 %v497_v24, %v2587_v61  ;;  %v2607_v53 = vmul.f32 %v2039_v49, %v546_v25 }
  0x57   : > { %v365_v3 = vmul.f32 %v364_v48, %v2521_v55  ;;  %v390_v20 = vadd.f32 0.2548296, %v389_v54  ;;  %v415_v35 = vmul.f32 %v414_v6, %v2552_v44  ;;  %v424_v32 = vadd.f32 %v2578_v1, %v2560_v27 }
  0x58   : > { %v474_v9 = vmul.f32 %v473_v57, %v2572_v33  ;;  %v499_v47 = vadd.f32 1.4214138, %v498_v2  ;;  %v523_v31 = vadd.f32 -1.4531521, %v522_v30  ;;  %v548_v24 = vmul.f32 1.0614054, %v2607_v53 }
  0x59   : > { %v340_v21 = vmul.f32 %v2524_v56, %v339_v46  ;;  %v366_v49 = vmul.f32 %v2534_v29, %v365_v3  ;;  %v391_v45 = vmul.f32 %v390_v20, %v2537_v34  ;;  %v416_v59 = vadd.f32 0.2548296, %v415_v35  ;;  %v2622_v6 = vpop.eup %2046 }
  0x5a   : > { %v475_v55 = vadd.f32 -0.28449672, %v474_v9  ;;  %v500_v25 = vmul.f32 %v499_v47, %v2587_v61  ;;  %v524_v48 = vmul.f32 %v523_v31, %v2599_v51  ;;  %v549_v54 = vadd.f32 -1.4531521, %v548_v24 }
  0x5b   : > { %v392_v57 = vmul.f32 %v2560_v27, %v391_v45  ;;  %v417_v2 = vmul.f32 %v416_v59, %v2552_v44  ;;  %v441_v56 = vmul.f32 %v2486_v41, %v2584_v8  ;;  %v442_v29 = vmul.f32 %v424_v32, %v2362_v19 }
  0x5c   : > { %v476_v34 = vmul.f32 %v475_v55, %v2572_v33  ;;  %v501_v46 = vadd.f32 -0.28449672, %v500_v25  ;;  %v525_v30 = vadd.f32 1.4214138, %v524_v48  ;;  %v550_v3 = vmul.f32 %v549_v54, %v2607_v53 }
  0x5d   : > { %v341_v20 = vsub.f32 1.0, %v340_v21  ;;  %v367_v35 = vsub.f32 1.0, %v366_v49  ;;  %v393_v9 = vsub.f32 1.0, %v392_v57  ;;  %v418_v47 = vmul.f32 %v2578_v1, %v417_v2 }
  0x5e   : > { %v477_v31 = vadd.f32 0.2548296, %v476_v34  ;;  %v502_v27 = vmul.f32 %v501_v46, %v2587_v61  ;;  %v526_v44 = vmul.f32 %v525_v30, %v2599_v51  ;;  %v551_v41 = vadd.f32 1.4214138, %v550_v3 }
  0x5f   : > { %v419_v32 = vsub.f32 1.0, %v418_v47  ;;  %v443_v24 = vadd.f32 %v442_v29, %v441_v56  ;;  %v2637_v45 = vsub.f32 %v2609_v18, %v2622_v6  ;;  %v563_v21 = vadd.f32 %v2622_v6, %v2609_v18 }
  0x60   : > { %v478_v49 = vmul.f32 %v477_v31, %v2572_v33  ;;  %v503_v1 = vadd.f32 0.2548296, %v502_v27  ;;  %v527_v59 = vadd.f32 -0.28449672, %v526_v44  ;;  %v552_v55 = vmul.f32 %v551_v41, %v2607_v53 }
  0x61   : > { %v342_v25 = vmul.f32 %v341_v20, %v2448_v62  ;;  %v368_v48 = vmul.f32 %v367_v35, %v2451_v63  ;;  %v394_v54 = vmul.f32 %v393_v9, %v2463_v12  ;;  %v420_v57 = vmul.f32 %v419_v32, %v2479_v26 }
  0x62   : > { %v479_v2 = vmul.f32 %v2590_v14, %v478_v49  ;;  %v504_v56 = vmul.f32 %v503_v1, %v2587_v61  ;;  %v528_v29 = vmul.f32 %v527_v59, %v2599_v51  ;;  %v553_v34 = vadd.f32 -0.28449672, %v552_v55 }
  0x63   : > { %v430_v33 = vsub.f32 %v2541_v7, %v2584_v8  ;;  %v2654_v46 = vsub.f32 %v2590_v14, %v2601_v17  ;;  %v577_v62 = vmul.f32 %v2532_v22, %v2637_v45  ;;  %v578_v63 = vmul.f32 %v563_v21, %v2406_v39 }
  0x64   : > { %v480_v12 = vsub.f32 1.0, %v479_v2  ;;  %v505_v26 = vmul.f32 %v2601_v17, %v504_v56  ;;  %v529_v30 = vadd.f32 0.2548296, %v528_v29  ;;  %v554_v61 = vmul.f32 %v553_v34, %v2607_v53 }
  0x65   : > { %v425_v3 = vsub.f32 %v342_v25, %v368_v48  ;;  %v426_v20 = vadd.f32 %v368_v48, %v342_v25  ;;  %v427_v35 = vsub.f32 %v394_v54, %v420_v57  ;;  %v445_v7 = vsub.f32 %v443_v24, %v2564_v60 }
  0x66   : > { %v428_v8 = vadd.f32 %v420_v57, %v394_v54  ;;  %v506_v9 = vsub.f32 1.0, %v505_v26  ;;  %v530_v47 = vmul.f32 %v529_v30, %v2599_v51  ;;  %v555_v31 = vadd.f32 0.2548296, %v554_v61 }
  0x67   : > { %v481_v22 = vmul.f32 %v480_v12, %v2498_v42  ;;  %v561_v27 = vadd.f32 %v2601_v17, %v2590_v14  ;;  %v579_v44 = vadd.f32 %v578_v63, %v577_v62  ;;  %v580_v41 = vmul.f32 %v2518_v43, %v2654_v46 }
  0x68   : > { %v507_v32 = vmul.f32 %v506_v9, %v2514_v38  ;;  %v531_v21 = vmul.f32 %v2609_v18, %v530_v47  ;;  %v556_v60 = vmul.f32 %v555_v31, %v2607_v53  ;;  %v614_v24 = vand.u32 2147483647, %v2576_v28 }
  0x69   : > { %v450_v51 = vmul.f32 %v427_v35, %v2354_v16  ;;  %v451_v42 = vmul.f32 %v425_v3, %v2352_v15  ;;  %v3884_v49 = vmov 1.0   ;;  %v2679_v17 = vmul.f32 %v2556_v50, %v2322_v4 }
  0x6a   : > { %v540_v14 = vsel %vm539_vm7, -1.0, %v3884_v49  ;;  %v429_v43 = vsub.f32 %v426_v20, %v428_v8  ;;  %v532_v38 = vsub.f32 1.0, %v531_v21  ;;  %v557_v18 = vmul.f32 %v2622_v6, %v556_v60 }
  0x6b   : > { %v576_v53 = vmul.f32 %v2548_v52, %v2346_v13  ;;  %v3885_v1 = vstv %s2359_s29  ;;  %v447_v55 = vsub.f32 %v445_v7, %v2567_v37  ;;  %v582_v25 = vmul.f32 %v561_v27, %v2401_v36  ;;  %s3057_s29 = sld [smem:[#allocation2 + $0x182]] }
  0x6c   : > { %v432_v59 = vmul.f32 %v3885_v1, %v430_v33  ;;  %v615_v48 = vmul.f32 0.3275911, %v614_v24  ;;  %v533_v11 = vmul.f32 %v532_v38, %v2528_v0  ;;  %v558_v54 = vsub.f32 1.0, %v557_v18 }
  0x6d   : > { %v564_v57 = vsub.f32 %v481_v22, %v507_v32  ;;  %v581_v2 = vsub.f32 %v579_v44, %v580_v41  ;;  %v452_v56 = vsub.f32 %v450_v51, %v451_v42  ;;  %v569_v29 = vsub.f32 %v2654_v46, %v2637_v45 }
  0x6e   : > { %v616_v6 = vadd.f32 1.0, %v615_v48  ;;  %v640_v13 = vand.u32 2147483647, %v2679_v17  ;;  %v453_v52 = vmul.f32 %v2493_v58, %v429_v43  ;;  %v559_v34 = vmul.f32 %v558_v54, %v540_v14 }
  0x6f   : > { %v565_v37 = vadd.f32 %v507_v32, %v481_v22  ;;  %v2695_v33 = vmul.f32 %v2556_v50, %v2325_v5  ;;  %v433_v0 = vmul.f32 %v429_v43, %v2373_v23  ;;  %v2702_v45 = vmul.f32 %v2556_v50, %v2339_v10 }
  0x70   : > { %2048 = vrcp.f32 %v616_v6  ;;  %v641_v62 = vmul.f32 0.3275911, %v640_v13  ;;  %v566_v46 = vsub.f32 %v533_v11, %v559_v34  ;;  %v567_v63 = vadd.f32 %v559_v34, %v533_v11 }
  0x71   : > { %v583_v58 = vsub.f32 %v581_v2, %v582_v25  ;;  %v586_v12 = vmul.f32 %v564_v57, %v2352_v15  ;;  %v3886_v26 = vstv %s2436_s7  ;;  %v666_v3 = vand.u32 2147483647, %v2695_v33  ;;  %s3132_s7 = sld [smem:[#allocation2 + $0x103]] }
  0x72   : > { %v449_v30 = vmul.f32 %v3886_v26, %v447_v55  ;;  %v642_v61 = vadd.f32 1.0, %v641_v62  ;;  %v454_v20 = vadd.f32 %v453_v52, %v452_v56  ;;  %v568_v35 = vsub.f32 %v565_v37, %v567_v63  ;;  %v3889_v55 = vld [vmem:[#allocation15_spill] sm:$0xff] }
  0x73   : > { %v3887_v7 = vmov %v3885_v1  ;;  %v585_v9 = vmul.f32 %v566_v46, %v2354_v16  ;;  %v434_v47 = vsub.f32 %v432_v59, %v433_v0  ;;  %v667_v31 = vmul.f32 0.3275911, %v666_v3 }
  0x74   : > { %v570_v8 = vmul.f32 %v569_v29, %v3887_v7  ;;  %2050 = vrcp.f32 %v642_v61  ;;  %v692_v22 = vand.u32 2147483647, %v2702_v45  ;;  %v571_v27 = vmul.f32 %v568_v35, %v2409_v40 }
  0x75   : > { %v3888_v44 = vmov %v3886_v26  ;;  %v587_v32 = vsub.f32 %v585_v9, %v586_v12  ;;  %v588_v21 = vmul.f32 %v576_v53, %v568_v35  ;;  %v668_v60 = vadd.f32 1.0, %v667_v31  ;;  %v3890_v53 = vld [vmem:[#allocation17_spill] sm:$0xff]  ;;  %v3891_v12 = vld [vmem:[#allocation18_spill] sm:$0xff] }
  0x76   : > { %v584_v41 = vmul.f32 %v583_v58, %v3888_v44  ;;  %v693_v24 = vmul.f32 0.3275911, %v692_v22  ;;  %v455_v51 = vadd.f32 %v454_v20, %v449_v30  ;;  %v572_v42 = vsub.f32 %v570_v8, %v571_v27 }
  0x77   : > { %v589_v14 = vadd.f32 %v588_v21, %v587_v32  ;;  %v592_v43 = vstv %s2697_s9  ;;  %2052 = vrcp.f32 %v668_v60  ;;  %v595_v59 = vstv %s2705_s10  ;;  %s3315_s9 = sld [smem:[#allocation2 + $0x82]] }
  0x78   : > { %v694_v38 = vadd.f32 1.0, %v693_v24  ;;  %v591_v1 = vsub.f32 %v434_v47, %v572_v42  ;;  %v2722_v25 = vmul.f32 %v2556_v50, %v3889_v55  ;;  %v2726_v54 = vmul.f32 %v2556_v50, %v3890_v53  ;;  %s3352_s10 = sld [smem:[#allocation2 + $0x283]] }
  0x79   : > { %v590_v18 = vadd.f32 %v589_v14, %v584_v41  ;;  %v608_v29 = vmul.f32 %v2576_v28, %v2576_v28  ;;  %v2739_v26 = vmul.f32 %v2556_v50, %v3891_v12  ;;  %v634_v3 = vmul.f32 %v2679_v17, %v2679_v17 }
  0x7a   : > { %v593_v48 = vmul.f32 %v592_v43, %v591_v1  ;;  %2054 = vrcp.f32 %v694_v38  ;;  %v753_v57 = vand.u32 2147483647, %v2722_v25  ;;  %v779_v37 = vand.u32 2147483647, %v2726_v54 }
  0x7b   : > { %v594_v11 = vsub.f32 %v455_v51, %v590_v18  ;;  %v609_v46 = vsub.f32 0.0, %v608_v29  ;;  %v660_v8 = vmul.f32 %v2695_v33, %v2695_v33  ;;  %vm612_vm8 = vcmp.lt.f32.partialorder %v2576_v28, 0.0 }
  0x7c   : > { %v754_v52 = vmul.f32 0.3275911, %v753_v57  ;;  %v780_v58 = vmul.f32 0.3275911, %v779_v37  ;;  %v635_v44 = vsub.f32 0.0, %v634_v3  ;;  %v2761_v21 = vsel %vm612_vm8, -1.0, %v3884_v49 }
  0x7d   : > { %v2049_v2 = vpop.eup %2048  ;;  %v596_v56 = vmul.f32 %v595_v59, %v594_v11  ;;  %v610_v47 = vmul.f32 1.442695, %v609_v46  ;;  %v661_v51 = vsub.f32 0.0, %v660_v8  ;;  %vm638_vm9 = vcmp.lt.f32.partialorder %v2679_v17, 0.0  ;;  %v3892_v11 = vld [vmem:[#allocation19_spill] sm:$0xff] }
  0x7e   : > { %v618_v13 = vmul.f32 %v2049_v2, %v616_v6  ;;  %v2735_v63 = vadd.f32 1.0, %v754_v52  ;;  %v2745_v20 = vadd.f32 1.0, %v780_v58  ;;  %v686_v42 = vmul.f32 %v2702_v45, %v2702_v45 }
  0x7f   : > { %v597_v34 = vadd.f32 %v596_v56, %v593_v48  ;;  %v636_v59 = vmul.f32 1.442695, %v635_v44  ;;  %v2775_v17 = vmul.f32 %v2556_v50, %v3892_v11  ;;  %vm664_vm10 = vcmp.lt.f32.partialorder %v2695_v33, 0.0 }
  0x80   : > { %v619_v0 = vsub.f32 2.0, %v618_v13  ;;  %2056 = vrcp.f32 %v2735_v63  ;;  %v687_v29 = vsub.f32 0.0, %v686_v42  ;;  %vm690_vm11 = vcmp.lt.f32.partialorder %v2702_v45, 0.0  ;;  %v3894_v42 = vld [vmem:[#allocation14_spill] sm:$0xff] }
  0x81   : > { %v2051_v62 = vpop.eup %2050  ;;  %598 = vst [vmem:[%s2732_s18] sm:$0xff] %v597_v34  ;;  %2058 = vrcp.f32 %v2745_v20  ;;  %v2790_v37 = vstv %s2755_s14  ;;  %v831_v46 = vand.u32 2147483647, %v2775_v17  ;;  %v2795_v33 = vsel %vm664_vm10, -1.0, %v3884_v49  ;;  %s3419_s14 = sld [smem:[#allocation2 + $0x104]] }
  0x82   : > { %v2741_v30 = vmul.f32 %v2049_v2, %v619_v0  ;;  %v644_v6 = vmul.f32 %v2051_v62, %v642_v61  ;;  %v805_v61 = vand.u32 2147483647, %v2739_v26  ;;  %2060 = vpow2.f32 %v610_v47 }
  0x83   : > { %v662_v2 = vmul.f32 1.442695, %v661_v51  ;;  %v2799_v58 = vsel %vm690_vm11, -1.0, %v3884_v49  ;;  %v688_v3 = vmul.f32 1.442695, %v687_v29  ;;  %vm751_vm12 = vcmp.lt.f32.partialorder %v2722_v25, 0.0 }
  0x84   : > { %v621_v35 = vmul.f32 1.0614054, %v2741_v30  ;;  %v645_v7 = vsub.f32 2.0, %v644_v6  ;;  %v2053_v9 = vpop.eup %2052  ;;  %v806_v41 = vmul.f32 0.3275911, %v805_v61  ;;  %vm777_vm13 = vcmp.lt.f32.partialorder %v2726_v54, 0.0 }
  0x85   : > { %v670_v27 = vmul.f32 %v2053_v9, %v668_v60  ;;  %vm803_vm14 = vcmp.lt.f32.partialorder %v2739_v26, 0.0  ;;  %vm829_vm15 = vcmp.lt.f32.partialorder %v2775_v17, 0.0 }
  0x86   : > { %v622_v31 = vadd.f32 -1.4531521, %v621_v35  ;;  %v2757_v22 = vmul.f32 %v2051_v62, %v645_v7  ;;  %v2767_v43 = vadd.f32 1.0, %v806_v41  ;;  %v3893_v7 = vld [vmem:[#allocation13_spill] sm:$0xff] }
  0x87   : > { %v2055_v32 = vpop.eup %2054  ;;  %v671_v28 = vsub.f32 2.0, %v670_v27  ;;  %v2803_v8 = vadd.f32 %v2790_v37, %v3893_v7 }
  0x88   : > { %v647_v24 = vmul.f32 1.0614054, %v2757_v22  ;;  %v696_v14 = vmul.f32 %v2055_v32, %v694_v38  ;;  %v623_v60 = vmul.f32 %v622_v31, %v2741_v30  ;;  %2062 = vrcp.f32 %v2767_v43 }
  0x89   : > { %v2770_v1 = vmul.f32 %v2053_v9, %v671_v28  ;;  %v2778_v38 = vsel %vm638_vm9, -1.0, %v3884_v49  ;;  %2064 = vpow2.f32 %v636_v59  ;;  %v832_v9 = vmul.f32 0.3275911, %v831_v46 }
  0x8a   : > { %v648_v18 = vadd.f32 -1.4531521, %v647_v24  ;;  %v697_v48 = vsub.f32 2.0, %v696_v14  ;;  %v624_v52 = vadd.f32 1.4214138, %v623_v60  ;;  %2066 = vpow2.f32 %v662_v2 }
  0x8b   : > { %v673_v56 = vmul.f32 1.0614054, %v2770_v1  ;;  %v747_v31 = vmul.f32 %v2722_v25, %v2722_v25  ;;  %v773_v24 = vmul.f32 %v2726_v54, %v2726_v54  ;;  %v2815_v51 = vadd.f32 1.0, %v832_v9 }
  0x8c   : > { %v649_v57 = vmul.f32 %v648_v18, %v2757_v22  ;;  %v2784_v13 = vmul.f32 %v2055_v32, %v697_v48  ;;  %v625_v47 = vmul.f32 %v624_v52, %v2741_v30  ;;  %v2820_v14 = vadd.f32 %v2790_v37, %v3894_v42 }
  0x8d   : > { %v674_v50 = vadd.f32 -1.4531521, %v673_v56  ;;  %v2057_v6 = vpop.eup %2056  ;;  %v825_v48 = vmul.f32 %v2775_v17, %v2775_v17  ;;  %2068 = vrcp.f32 %v2815_v51  ;;  %v3849_v2 = vstv %s2786_s15 }
  0x8e   : > { %v650_v0 = vadd.f32 1.4214138, %v649_v57  ;;  %v699_v62 = vmul.f32 1.0614054, %v2784_v13  ;;  %v757_v27 = vmul.f32 %v2057_v6, %v2735_v63  ;;  %v2059_v44 = vpop.eup %2058  ;;  %v799_v63 = vmul.f32 %v2739_v26, %v2739_v26 }
  0x8f   : > { %v675_v45 = vmul.f32 %v674_v50, %v2770_v1  ;;  %v783_v59 = vmul.f32 %v2059_v44, %v2745_v20  ;;  %v626_v57 = vadd.f32 -0.28449672, %v625_v47  ;;  %v748_v56 = vsub.f32 0.0, %v747_v31  ;;  %v2831_v52 = vpop.eup %2060 }
  0x90   : > { %v700_v35 = vadd.f32 -1.4531521, %v699_v62  ;;  %v651_v41 = vmul.f32 %v650_v0, %v2757_v22  ;;  %v758_v60 = vsub.f32 2.0, %v757_v27  ;;  %v774_v62 = vsub.f32 0.0, %v773_v24 }
  0x91   : > { %v676_v61 = vadd.f32 1.4214138, %v675_v45  ;;  %v784_v46 = vsub.f32 2.0, %v783_v59  ;;  %2070 = vpow2.f32 %v688_v3  ;;  %v800_v9 = vsub.f32 0.0, %v799_v63 }
  0x92   : > { %v701_v32 = vmul.f32 %v700_v35, %v2784_v13  ;;  %v2829_v29 = vmul.f32 %v2057_v6, %v758_v60  ;;  %v652_v50 = vadd.f32 -0.28449672, %v651_v41  ;;  %v826_v31 = vsub.f32 0.0, %v825_v48 }
  0x93   : > { %v677_v28 = vmul.f32 %v676_v61, %v2770_v1  ;;  %v2835_v47 = vmul.f32 %v2059_v44, %v784_v46  ;;  %v627_v27 = vmul.f32 %v626_v57, %v2741_v30  ;;  %v3895_v46 = vld [vmem:[#allocation9_spill] sm:$0xff]  ;;  %v2890_v25 = vsel %vm777_vm13, -1.0, %v3884_v49 }
  0x94   : > { %v702_v18 = vadd.f32 1.4214138, %v701_v32  ;;  %v760_v35 = vmul.f32 1.0614054, %v2829_v29  ;;  %v749_v32 = vmul.f32 1.442695, %v748_v56  ;;  %v653_v24 = vmul.f32 %v652_v50, %v2757_v22 }
  0x95   : > { %v2063_v45 = vpop.eup %2062  ;;  %v678_v20 = vadd.f32 -0.28449672, %v677_v28  ;;  %v786_v3 = vmul.f32 1.0614054, %v2835_v47  ;;  %v729_v57 = vadd.f32 %v3849_v2, %v3895_v46  ;;  %v827_v50 = vmul.f32 1.442695, %v826_v31 }
  0x96   : > { %v703_v0 = vmul.f32 %v702_v18, %v2784_v13  ;;  %v809_v6 = vmul.f32 %v2063_v45, %v2767_v43  ;;  %v761_v60 = vadd.f32 -1.4531521, %v760_v35  ;;  %v775_v18 = vmul.f32 1.442695, %v774_v62  ;;  %v2065_v59 = vpop.eup %2064 }
  0x97   : > { %v679_v63 = vmul.f32 %v678_v20, %v2770_v1  ;;  %v2067_v48 = vpop.eup %2066  ;;  %v787_v56 = vadd.f32 -1.4531521, %v786_v3  ;;  %v628_v62 = vadd.f32 0.2548296, %v627_v27  ;;  %2072 = vpow2.f32 %v749_v32 }
  0x98   : > { %v704_v61 = vadd.f32 -0.28449672, %v703_v0  ;;  %v810_v28 = vsub.f32 2.0, %v809_v6  ;;  %v762_v43 = vmul.f32 %v761_v60, %v2829_v29  ;;  %v801_v0 = vmul.f32 1.442695, %v800_v9 }
  0x99   : > { %v654_v41 = vadd.f32 0.2548296, %v653_v24  ;;  %2074 = vpow2.f32 %v775_v18  ;;  %v788_v20 = vmul.f32 %v787_v56, %v2835_v47  ;;  %v680_v9 = vadd.f32 0.2548296, %v679_v63 }
  0x9a   : > { %v705_v44 = vmul.f32 %v704_v61, %v2784_v13  ;;  %v2848_v35 = vmul.f32 %v2063_v45, %v810_v28  ;;  %v763_v6 = vadd.f32 1.4214138, %v762_v43  ;;  %2076 = vpow2.f32 %v801_v0  ;;  %v2069_v27 = vpop.eup %2068 }
  0x9b   : > { %v789_v45 = vadd.f32 1.4214138, %v788_v20  ;;  %2078 = vpow2.f32 %v827_v50  ;;  %v629_v32 = vmul.f32 %v628_v62, %v2741_v30  ;;  %v2859_v24 = vsub.f32 %v2831_v52, %v2065_v59  ;;  %v2869_v50 = vld [vmem:[%s2313_s23] sm:$0xff] }
  0x9c   : > { %v812_v61 = vmul.f32 1.0614054, %v2848_v35  ;;  %v706_v60 = vadd.f32 0.2548296, %v705_v44  ;;  %v764_v34 = vmul.f32 %v763_v6, %v2829_v29  ;;  %v712_v18 = vadd.f32 %v2065_v59, %v2831_v52  ;;  %3896 = vst [vmem:[#allocation15_spill] sm:$0xff] %v2869_v50 }
  0x9d   : > { %v655_v28 = vmul.f32 %v654_v41, %v2757_v22  ;;  %v790_v63 = vmul.f32 %v789_v45, %v2835_v47  ;;  %v835_v43 = vmul.f32 %v2069_v27, %v2815_v51  ;;  %v681_v0 = vmul.f32 %v680_v9, %v2770_v1 }
  0x9e   : > { %v813_v31 = vadd.f32 -1.4531521, %v812_v61  ;;  %v765_v3 = vadd.f32 -0.28449672, %v764_v34  ;;  %v707_v56 = vmul.f32 %v706_v60, %v2784_v13  ;;  %v2872_v30 = vmul.f32 %v2869_v50, %v729_v57  ;;  %v2071_v22 = vpop.eup %2070  ;;  %v3897_v13 = vld [vmem:[#allocation11_spill] sm:$0xff] }
  0x9f   : > { %v2877_v34 = vsel %vm751_vm12, -1.0, %v3884_v49  ;;  %v791_v62 = vadd.f32 -0.28449672, %v790_v63  ;;  %v836_v6 = vsub.f32 2.0, %v835_v43  ;;  %v2882_v1 = vmul.f32 %v2803_v8, %v2859_v24 }
  0xa0   : > { %v814_v44 = vmul.f32 %v813_v31, %v2848_v35  ;;  %v766_v41 = vmul.f32 %v765_v3, %v2829_v29  ;;  %v2885_v20 = vmul.f32 %v712_v18, %v3897_v13  ;;  %v630_v57 = vmul.f32 %v2831_v52, %v629_v32 }
  0xa1   : > { %v656_v61 = vmul.f32 %v2065_v59, %v655_v28  ;;  %v792_v9 = vmul.f32 %v791_v62, %v2835_v47  ;;  %v682_v45 = vmul.f32 %v2067_v48, %v681_v0  ;;  %v2896_v8 = vsub.f32 %v2067_v48, %v2071_v22  ;;  %v3898_v59 = vld [vmem:[#allocation20_spill] sm:$0xff] }
  0xa2   : > { %v815_v51 = vadd.f32 1.4214138, %v814_v44  ;;  %v2898_v31 = vmul.f32 %v2069_v27, %v836_v6  ;;  %v2901_v18 = vstv %s2854_s17  ;;  %v708_v3 = vmul.f32 %v2071_v22, %v707_v56  ;;  %s3754_s17 = sld [smem:[#allocation2 + $0x184]] }
  0xa3   : > { %v767_v54 = vadd.f32 0.2548296, %v766_v41  ;;  %v793_v63 = vadd.f32 0.2548296, %v792_v9  ;;  %v714_v43 = vadd.f32 %v2071_v22, %v2067_v48  ;;  %v2904_v26 = vsel %vm803_vm14, -1.0, %v3884_v49 }
  0xa4   : > { %v816_v60 = vmul.f32 %v815_v51, %v2848_v35  ;;  %v838_v52 = vmul.f32 1.0614054, %v2898_v31  ;;  %v863_v32 = vadd.f32 %v2790_v37, %v3898_v59  ;;  %v2073_v28 = vpop.eup %2072  ;;  %v631_v0 = vsub.f32 1.0, %v630_v57  ;;  %v3899_v51 = vld [vmem:[#allocation6_spill] sm:$0xff] }
  0xa5   : > { %v657_v62 = vsub.f32 1.0, %v656_v61  ;;  %v2913_v56 = vmul.f32 %v2901_v18, %v3899_v51  ;;  %v683_v48 = vsub.f32 1.0, %v682_v45  ;;  %v2918_v9 = vmul.f32 %v2901_v18, %v2322_v4 }
  0xa6   : > { %v817_v44 = vadd.f32 -0.28449672, %v816_v60  ;;  %v2075_v41 = vpop.eup %2074  ;;  %v839_v6 = vadd.f32 -1.4531521, %v838_v52  ;;  %v709_v2 = vsub.f32 1.0, %v708_v3  ;;  %v731_v57 = vmul.f32 %v2820_v14, %v2896_v8  ;;  %v3900_v52 = vld [vmem:[#allocation21_spill] sm:$0xff] }
  0xa7   : > { %v2077_v60 = vpop.eup %2076  ;;  %v768_v61 = vmul.f32 %v767_v54, %v2829_v29  ;;  %v794_v27 = vmul.f32 %v793_v63, %v2835_v47  ;;  %v732_v13 = vmul.f32 %v714_v43, %v2362_v19  ;;  %v864_v51 = vadd.f32 %v2790_v37, %v3900_v52 }
  0xa8   : > { %v818_v22 = vmul.f32 %v817_v44, %v2848_v35  ;;  %v2079_v59 = vpop.eup %2078  ;;  %v840_v44 = vmul.f32 %v839_v6, %v2898_v31  ;;  %v632_v4 = vmul.f32 %v631_v0, %v2761_v21  ;;  %v658_v3 = vmul.f32 %v657_v62, %v2778_v38 }
  0xa9   : > { %v2930_v50 = vsub.f32 %v2077_v60, %v2079_v59  ;;  %v906_v14 = vand.u32 2147483647, %v2913_v56  ;;  %v684_v29 = vmul.f32 %v683_v48, %v2795_v33  ;;  %v853_v54 = vadd.f32 %v2079_v59, %v2077_v60 }
  0xaa   : > { %v819_v45 = vadd.f32 0.2548296, %v818_v22  ;;  %v841_v47 = vadd.f32 1.4214138, %v840_v44  ;;  %v932_v63 = vand.u32 2147483647, %v2918_v9  ;;  %v710_v43 = vmul.f32 %v709_v2, %v2799_v58 }
  0xab   : > { %v769_v22 = vmul.f32 %v2073_v28, %v768_v61  ;;  %v795_v6 = vmul.f32 %v2075_v41, %v794_v27  ;;  %v907_v37 = vmul.f32 0.3275911, %v906_v14  ;;  %v2941_v62 = vmul.f32 %v2901_v18, %v2325_v5 }
  0xac   : > { %v820_v21 = vmul.f32 %v819_v45, %v2848_v35  ;;  %v842_v38 = vmul.f32 %v841_v47, %v2898_v31  ;;  %v933_v0 = vmul.f32 0.3275911, %v932_v63  ;;  %v715_v33 = vsub.f32 %v632_v4, %v658_v3 }
  0xad   : > { %v733_v48 = vadd.f32 %v732_v13, %v731_v57  ;;  %v2943_v44 = vsub.f32 %v2073_v28, %v2075_v41  ;;  %v2945_v52 = vadd.f32 1.0, %v907_v37  ;;  %v716_v58 = vadd.f32 %v658_v3, %v632_v4 }
  0xae   : > { %v843_v2 = vadd.f32 -0.28449672, %v842_v38  ;;  %v867_v27 = vmul.f32 %v864_v51, %v2930_v50  ;;  %v2948_v61 = vadd.f32 1.0, %v933_v0  ;;  %v717_v35 = vsub.f32 %v684_v29, %v710_v43 }
  0xaf   : > { %v868_v45 = vmul.f32 %v853_v54, %v2406_v39  ;;  %2080 = vrcp.f32 %v2945_v52  ;;  %v958_v14 = vand.u32 2147483647, %v2941_v62  ;;  %v770_v47 = vsub.f32 1.0, %v769_v22 }
  0xb0   : > { %v796_v63 = vsub.f32 1.0, %v795_v6  ;;  %v821_v13 = vmul.f32 %v2077_v60, %v820_v21  ;;  %v844_v57 = vmul.f32 %v843_v2, %v2898_v31  ;;  %v718_v37 = vadd.f32 %v710_v43, %v684_v29 }
  0xb1   : > { %2082 = vrcp.f32 %v2948_v61  ;;  %v959_v4 = vmul.f32 0.3275911, %v958_v14  ;;  %v2957_v51 = vmul.f32 %v2901_v18, %v2339_v10  ;;  %v735_v3 = vsub.f32 %v733_v48, %v2882_v1  ;;  %v3901_v48 = vld [vmem:[#allocation16_spill] sm:$0xff] }
  0xb2   : > { %v845_v54 = vadd.f32 0.2548296, %v844_v57  ;;  %v851_v38 = vadd.f32 %v2075_v41, %v2073_v28  ;;  %v870_v0 = vmul.f32 %v863_v32, %v2943_v44  ;;  %v741_v22 = vmul.f32 %v715_v33, %v2352_v15 }
  0xb3   : > { %v869_v60 = vadd.f32 %v868_v45, %v867_v27  ;;  %v2962_v6 = vadd.f32 1.0, %v959_v4  ;;  %v984_v29 = vand.u32 2147483647, %v2957_v51  ;;  %v771_v43 = vmul.f32 %v770_v47, %v2877_v34 }
  0xb4   : > { %v797_v21 = vmul.f32 %v796_v63, %v2890_v25  ;;  %v822_v2 = vsub.f32 1.0, %v821_v13  ;;  %v846_v14 = vmul.f32 %v845_v54, %v2898_v31  ;;  %v719_v1 = vsub.f32 %v716_v58, %v718_v37 }
  0xb5   : > { %v740_v28 = vmul.f32 %v717_v35, %v2354_v16  ;;  %2084 = vrcp.f32 %v2962_v6  ;;  %v985_v32 = vmul.f32 0.3275911, %v984_v29  ;;  %v830_v41 = vsel %vm829_vm15, -1.0, %v3884_v49 }
  0xb6   : > { %v847_v33 = vmul.f32 %v2079_v59, %v846_v14  ;;  %v3902_v27 = vstv %s2786_s15  ;;  %v2978_v34 = vmul.f32 %v2901_v18, %v3889_v55  ;;  %v871_v25 = vsub.f32 %v869_v60, %v870_v0  ;;  %s3694_s15 = sld [smem:[#allocation2 + $0x204]] }
  0xb7   : > { %v865_v45 = vadd.f32 %v3902_v27, %v3901_v48  ;;  %v872_v31 = vmul.f32 %v851_v38, %v2401_v36  ;;  %v2981_v58 = vadd.f32 1.0, %v985_v32  ;;  %v2985_v35 = vmul.f32 %v2901_v18, %v3890_v53 }
  0xb8   : > { %v823_v17 = vmul.f32 %v822_v2, %v2904_v26  ;;  %v848_v59 = vsub.f32 1.0, %v847_v33  ;;  %v854_v47 = vsub.f32 %v771_v43, %v797_v21  ;;  %v1045_v63 = vand.u32 2147483647, %v2978_v34 }
  0xb9   : > { %v737_v13 = vsub.f32 %v735_v3, %v2885_v20  ;;  %v742_v57 = vsub.f32 %v740_v28, %v741_v22  ;;  %v743_v37 = vmul.f32 %v2872_v30, %v719_v1  ;;  %v859_v4 = vsub.f32 %v2943_v44, %v2930_v50  ;;  %v3002_v20 = vld [vmem:[%s2330_s28] sm:$0xff] }
  0xba   : > { %v849_v54 = vmul.f32 %v848_v59, %v830_v41  ;;  %v855_v38 = vadd.f32 %v797_v21, %v771_v43  ;;  %2086 = vrcp.f32 %v2981_v58  ;;  %v1046_v0 = vmul.f32 0.3275911, %v1045_v63 }
  0xbb   : > { %v3903_v26 = vsub.f32 %v2859_v24, %v2896_v8  ;;  %v3904_v60 = vstv %s2747_s13  ;;  %v866_v30 = vmul.f32 %v3002_v20, %v865_v45  ;;  %v873_v3 = vsub.f32 %v871_v25, %v872_v31  ;;  %s3382_s13 = sld [smem:[#allocation2 + $0x303]] }
  0xbc   : > { %v1071_v50 = vand.u32 2147483647, %v2985_v35  ;;  %v2081_v44 = vpop.eup %2080  ;;  %v723_v22 = vmul.f32 %v719_v1, %v2373_v23  ;;  %v856_v43 = vsub.f32 %v823_v17, %v849_v54  ;;  %v857_v21 = vadd.f32 %v849_v54, %v823_v17 }
  0xbd   : > { %v722_v29 = vmul.f32 %v3904_v60, %v3903_v26  ;;  %v876_v2 = vmul.f32 %v854_v47, %v2352_v15  ;;  %v3905_v24 = vstv %s2805_s16  ;;  %v1047_v14 = vadd.f32 1.0, %v1046_v0  ;;  %s3700_s16 = sld [smem:[#allocation2 + $0x284]] }
  0xbe   : > { %v739_v8 = vmul.f32 %v3905_v24, %v737_v13  ;;  %v1072_v28 = vmul.f32 0.3275911, %v1071_v50  ;;  %v2083_v32 = vpop.eup %2082  ;;  %v744_v41 = vadd.f32 %v743_v37, %v742_v57  ;;  %v858_v33 = vsub.f32 %v855_v38, %v857_v21 }
  0xbf   : > { %v3906_v27 = vmov %v3904_v60  ;;  %v875_v25 = vmul.f32 %v856_v43, %v2354_v16  ;;  %v3907_v31 = vmov %v3905_v24  ;;  %v910_v17 = vmul.f32 %v2081_v44, %v2945_v52 }
  0xc0   : > { %v860_v45 = vmul.f32 %v859_v4, %v3906_v27  ;;  %v874_v1 = vmul.f32 %v873_v3, %v3907_v31  ;;  %v3018_v59 = vadd.f32 1.0, %v1072_v28  ;;  %v724_v47 = vsub.f32 %v722_v29, %v723_v22 }
  0xc1   : > { %v861_v63 = vmul.f32 %v858_v33, %v2409_v40  ;;  %v877_v13 = vsub.f32 %v875_v25, %v876_v2  ;;  %v878_v54 = vmul.f32 %v866_v30, %v858_v33  ;;  %v936_v57 = vmul.f32 %v2083_v32, %v2948_v61 }
  0xc2   : > { %2088 = vrcp.f32 %v1047_v14  ;;  %v2085_v37 = vpop.eup %2084  ;;  %v745_v38 = vadd.f32 %v744_v41, %v739_v8  ;;  %v882_v26 = vstv %s2994_s20  ;;  %v911_v60 = vsub.f32 2.0, %v910_v17  ;;  %s3767_s20 = sld [smem:[#allocation2 + $0x304]] }
  0xc3   : > { %v862_v4 = vsub.f32 %v860_v45, %v861_v63  ;;  %v879_v0 = vadd.f32 %v878_v54, %v877_v13  ;;  %v962_v3 = vmul.f32 %v2085_v37, %v2962_v6  ;;  %2090 = vrcp.f32 %v3018_v59 }
  0xc4   : > { %v3027_v50 = vmul.f32 %v2901_v18, %v3891_v12  ;;  %v885_v30 = vstv %s3008_s24  ;;  %v937_v22 = vsub.f32 2.0, %v936_v57  ;;  %v900_v24 = vmul.f32 %v2913_v56, %v2913_v56  ;;  %s1968_s24 = sld [smem:[#allocation2 + $0x4]] }
  0xc5   : > { %v880_v52 = vadd.f32 %v879_v0, %v874_v1  ;;  %v881_v29 = vsub.f32 %v724_v47, %v862_v4  ;;  %v963_v61 = vsub.f32 2.0, %v962_v3  ;;  %v3032_v8 = vmul.f32 %v2081_v44, %v911_v60 }
  0xc6   : > { %v926_v28 = vmul.f32 %v2918_v9, %v2918_v9  ;;  %v1097_v33 = vand.u32 2147483647, %v3027_v50  ;;  %v3038_v27 = vmul.f32 %v2083_v32, %v937_v22  ;;  %v952_v31 = vmul.f32 %v2941_v62, %v2941_v62 }
  0xc7   : > { %v883_v43 = vmul.f32 %v882_v26, %v881_v29  ;;  %v884_v21 = vsub.f32 %v745_v38, %v880_v52  ;;  %v2087_v2 = vpop.eup %2086  ;;  %v3040_v45 = vmul.f32 %v2085_v37, %v963_v61  ;;  %v901_v17 = vsub.f32 0.0, %v900_v24 }
  0xc8   : > { %v988_v41 = vmul.f32 %v2087_v2, %v2981_v58  ;;  %v913_v44 = vmul.f32 1.0614054, %v3032_v8  ;;  %v978_v47 = vmul.f32 %v2957_v51, %v2957_v51  ;;  %v927_v63 = vsub.f32 0.0, %v926_v28 }
  0xc9   : > { %v886_v6 = vmul.f32 %v885_v30, %v884_v21  ;;  %v1098_v13 = vmul.f32 0.3275911, %v1097_v33  ;;  %v939_v32 = vmul.f32 1.0614054, %v3038_v27  ;;  %v965_v54 = vmul.f32 1.0614054, %v3040_v45 }
  0xca   : > { %v989_v1 = vsub.f32 2.0, %v988_v41  ;;  %v953_v37 = vsub.f32 0.0, %v952_v31  ;;  %v902_v0 = vmul.f32 1.442695, %v901_v17  ;;  %v914_v26 = vadd.f32 -1.4531521, %v913_v44 }
  0xcb   : > { %v887_v25 = vadd.f32 %v886_v6, %v883_v43  ;;  %v3055_v4 = vadd.f32 1.0, %v1098_v13  ;;  %v979_v60 = vsub.f32 0.0, %v978_v47  ;;  %vm904_vm0 = vcmp.lt.f32.partialorder %v2913_v56, 0.0 }
  0xcc   : > { %v3048_v58 = vmul.f32 %v2087_v2, %v989_v1  ;;  %v928_v29 = vmul.f32 1.442695, %v927_v63  ;;  %vm930_vm1 = vcmp.lt.f32.partialorder %v2918_v9, 0.0  ;;  %v940_v30 = vadd.f32 -1.4531521, %v939_v32 }
  0xcd   : > { %1951 = vst [vmem:[%s2732_s18 + $0x8] sm:$0xff] %v887_v25  ;;  %2092 = vrcp.f32 %v3055_v4  ;;  %v966_v22 = vadd.f32 -1.4531521, %v965_v54  ;;  %v954_v43 = vmul.f32 1.442695, %v953_v37  ;;  %v915_v24 = vmul.f32 %v914_v26, %v3032_v8 }
  0xce   : > { %v991_v38 = vmul.f32 1.0614054, %v3048_v58  ;;  %2094 = vpow2.f32 %v902_v0  ;;  %v980_v6 = vmul.f32 1.442695, %v979_v60  ;;  %v3075_v9 = vsel %vm904_vm0, -1.0, %v3884_v49 }
  0xcf   : > { %v2089_v57 = vpop.eup %2088  ;;  %v3078_v41 = vsel %vm930_vm1, -1.0, %v3884_v49  ;;  %vm956_vm2 = vcmp.lt.f32.partialorder %v2941_v62, 0.0  ;;  %2096 = vpow2.f32 %v928_v29  ;;  %v967_v33 = vmul.f32 %v966_v22, %v3040_v45 }
  0xd0   : > { %v1049_v3 = vmul.f32 %v2089_v57, %v1047_v14  ;;  %v2091_v52 = vpop.eup %2090  ;;  %v992_v21 = vadd.f32 -1.4531521, %v991_v38  ;;  %v3067_v14 = vmul.f32 %v2901_v18, %v3892_v11  ;;  %v941_v18 = vmul.f32 %v940_v30, %v3038_v27  ;;  %v3909_v11 = vld [vmem:[#allocation6_spill] sm:$0xff] }
  0xd1   : > { %v1075_v2 = vmul.f32 %v2091_v52, %v3018_v59  ;;  %2098 = vpow2.f32 %v954_v43  ;;  %v916_v62 = vadd.f32 1.4214138, %v915_v24  ;;  %v3091_v17 = vsel %vm956_vm2, -1.0, %v3884_v49 }
  0xd2   : > { %v1050_v61 = vsub.f32 2.0, %v1049_v3  ;;  %v993_v56 = vmul.f32 %v992_v21, %v3048_v58  ;;  %v1123_v1 = vand.u32 2147483647, %v3067_v14  ;;  %2100 = vpow2.f32 %v980_v6 }
  0xd3   : > { %v1076_v59 = vsub.f32 2.0, %v1075_v2  ;;  %vm982_vm3 = vcmp.lt.f32.partialorder %v2957_v51, 0.0  ;;  %v942_v32 = vadd.f32 1.4214138, %v941_v18  ;;  %v968_v54 = vadd.f32 1.4214138, %v967_v33 }
  0xd4   : > { %v3070_v28 = vmul.f32 %v2089_v57, %v1050_v61  ;;  %v1124_v13 = vmul.f32 0.3275911, %v1123_v1  ;;  %v3097_v57 = vstv %s3052_s27  ;;  %v1039_v37 = vmul.f32 %v2978_v34, %v2978_v34  ;;  %s1969_s27 = sld [smem:[#allocation2 + $0x84]] }
  0xd5   : > { %v3085_v31 = vmul.f32 %v2091_v52, %v1076_v59  ;;  %v994_v38 = vadd.f32 1.4214138, %v993_v56  ;;  %v3853_v0 = vstv %s3062_s30  ;;  %v917_v51 = vmul.f32 %v916_v62, %v3032_v8 }
  0xd6   : > { %v1052_v25 = vmul.f32 1.0614054, %v3070_v28  ;;  %v3102_v60 = vadd.f32 1.0, %v1124_v13  ;;  %v3106_v3 = vsel %vm982_vm3, -1.0, %v3884_v49  ;;  %v3110_v52 = vadd.f32 %v3097_v57, %v3893_v7 }
  0xd7   : > { %v1078_v63 = vmul.f32 1.0614054, %v3085_v31  ;;  %v1065_v29 = vmul.f32 %v2985_v35, %v2985_v35  ;;  %v1091_v61 = vmul.f32 %v3027_v50, %v3027_v50  ;;  %v943_v21 = vmul.f32 %v942_v32, %v3038_v27 }
  0xd8   : > { %v1053_v47 = vadd.f32 -1.4531521, %v1052_v25  ;;  %2102 = vrcp.f32 %v3102_v60  ;;  %v1021_v2 = vadd.f32 %v3853_v0, %v3895_v46  ;;  %v1040_v24 = vsub.f32 0.0, %v1039_v37 }
  0xd9   : > { %v1079_v26 = vadd.f32 -1.4531521, %v1078_v63  ;;  %v1117_v6 = vmul.f32 %v3067_v14, %v3067_v14  ;;  %v969_v59 = vmul.f32 %v968_v54, %v3040_v45  ;;  %v995_v18 = vmul.f32 %v994_v38, %v3048_v58  ;;  %v3908_v38 = vld [vmem:[#allocation15_spill] sm:$0xff] }
  0xda   : > { %v1054_v30 = vmul.f32 %v1053_v47, %v3070_v28  ;;  %v2093_v43 = vpop.eup %2092  ;;  %v1019_v33 = vadd.f32 %v3097_v57, %v3894_v42  ;;  %v918_v56 = vadd.f32 -0.28449672, %v917_v51  ;;  %vm1043_vm4 = vcmp.lt.f32.partialorder %v2978_v34, 0.0 }
  0xdb   : > { %v1080_v22 = vmul.f32 %v1079_v26, %v3085_v31  ;;  %v1101_v25 = vmul.f32 %v2093_v43, %v3055_v4  ;;  %v1066_v62 = vsub.f32 0.0, %v1065_v29  ;;  %v3134_v47 = vpop.eup %2094  ;;  %v1092_v32 = vsub.f32 0.0, %v1091_v61 }
  0xdc   : > { %v1055_v63 = vadd.f32 1.4214138, %v1054_v30  ;;  %v944_v37 = vadd.f32 -0.28449672, %v943_v21  ;;  %v3137_v26 = vmul.f32 %v3908_v38, %v1021_v2  ;;  %v1041_v0 = vmul.f32 1.442695, %v1040_v24  ;;  %v3139_v4 = vpop.eup %2096 }
  0xdd   : > { %v1081_v13 = vadd.f32 1.4214138, %v1080_v22  ;;  %v1102_v54 = vsub.f32 2.0, %v1101_v25  ;;  %v1118_v44 = vsub.f32 0.0, %v1117_v6  ;;  %v970_v51 = vadd.f32 -0.28449672, %v969_v59 }
  0xde   : > { %v996_v1 = vadd.f32 -0.28449672, %v995_v18  ;;  %v3142_v34 = vsel %vm1043_vm4, -1.0, %v3884_v49  ;;  %v3146_v42 = vpop.eup %2098  ;;  %v919_v30 = vmul.f32 %v918_v56, %v3032_v8  ;;  %v3151_v22 = vsub.f32 %v3134_v47, %v3139_v4 }
  0xdf   : > { %v3144_v29 = vmul.f32 %v2093_v43, %v1102_v54  ;;  %v1067_v61 = vmul.f32 1.442695, %v1066_v62  ;;  %vm1069_vm5 = vcmp.lt.f32.partialorder %v2985_v35, 0.0  ;;  %v2101_v21 = vpop.eup %2100  ;;  %v1056_v2 = vmul.f32 %v1055_v63, %v3070_v28 }
  0xe0   : > { %v1082_v24 = vmul.f32 %v1081_v13, %v3085_v31  ;;  %v1093_v6 = vmul.f32 1.442695, %v1092_v32  ;;  %v945_v59 = vmul.f32 %v944_v37, %v3038_v27  ;;  %v3159_v18 = vsub.f32 %v3146_v42, %v2101_v21 }
  0xe1   : > { %v1104_v43 = vmul.f32 1.0614054, %v3144_v29  ;;  %2104 = vpow2.f32 %v1041_v0  ;;  %v1119_v25 = vmul.f32 1.442695, %v1118_v44  ;;  %v971_v56 = vmul.f32 %v970_v51, %v3040_v45 }
  0xe2   : > { %v997_v62 = vmul.f32 %v996_v1, %v3048_v58  ;;  %v1006_v54 = vadd.f32 %v2101_v21, %v3146_v42  ;;  %v920_v63 = vadd.f32 0.2548296, %v919_v30  ;;  %v1004_v13 = vadd.f32 %v3139_v4, %v3134_v47 }
  0xe3   : > { %v1105_v38 = vadd.f32 -1.4531521, %v1104_v43  ;;  %2106 = vpow2.f32 %v1067_v61  ;;  %v3167_v32 = vstv %s3132_s7  ;;  %v1057_v37 = vadd.f32 -0.28449672, %v1056_v2 }
  0xe4   : > { %v1083_v7 = vadd.f32 -0.28449672, %v1082_v24  ;;  %2108 = vpow2.f32 %v1093_v6  ;;  %v946_v46 = vadd.f32 0.2548296, %v945_v59  ;;  %v1023_v51 = vmul.f32 %v1019_v33, %v3159_v18  ;;  %v3910_v33 = vld [vmem:[#allocation7_spill] sm:$0xff] }
  0xe5   : > { %v1106_v0 = vmul.f32 %v1105_v38, %v3144_v29  ;;  %v2103_v44 = vpop.eup %2102  ;;  %v3174_v1 = vsel %vm1069_vm5, -1.0, %v3884_v49  ;;  %2110 = vpow2.f32 %v1119_v25  ;;  %v972_v30 = vadd.f32 0.2548296, %v971_v56  ;;  %v3911_v25 = vld [vmem:[#allocation11_spill] sm:$0xff] }
  0xe6   : > { %v998_v43 = vadd.f32 0.2548296, %v997_v62  ;;  %v1024_v61 = vmul.f32 %v1006_v54, %v2362_v19  ;;  %v3179_v2 = vmul.f32 %v3167_v32, %v3909_v11  ;;  %v921_v24 = vmul.f32 %v920_v63, %v3032_v8 }
  0xe7   : > { %v1107_v6 = vadd.f32 1.4214138, %v1106_v0  ;;  %v1127_v59 = vmul.f32 %v2103_v44, %v3102_v60  ;;  %v3185_v38 = vmul.f32 %v3167_v32, %v3910_v33  ;;  %v3189_v35 = vmul.f32 %v3110_v52, %v3151_v22 }
  0xe8   : > { %v3192_v56 = vmul.f32 %v1004_v13, %v3911_v25  ;;  %v1058_v62 = vmul.f32 %v1057_v37, %v3070_v28  ;;  %v1084_v54 = vmul.f32 %v1083_v7, %v3085_v31  ;;  %v947_v8 = vmul.f32 %v946_v46, %v3038_v27  ;;  %v3912_v25 = vld [vmem:[#allocation20_spill] sm:$0xff] }
  0xe9   : > { %v1108_v63 = vmul.f32 %v1107_v6, %v3144_v29  ;;  %v1128_v0 = vsub.f32 2.0, %v1127_v59  ;;  %v973_v19 = vmul.f32 %v972_v30, %v3040_v45  ;;  %v999_v52 = vmul.f32 %v998_v43, %v3048_v58 }
  0xea   : > { %v3202_v33 = vadd.f32 %v1024_v61, %v1023_v51  ;;  %v1198_v13 = vand.u32 2147483647, %v3179_v2  ;;  %v922_v37 = vmul.f32 %v3134_v47, %v921_v24  ;;  %v1224_v46 = vand.u32 2147483647, %v3185_v38 }
  0xeb   : > { %v1109_v11 = vadd.f32 -0.28449672, %v1108_v63  ;;  %v3206_v7 = vmul.f32 %v2103_v44, %v1128_v0  ;;  %v1059_v27 = vadd.f32 0.2548296, %v1058_v62  ;;  %v1085_v60 = vadd.f32 0.2548296, %v1084_v54 }
  0xec   : > { %v3211_v6 = vadd.f32 %v3097_v57, %v3912_v25  ;;  %v1199_v45 = vmul.f32 0.3275911, %v1198_v13  ;;  %v948_v58 = vmul.f32 %v3139_v4, %v947_v8  ;;  %v1225_v43 = vmul.f32 0.3275911, %v1224_v46  ;;  %v3913_v46 = vld [vmem:[#allocation21_spill] sm:$0xff] }
  0xed   : > { %v1110_v51 = vmul.f32 %v1109_v11, %v3144_v29  ;;  %v1130_v30 = vmul.f32 1.0614054, %v3206_v7  ;;  %v974_v44 = vmul.f32 %v3146_v42, %v973_v19  ;;  %v1000_v61 = vmul.f32 %v2101_v21, %v999_v52 }
  0xee   : > { %v2105_v47 = vpop.eup %2104  ;;  %v3217_v24 = vadd.f32 1.0, %v1199_v45  ;;  %v3221_v59 = vmul.f32 %v3167_v32, %v2325_v5  ;;  %v923_v62 = vsub.f32 1.0, %v922_v37  ;;  %v3227_v11 = vmul.f32 %v3167_v32, %v2339_v10 }
  0xef   : > { %v1131_v4 = vadd.f32 -1.4531521, %v1130_v30  ;;  %v1060_v63 = vmul.f32 %v1059_v27, %v3070_v28  ;;  %v1086_v19 = vmul.f32 %v1085_v60, %v3085_v31  ;;  %v3231_v42 = vadd.f32 1.0, %v1225_v43 }
  0xf0   : > { %v2107_v8 = vpop.eup %2106  ;;  %v1250_v21 = vand.u32 2147483647, %v3221_v59  ;;  %v949_v52 = vsub.f32 1.0, %v948_v58  ;;  %v1111_v13 = vadd.f32 0.2548296, %v1110_v51  ;;  %v1156_v45 = vadd.f32 %v3097_v57, %v3913_v46 }
  0xf1   : > { %v2109_v0 = vpop.eup %2108  ;;  %v1132_v37 = vmul.f32 %v1131_v4, %v3206_v7  ;;  %v975_v54 = vsub.f32 1.0, %v974_v44  ;;  %v1001_v25 = vsub.f32 1.0, %v1000_v61  ;;  %2112 = vrcp.f32 %v3217_v24 }
  0xf2   : > { %v2111_v30 = vpop.eup %2110  ;;  %v1251_v28 = vmul.f32 0.3275911, %v1250_v21  ;;  %vm1095_vm6 = vcmp.lt.f32.partialorder %v3027_v50, 0.0  ;;  %v1276_v58 = vand.u32 2147483647, %v3227_v11  ;;  %v1061_v51 = vmul.f32 %v2105_v47, %v1060_v63 }
  0xf3   : > { %v1133_v31 = vadd.f32 1.4214138, %v1132_v37  ;;  %v3239_v60 = vsub.f32 %v2109_v0, %v2111_v30  ;;  %v1145_v27 = vadd.f32 %v2111_v30, %v2109_v0  ;;  %v1087_v43 = vmul.f32 %v2107_v8, %v1086_v19 }
  0xf4   : > { %2114 = vrcp.f32 %v3231_v42  ;;  %v3243_v4 = vadd.f32 1.0, %v1251_v28  ;;  %v1112_v57 = vmul.f32 %v1111_v13, %v3144_v29  ;;  %vm1121_vm7 = vcmp.lt.f32.partialorder %v3067_v14, 0.0 }
  0xf5   : > { %v1134_v44 = vmul.f32 %v1133_v31, %v3206_v7  ;;  %v1277_v61 = vmul.f32 0.3275911, %v1276_v58  ;;  %v924_v21 = vmul.f32 %v923_v62, %v3075_v9  ;;  %v950_v37 = vmul.f32 %v949_v52, %v3078_v41 }
  0xf6   : > { %v976_v46 = vmul.f32 %v975_v54, %v3091_v17  ;;  %v3251_v10 = vsub.f32 %v2105_v47, %v2107_v8  ;;  %v1002_v63 = vmul.f32 %v1001_v25, %v3106_v3  ;;  %v1159_v28 = vmul.f32 %v1156_v45, %v3239_v60 }
  0xf7   : > { %v1135_v19 = vadd.f32 -0.28449672, %v1134_v44  ;;  %v3255_v5 = vadd.f32 1.0, %v1277_v61  ;;  %v1062_v29 = vsub.f32 1.0, %v1061_v51  ;;  %v1088_v13 = vsub.f32 1.0, %v1087_v43 }
  0xf8   : > { %v1160_v31 = vmul.f32 %v1145_v27, %v2406_v39  ;;  %2116 = vrcp.f32 %v3243_v4  ;;  %v1113_v9 = vmul.f32 %v2109_v0, %v1112_v57  ;;  %v3263_v17 = vmul.f32 %v3167_v32, %v3889_v55 }
  0xf9   : > { %v1136_v41 = vmul.f32 %v1135_v19, %v3206_v7  ;;  %2118 = vrcp.f32 %v3255_v5  ;;  %v1007_v3 = vsub.f32 %v924_v21, %v950_v37  ;;  %v1008_v25 = vadd.f32 %v950_v37, %v924_v21 }
  0xfa   : > { %v1143_v62 = vadd.f32 %v2107_v8, %v2105_v47  ;;  %v3267_v54 = vmul.f32 %v3167_v32, %v3890_v53  ;;  %v1009_v52 = vsub.f32 %v976_v46, %v1002_v63  ;;  %v1010_v45 = vadd.f32 %v1002_v63, %v976_v46 }
  0xfb   : > { %v1137_v27 = vadd.f32 0.2548296, %v1136_v41  ;;  %v1337_v0 = vand.u32 2147483647, %v3263_v17  ;;  %v1063_v58 = vmul.f32 %v1062_v29, %v3142_v34  ;;  %v1161_v51 = vadd.f32 %v1160_v31, %v1159_v28 }
  0xfc   : > { %v1162_v43 = vmul.f32 %v3211_v6, %v3251_v10  ;;  %v1363_v57 = vand.u32 2147483647, %v3267_v54  ;;  %v1089_v47 = vmul.f32 %v1088_v13, %v3174_v1  ;;  %v1114_v8 = vsub.f32 1.0, %v1113_v9 }
  0xfd   : > { %v1138_v44 = vmul.f32 %v1137_v27, %v3206_v7  ;;  %v1338_v61 = vmul.f32 0.3275911, %v1337_v0  ;;  %v3914_v46 = vsub.f32 %v3151_v22, %v3159_v18  ;;  %v3915_v21 = vstv %s3057_s29  ;;  %s1976_s29 = sshll.u32 (%p2280_p4), %s2268_s21, 3 }
  0xfe   : > { %v3916_v34 = vsub.f32 %v3202_v33, %v3189_v35  ;;  %v1096_v63 = vsel %vm1095_vm6, -1.0, %v3884_v49  ;;  %v1364_v1 = vmul.f32 0.3275911, %v1363_v57  ;;  %v2113_v19 = vpop.eup %2112  ;;  %v1011_v28 = vsub.f32 %v1008_v25, %v1010_v45  ;;  %s1775_s7 = scalar_lea.vmem (%p2280_p4), %s3822_s5, %s1976_s29 }
  0xff   : > { %v3281_v37 = vmul.f32 %v3915_v21, %v3914_v46  ;;  %v1032_v7 = vmul.f32 %v1009_v52, %v2354_v16  ;;  %v1033_v29 = vmul.f32 %v1007_v3, %v2352_v15  ;;  %v1139_v22 = vmul.f32 %v2111_v30, %v1138_v44 }
 0x100   : > { %v1029_v6 = vsub.f32 %v3916_v34, %v3192_v56  ;;  %v1122_v18 = vsel %vm1121_vm7, -1.0, %v3884_v49  ;;  %v3917_v13 = vstv %s3062_s30  ;;  %v1164_v35 = vmul.f32 %v1143_v62, %v2401_v36 }
 0x101   : > { %v1157_v33 = vadd.f32 %v3917_v13, %v3901_v48  ;;  %v3299_v56 = vadd.f32 1.0, %v1338_v61  ;;  %v2115_v50 = vpop.eup %2114  ;;  %v1115_v31 = vmul.f32 %v1114_v8, %v1096_v63  ;;  %v1140_v9 = vsub.f32 1.0, %v1139_v22 }
 0x102   : > { %v1146_v41 = vsub.f32 %v1063_v58, %v1089_v47  ;;  %v1163_v25 = vsub.f32 %v1161_v51, %v1162_v43  ;;  %v1151_v3 = vsub.f32 %v3251_v10, %v3239_v60  ;;  %v1202_v30 = vmul.f32 %v2113_v19, %v3217_v24 }
 0x103   : > { %2120 = vrcp.f32 %v3299_v56  ;;  %v3305_v14 = vadd.f32 1.0, %v1364_v1  ;;  %v1034_v52 = vsub.f32 %v1032_v7, %v1033_v29  ;;  %v1035_v62 = vmul.f32 %v3137_v26, %v1011_v28 }
 0x104   : > { %v1141_v45 = vmul.f32 %v1140_v9, %v1122_v18  ;;  %v1147_v27 = vadd.f32 %v1089_v47, %v1063_v58  ;;  %v1015_v0 = vmul.f32 %v1011_v28, %v2373_v23  ;;  %v1158_v51 = vmul.f32 %v3002_v20, %v1157_v33 }
 0x105   : > { %v1228_v10 = vmul.f32 %v2115_v50, %v3231_v42  ;;  %2122 = vrcp.f32 %v3305_v14  ;;  %v2117_v24 = vpop.eup %2116  ;;  %v1165_v57 = vsub.f32 %v1163_v25, %v1164_v35  ;;  %v1168_v26 = vmul.f32 %v1146_v41, %v2352_v15 }
 0x106   : > { %v1148_v60 = vsub.f32 %v1115_v31, %v1141_v45  ;;  %v1149_v43 = vadd.f32 %v1141_v45, %v1115_v31  ;;  %v2119_v8 = vpop.eup %2118  ;;  %v3918_v58 = vstv %s3088_s6  ;;  %v1203_v44 = vsub.f32 2.0, %v1202_v30 }
 0x107   : > { %v1031_v47 = vmul.f32 %v3918_v58, %v1029_v6  ;;  %v1036_v61 = vadd.f32 %v1035_v62, %v1034_v52  ;;  %v3919_v20 = vmov %v3915_v21  ;;  %v1016_v34 = vsub.f32 %v3281_v37, %v1015_v0 }
 0x108   : > { %v1150_v46 = vsub.f32 %v1147_v27, %v1149_v43  ;;  %v1152_v21 = vmul.f32 %v1151_v3, %v3919_v20  ;;  %v1167_v42 = vmul.f32 %v1148_v60, %v2354_v16  ;;  %v1229_v63 = vsub.f32 2.0, %v1228_v10 }
 0x109   : > { %v1254_v1 = vmul.f32 %v2117_v24, %v3243_v4  ;;  %v1280_v28 = vmul.f32 %v2119_v8, %v3255_v5  ;;  %v3920_v29 = vmov %v3918_v58  ;;  %v1192_v13 = vmul.f32 %v3179_v2, %v3179_v2 }
 0x10a   : > { %v1153_v7 = vmul.f32 %v1150_v46, %v2409_v40  ;;  %v1166_v22 = vmul.f32 %v1165_v57, %v3920_v29  ;;  %v1169_v6 = vsub.f32 %v1167_v42, %v1168_v26  ;;  %v1170_v18 = vmul.f32 %v1158_v51, %v1150_v46 }
 0x10b   : > { %v3330_v33 = vmul.f32 %v2113_v19, %v1203_v44  ;;  %v3334_v37 = vmul.f32 %v3167_v32, %v3891_v12  ;;  %v1037_v35 = vadd.f32 %v1036_v61, %v1031_v47  ;;  %v1218_v5 = vmul.f32 %v3185_v38, %v3185_v38 }
 0x10c   : > { %v1154_v4 = vsub.f32 %v1152_v21, %v1153_v7  ;;  %v1171_v31 = vadd.f32 %v1170_v18, %v1169_v6  ;;  %v1174_v9 = vstv %s3308_s8  ;;  %v3339_v41 = vmul.f32 %v2115_v50, %v1229_v63 }
 0x10d   : > { %v1255_v25 = vsub.f32 2.0, %v1254_v1  ;;  %v1281_v3 = vsub.f32 2.0, %v1280_v28  ;;  %v1177_v62 = vstv %s3315_s9  ;;  %v1193_v19 = vsub.f32 0.0, %v1192_v13 }
 0x10e   : > { %v1172_v30 = vadd.f32 %v1171_v31, %v1166_v22  ;;  %v1173_v52 = vsub.f32 %v1016_v34, %v1154_v4  ;;  %v1205_v45 = vmul.f32 1.0614054, %v3330_v33  ;;  %v1389_v27 = vand.u32 2147483647, %v3334_v37 }
 0x10f   : > { %v1219_v60 = vsub.f32 0.0, %v1218_v5  ;;  %v1231_v43 = vmul.f32 1.0614054, %v3339_v41  ;;  %v3345_v57 = vmul.f32 %v2117_v24, %v1255_v25  ;;  %v3347_v50 = vmul.f32 %v2119_v8, %v1281_v3 }
 0x110   : > { %v2121_v0 = vpop.eup %2120  ;;  %v1175_v51 = vmul.f32 %v1174_v9, %v1173_v52  ;;  %v1176_v10 = vsub.f32 %v1037_v35, %v1172_v30  ;;  %v1244_v44 = vmul.f32 %v3221_v59, %v3221_v59  ;;  %v1390_v61 = vmul.f32 0.3275911, %v1389_v27  ;;  %v3921_v9 = vld [vmem:[#allocation19_spill] sm:$0xff] }
 0x111   : > { %v1341_v26 = vmul.f32 %v2121_v0, %v3299_v56  ;;  %v1194_v46 = vmul.f32 1.442695, %v1193_v19  ;;  %v1206_v20 = vadd.f32 -1.4531521, %v1205_v45  ;;  %v1220_v34 = vmul.f32 1.442695, %v1219_v60 }
 0x112   : > { %v2123_v58 = vpop.eup %2122  ;;  %v1178_v47 = vmul.f32 %v1177_v62, %v1176_v10  ;;  %v1270_v24 = vmul.f32 %v3227_v11, %v3227_v11  ;;  %v1232_v56 = vadd.f32 -1.4531521, %v1231_v43  ;;  %v1257_v63 = vmul.f32 1.0614054, %v3345_v57  ;;  %v3922_v43 = vld [vmem:[#allocation9_spill] sm:$0xff] }
 0x113   : > { %v1342_v21 = vsub.f32 2.0, %v1341_v26  ;;  %v1367_v8 = vmul.f32 %v2123_v58, %v3305_v14  ;;  %v1283_v1 = vmul.f32 1.0614054, %v3347_v50  ;;  %v1245_v28 = vsub.f32 0.0, %v1244_v44 }
 0x114   : > { %v1179_v42 = vadd.f32 %v1178_v47, %v1175_v51  ;;  %v3364_v22 = vadd.f32 1.0, %v1390_v61  ;;  %2124 = vpow2.f32 %v1194_v46  ;;  %vm1196_vm8 = vcmp.lt.f32.partialorder %v3179_v2, 0.0  ;;  %v3923_v47 = vld [vmem:[#allocation13_spill] sm:$0xff] }
 0x115   : > { %v3362_v7 = vmul.f32 %v2121_v0, %v1342_v21  ;;  %v1368_v29 = vsub.f32 2.0, %v1367_v8  ;;  %v1207_v14 = vmul.f32 %v1206_v20, %v3330_v33  ;;  %vm1222_vm9 = vcmp.lt.f32.partialorder %v3185_v38, 0.0 }
 0x116   : > { %1959 = vst [vmem:[%s2732_s18 + $0x10] sm:$0xff] %v1179_v42  ;;  %vm1248_vm10 = vcmp.lt.f32.partialorder %v3221_v59, 0.0  ;;  %v1271_v6 = vsub.f32 0.0, %v1270_v24  ;;  %2126 = vrcp.f32 %v3364_v22  ;;  %v1233_v13 = vmul.f32 %v1232_v56, %v3339_v41 }
 0x117   : > { %v3372_v18 = vmul.f32 %v2123_v58, %v1368_v29  ;;  %2128 = vpow2.f32 %v1220_v34  ;;  %v1258_v35 = vadd.f32 -1.4531521, %v1257_v63  ;;  %v1284_v4 = vadd.f32 -1.4531521, %v1283_v1  ;;  %v3924_v34 = vld [vmem:[#allocation14_spill] sm:$0xff] }
 0x118   : > { %v1246_v31 = vmul.f32 1.442695, %v1245_v28  ;;  %vm1274_vm11 = vcmp.lt.f32.partialorder %v3227_v11, 0.0  ;;  %v1344_v5 = vmul.f32 1.0614054, %v3362_v7  ;;  %v3380_v25 = vmul.f32 %v3167_v32, %v3921_v9  ;;  %v3433_v28 = vld [vmem:[%s2313_s23] sm:$0xff] }
 0x119   : > { %v3387_v3 = vsel %vm1196_vm8, -1.0, %v3884_v49  ;;  %v1208_v30 = vadd.f32 1.4214138, %v1207_v14  ;;  %v3392_v11 = vsel %vm1222_vm9, -1.0, %v3884_v49  ;;  %v3397_v32 = vsel %vm1248_vm10, -1.0, %v3884_v49  ;;  %3925 = vst [vmem:[#allocation17_spill] sm:$0xff] %v3433_v28 }
 0x11a   : > { %v1272_v52 = vmul.f32 1.442695, %v1271_v6  ;;  %v3862_v62 = vstv %s3352_s10  ;;  %v1370_v19 = vmul.f32 1.0614054, %v3372_v18  ;;  %v1234_v2 = vadd.f32 1.4214138, %v1233_v13 }
 0x11b   : > { %v1259_v45 = vmul.f32 %v1258_v35, %v3345_v57  ;;  %v3403_v27 = vsel %vm1274_vm11, -1.0, %v3884_v49  ;;  %v1285_v38 = vmul.f32 %v1284_v4, %v3347_v50  ;;  %2130 = vpow2.f32 %v1246_v31  ;;  %s3616_s23 = sld [smem:[#allocation2 + $0x3]] }
 0x11c   : > { %v1345_v51 = vadd.f32 -1.4531521, %v1344_v5  ;;  %v1415_v10 = vand.u32 2147483647, %v3380_v25  ;;  %v1209_v59 = vmul.f32 %v1208_v30, %v3330_v33  ;;  %v3410_v60 = vstv %s3366_s12 }
 0x11d   : > { %v1313_v26 = vadd.f32 %v3862_v62, %v3922_v43  ;;  %v1331_v58 = vmul.f32 %v3263_v17, %v3263_v17  ;;  %2132 = vpow2.f32 %v1272_v52  ;;  %v1310_v44 = vadd.f32 %v3410_v60, %v3923_v47 }
 0x11e   : > { %v1371_v61 = vadd.f32 -1.4531521, %v1370_v19  ;;  %v1416_v46 = vmul.f32 0.3275911, %v1415_v10  ;;  %v1235_v20 = vmul.f32 %v1234_v2, %v3339_v41  ;;  %v1260_v21 = vadd.f32 1.4214138, %v1259_v45 }
 0x11f   : > { %v1286_v42 = vadd.f32 1.4214138, %v1285_v38  ;;  %vm1335_vm12 = vcmp.lt.f32.partialorder %v3263_v17, 0.0  ;;  %v3425_v24 = vadd.f32 %v3410_v60, %v3924_v34  ;;  %v1346_v8 = vmul.f32 %v1345_v51, %v3362_v7 }
 0x120   : > { %v1357_v56 = vmul.f32 %v3267_v54, %v3267_v54  ;;  %v3430_v63 = vadd.f32 1.0, %v1416_v46  ;;  %v1210_v1 = vadd.f32 -0.28449672, %v1209_v59  ;;  %v3436_v29 = vmul.f32 %v3433_v28, %v1313_v26 }
 0x121   : > { %v1332_v6 = vsub.f32 0.0, %v1331_v58  ;;  %v3439_v17 = vpop.eup %2124  ;;  %v3442_v13 = vsel %vm1335_vm12, -1.0, %v3884_v49  ;;  %v1372_v35 = vmul.f32 %v1371_v61, %v3372_v18  ;;  %v1383_v4 = vmul.f32 %v3334_v37, %v3334_v37 }
 0x122   : > { %2134 = vrcp.f32 %v3430_v63  ;;  %v1236_v5 = vadd.f32 -0.28449672, %v1235_v20  ;;  %v1261_v30 = vmul.f32 %v1260_v21, %v3345_v57  ;;  %v1287_v52 = vmul.f32 %v1286_v42, %v3347_v50 }
 0x123   : > { %v2127_v31 = vpop.eup %2126  ;;  %v1409_v19 = vmul.f32 %v3380_v25, %v3380_v25  ;;  %v1347_v45 = vadd.f32 1.4214138, %v1346_v8  ;;  %v1358_v38 = vsub.f32 0.0, %v1357_v56  ;;  %vm1361_vm13 = vcmp.lt.f32.partialorder %v3267_v54, 0.0 }
 0x124   : > { %v3452_v2 = vpop.eup %2128  ;;  %v1393_v51 = vmul.f32 %v2127_v31, %v3364_v22  ;;  %v1211_v10 = vmul.f32 %v1210_v1, %v3330_v33  ;;  %v1333_v58 = vmul.f32 1.442695, %v1332_v6  ;;  %v1373_v61 = vadd.f32 1.4214138, %v1372_v35 }
 0x125   : > { %v3459_v59 = vsub.f32 %v3439_v17, %v3452_v2  ;;  %v1296_v26 = vadd.f32 %v3452_v2, %v3439_v17  ;;  %v1384_v46 = vsub.f32 0.0, %v1383_v4  ;;  %v3464_v21 = vstv %s3419_s14 }
 0x126   : > { %v1394_v20 = vsub.f32 2.0, %v1393_v51  ;;  %v1237_v42 = vmul.f32 %v1236_v5, %v3339_v41  ;;  %v1262_v8 = vadd.f32 -0.28449672, %v1261_v30  ;;  %v1288_v56 = vadd.f32 -0.28449672, %v1287_v52  ;;  %v3926_v51 = vld [vmem:[#allocation11_spill] sm:$0xff] }
 0x127   : > { %v1410_v22 = vsub.f32 0.0, %v1409_v19  ;;  %v1348_v1 = vmul.f32 %v1347_v45, %v3362_v7  ;;  %v1359_v14 = vmul.f32 1.442695, %v1358_v38  ;;  %v3471_v0 = vsel %vm1361_vm13, -1.0, %v3884_v49  ;;  %v3927_v30 = vld [vmem:[#allocation6_spill] sm:$0xff] }
 0x128   : > { %v3473_v62 = vmul.f32 %v2127_v31, %v1394_v20  ;;  %v2131_v6 = vpop.eup %2130  ;;  %v1212_v35 = vadd.f32 0.2548296, %v1211_v10  ;;  %v3476_v4 = vmul.f32 %v1310_v44, %v3459_v59  ;;  %v3479_v5 = vmul.f32 %v1296_v26, %v3926_v51 }
 0x129   : > { %v3483_v52 = vmul.f32 %v3464_v21, %v3927_v30  ;;  %2136 = vpow2.f32 %v1333_v58  ;;  %v1374_v19 = vmul.f32 %v1373_v61, %v3372_v18  ;;  %v1385_v54 = vmul.f32 1.442695, %v1384_v46 }
 0x12a   : > { %v1396_v45 = vmul.f32 1.0614054, %v3473_v62  ;;  %v2133_v31 = vpop.eup %2132  ;;  %v1238_v38 = vadd.f32 0.2548296, %v1237_v42  ;;  %v1263_v10 = vmul.f32 %v1262_v8, %v3345_v57  ;;  %v1289_v44 = vmul.f32 %v1288_v56, %v3347_v50  ;;  %v3928_v8 = vld [vmem:[#allocation7_spill] sm:$0xff] }
 0x12b   : > { %v1411_v20 = vmul.f32 1.442695, %v1410_v22  ;;  %v1349_v28 = vadd.f32 -0.28449672, %v1348_v1  ;;  %2138 = vpow2.f32 %v1359_v14  ;;  %vm1387_vm14 = vcmp.lt.f32.partialorder %v3334_v37, 0.0 }
 0x12c   : > { %v1397_v26 = vadd.f32 -1.4531521, %v1396_v45  ;;  %v1213_v30 = vmul.f32 %v1212_v35, %v3330_v33  ;;  %v3491_v58 = vsub.f32 %v2131_v6, %v2133_v31  ;;  %v1298_v61 = vadd.f32 %v2133_v31, %v2131_v6 }
 0x12d   : > { %v1490_v46 = vand.u32 2147483647, %v3483_v52  ;;  %v1375_v51 = vadd.f32 -0.28449672, %v1374_v19  ;;  %2140 = vpow2.f32 %v1385_v54  ;;  %v3497_v56 = vmul.f32 %v3464_v21, %v3928_v8 }
 0x12e   : > { %v1398_v42 = vmul.f32 %v1397_v26, %v3473_v62  ;;  %v1239_v14 = vmul.f32 %v1238_v38, %v3339_v41  ;;  %v1264_v1 = vadd.f32 0.2548296, %v1263_v10  ;;  %v1290_v45 = vadd.f32 0.2548296, %v1289_v44  ;;  %v3930_v41 = vld [vmem:[#allocation8_spill] sm:$0xff] }
 0x12f   : > { %3929 = vst [vmem:[#allocation18_spill] sm:$0xff] %v3497_v56  ;;  %v2135_v22 = vpop.eup %2134  ;;  %2142 = vpow2.f32 %v1411_v20  ;;  %v1350_v33 = vmul.f32 %v1349_v28, %v3362_v7  ;;  %v3504_v35 = vsel %vm1387_vm14, -1.0, %v3884_v49  ;;  %v1214_v26 = vmul.f32 %v3439_v17, %v1213_v30  ;;  %v3931_v30 = vld [vmem:[#allocation12_spill] sm:$0xff] }
 0x130   : > { %v1399_v19 = vadd.f32 1.4214138, %v1398_v42  ;;  %v1419_v54 = vmul.f32 %v2135_v22, %v3430_v63  ;;  %v1315_v8 = vmul.f32 %v3425_v24, %v3491_v58  ;;  %v1491_v43 = vmul.f32 0.3275911, %v1490_v46 }
 0x131   : > { %v3512_v38 = vmul.f32 %v3464_v21, %v3930_v41  ;;  %v1376_v28 = vmul.f32 %v1375_v51, %v3372_v18  ;;  %v1516_v44 = vand.u32 2147483647, %v3497_v56  ;;  %v1240_v20 = vmul.f32 %v3452_v2, %v1239_v14 }
 0x132   : > { %v1400_v10 = vmul.f32 %v1399_v19, %v3473_v62  ;;  %v1420_v37 = vsub.f32 2.0, %v1419_v54  ;;  %v1265_v63 = vmul.f32 %v1264_v1, %v3345_v57  ;;  %v1291_v17 = vmul.f32 %v1290_v45, %v3347_v50  ;;  %v3932_v54 = vld [vmem:[#allocation10_spill] sm:$0xff] }
 0x133   : > { %v1316_v24 = vmul.f32 %v1298_v61, %v3931_v30  ;;  %v1351_v46 = vadd.f32 0.2548296, %v1350_v33  ;;  %v1517_v41 = vmul.f32 0.3275911, %v1516_v44  ;;  %v1215_v47 = vsub.f32 1.0, %v1214_v26 }
 0x134   : > { %v1401_v42 = vadd.f32 -0.28449672, %v1400_v10  ;;  %v3521_v34 = vmul.f32 %v2135_v22, %v1420_v37  ;;  %v3523_v51 = vadd.f32 1.0, %v1491_v43  ;;  %v1542_v19 = vand.u32 2147483647, %v3512_v38 }
 0x135   : > { %v3528_v56 = vmul.f32 %v3464_v21, %v3932_v54  ;;  %v1377_v2 = vadd.f32 0.2548296, %v1376_v28  ;;  %v3532_v61 = vadd.f32 1.0, %v1517_v41  ;;  %v1266_v22 = vmul.f32 %v2131_v6, %v1265_v63 }
 0x136   : > { %v1402_v57 = vmul.f32 %v1401_v42, %v3473_v62  ;;  %v1422_v50 = vmul.f32 1.0614054, %v3521_v34  ;;  %v2137_v14 = vpop.eup %2136  ;;  %v1292_v1 = vmul.f32 %v2133_v31, %v1291_v17  ;;  %v1543_v45 = vmul.f32 0.3275911, %v1542_v19  ;;  %v3933_v19 = vld [vmem:[#allocation21_spill] sm:$0xff] }
 0x137   : > { %v1241_v33 = vsub.f32 1.0, %v1240_v20  ;;  %v3536_v26 = vadd.f32 %v1316_v24, %v1315_v8  ;;  %v1352_v10 = vmul.f32 %v1351_v46, %v3362_v7  ;;  %v1216_v44 = vmul.f32 %v1215_v47, %v3387_v3 }
 0x138   : > { %v1423_v37 = vadd.f32 -1.4531521, %v1422_v50  ;;  %v2139_v28 = vpop.eup %2138  ;;  %2144 = vrcp.f32 %v3523_v51  ;;  %v3541_v42 = vadd.f32 1.0, %v1543_v45  ;;  %v1568_v6 = vand.u32 2147483647, %v3528_v56 }
 0x139   : > { %v1378_v31 = vmul.f32 %v1377_v2, %v3372_v18  ;;  %v1403_v63 = vadd.f32 0.2548296, %v1402_v57  ;;  %2146 = vrcp.f32 %v3532_v61  ;;  %v1267_v20 = vsub.f32 1.0, %v1266_v22 }
 0x13a   : > { %v1424_v17 = vmul.f32 %v1423_v37, %v3521_v34  ;;  %v2141_v8 = vpop.eup %2140  ;;  %v1293_v7 = vsub.f32 1.0, %v1292_v1  ;;  %2148 = vrcp.f32 %v3541_v42  ;;  %v1569_v24 = vmul.f32 0.3275911, %v1568_v6 }
 0x13b   : > { %v1242_v47 = vmul.f32 %v1241_v33, %v3392_v11  ;;  %v1353_v46 = vmul.f32 %v2137_v14, %v1352_v10  ;;  %v1448_v54 = vadd.f32 %v3410_v60, %v3933_v19  ;;  %v3557_v50 = vmul.f32 %v3464_v21, %v3889_v55  ;;  %v3934_v55 = vld [vmem:[#allocation20_spill] sm:$0xff] }
 0x13c   : > { %v2143_v3 = vpop.eup %2142  ;;  %v1425_v41 = vadd.f32 1.4214138, %v1424_v17  ;;  %v3553_v57 = vadd.f32 1.0, %v1569_v24  ;;  %v1379_v22 = vmul.f32 %v2139_v28, %v1378_v31  ;;  %v1404_v1 = vmul.f32 %v1403_v63, %v3473_v62 }
 0x13d   : > { %v3551_v18 = vsub.f32 %v2141_v8, %v2143_v3  ;;  %v1437_v2 = vadd.f32 %v2143_v3, %v2141_v8  ;;  %v3561_v11 = vsub.f32 %v2137_v14, %v2139_v28  ;;  %v1268_v33 = vmul.f32 %v1267_v20, %v3397_v32 }
 0x13e   : > { %v1426_v45 = vmul.f32 %v1425_v41, %v3521_v34  ;;  %v1294_v10 = vmul.f32 %v1293_v7, %v3403_v27  ;;  %2150 = vrcp.f32 %v3553_v57  ;;  %v1629_v37 = vand.u32 2147483647, %v3557_v50 }
 0x13f   : > { %v1299_v6 = vsub.f32 %v1216_v44, %v1242_v47  ;;  %v1354_v17 = vsub.f32 1.0, %v1353_v46  ;;  %v1447_v31 = vadd.f32 %v3410_v60, %v3934_v55  ;;  %v1451_v62 = vmul.f32 %v1448_v54, %v3551_v18 }
 0x140   : > { %v1427_v24 = vadd.f32 -0.28449672, %v1426_v45  ;;  %v1452_v63 = vmul.f32 %v1437_v2, %v2406_v39  ;;  %v1630_v41 = vmul.f32 0.3275911, %v1629_v37  ;;  %v3573_v32 = vmul.f32 %v3464_v21, %v3890_v53 }
 0x141   : > { %v1319_v27 = vsub.f32 %v3536_v26, %v3476_v4  ;;  %v1380_v20 = vsub.f32 1.0, %v1379_v22  ;;  %v1405_v7 = vmul.f32 %v2141_v8, %v1404_v1  ;;  %v1300_v45 = vadd.f32 %v1242_v47, %v1216_v44 }
 0x142   : > { %v1428_v46 = vmul.f32 %v1427_v24, %v3521_v34  ;;  %v1301_v43 = vsub.f32 %v1268_v33, %v1294_v10  ;;  %v1302_v19 = vadd.f32 %v1294_v10, %v1268_v33  ;;  %v3578_v60 = vadd.f32 1.0, %v1630_v41 }
 0x143   : > { %v1325_v54 = vmul.f32 %v1299_v6, %v2352_v15  ;;  %vm1413_vm15 = vcmp.lt.f32.partialorder %v3380_v25, 0.0  ;;  %v1435_v53 = vadd.f32 %v2139_v28, %v2137_v14  ;;  %v1355_v37 = vmul.f32 %v1354_v17, %v3442_v13 }
 0x144   : > { %v1429_v2 = vadd.f32 0.2548296, %v1428_v46  ;;  %v1453_v4 = vadd.f32 %v1452_v63, %v1451_v62  ;;  %v1454_v26 = vmul.f32 %v1447_v31, %v3561_v11  ;;  %v1655_v8 = vand.u32 2147483647, %v3573_v32 }
 0x145   : > { %v2145_v44 = vpop.eup %2144  ;;  %v1381_v47 = vmul.f32 %v1380_v20, %v3471_v0  ;;  %v1406_v22 = vsub.f32 1.0, %v1405_v7  ;;  %2152 = vrcp.f32 %v3578_v60  ;;  %v1303_v10 = vsub.f32 %v1300_v45, %v1302_v19 }
 0x146   : > { %v1430_v1 = vmul.f32 %v1429_v2, %v3521_v34  ;;  %v2147_v33 = vpop.eup %2146  ;;  %v1324_v14 = vmul.f32 %v1301_v43, %v2354_v16  ;;  %v3935_v28 = vstv %s3352_s10  ;;  %v1656_v6 = vmul.f32 0.3275911, %v1655_v8 }
 0x147   : > { %v1449_v13 = vadd.f32 %v3935_v28, %v3901_v48  ;;  %v2149_v17 = vpop.eup %2148  ;;  %v3936_v24 = vsub.f32 %v3459_v59, %v3491_v58  ;;  %v3937_v31 = vstv %s3360_s11  ;;  %v1321_v62 = vsub.f32 %v1319_v27, %v3479_v5  ;;  %v3609_v27 = vld [vmem:[%s2330_s28] sm:$0xff]  ;;  %s3621_s28 = sld [smem:[#allocation2 + $0x83]] }
 0x148   : > { %v1414_v34 = vsel %vm1413_vm15, -1.0, %v3884_v49  ;;  %v1431_v19 = vmul.f32 %v2143_v3, %v1430_v1  ;;  %v1455_v63 = vsub.f32 %v1453_v4, %v1454_v26  ;;  %v1456_v43 = vmul.f32 %v1435_v53, %v2401_v36 }
 0x149   : > { %v1306_v0 = vmul.f32 %v3937_v31, %v3936_v24  ;;  %v1494_v41 = vmul.f32 %v2145_v44, %v3523_v51  ;;  %v3603_v20 = vadd.f32 1.0, %v1656_v6  ;;  %v1407_v7 = vmul.f32 %v1406_v22, %v3504_v35 }
 0x14a   : > { %v1432_v46 = vsub.f32 1.0, %v1431_v19  ;;  %v1438_v59 = vsub.f32 %v1355_v37, %v1381_v47  ;;  %v1520_v58 = vmul.f32 %v2147_v33, %v3532_v61  ;;  %v1326_v45 = vsub.f32 %v1324_v14, %v1325_v54 }
 0x14b   : > { %v1327_v5 = vmul.f32 %v3436_v29, %v1303_v10  ;;  %v1450_v25 = vmul.f32 %v3609_v27, %v1449_v13  ;;  %v1546_v3 = vmul.f32 %v2149_v17, %v3541_v42  ;;  %v2151_v2 = vpop.eup %2150  ;;  %v1439_v53 = vadd.f32 %v1381_v47, %v1355_v37 }
 0x14c   : > { %v1433_v51 = vmul.f32 %v1432_v46, %v1414_v34  ;;  %v1443_v35 = vsub.f32 %v3561_v11, %v3551_v18  ;;  %2154 = vrcp.f32 %v3603_v20  ;;  %v1307_v29 = vmul.f32 %v1303_v10, %v2373_v23 }
 0x14d   : > { %v1457_v61 = vsub.f32 %v1455_v63, %v1456_v43  ;;  %v1495_v54 = vsub.f32 2.0, %v1494_v41  ;;  %v1572_v4 = vmul.f32 %v2151_v2, %v3553_v57  ;;  %v1460_v8 = vmul.f32 %v1438_v59, %v2352_v15 }
 0x14e   : > { %v1440_v42 = vsub.f32 %v1407_v7, %v1433_v51  ;;  %v1441_v26 = vadd.f32 %v1433_v51, %v1407_v7  ;;  %v1521_v37 = vsub.f32 2.0, %v1520_v58  ;;  %v3938_v18 = vstv %s3382_s13 }
 0x14f   : > { %v1323_v11 = vmul.f32 %v3938_v18, %v1321_v62  ;;  %v1547_v47 = vsub.f32 2.0, %v1546_v3  ;;  %v1573_v22 = vsub.f32 2.0, %v1572_v4  ;;  %v3627_v1 = vmul.f32 %v3464_v21, %v3891_v12 }
 0x150   : > { %v1328_v10 = vadd.f32 %v1327_v5, %v1326_v45  ;;  %v1442_v14 = vsub.f32 %v1439_v53, %v1441_v26  ;;  %v3939_v28 = vmov %v3937_v31  ;;  %v1459_v57 = vmul.f32 %v1440_v42, %v2354_v16 }
 0x151   : > { %v1444_v13 = vmul.f32 %v1443_v35, %v3939_v28  ;;  %v1308_v6 = vsub.f32 %v1306_v0, %v1307_v29  ;;  %v3940_v24 = vmov %v3938_v18  ;;  %v3634_v34 = vmul.f32 %v2145_v44, %v1495_v54  ;;  %v3941_v28 = vld [vmem:[#allocation18_spill] sm:$0xff] }
 0x152   : > { %v1458_v31 = vmul.f32 %v1457_v61, %v3940_v24  ;;  %v1445_v62 = vmul.f32 %v1442_v14, %v2409_v40  ;;  %v1461_v19 = vsub.f32 %v1459_v57, %v1460_v8  ;;  %v1462_v63 = vmul.f32 %v1450_v25, %v1442_v14  ;;  %v2153_v12 = vpop.eup %2152 }
 0x153   : > { %v3637_v43 = vmul.f32 %v2147_v33, %v1521_v37  ;;  %v3639_v41 = vmul.f32 %v2149_v17, %v1547_v47  ;;  %v3641_v7 = vmul.f32 %v2151_v2, %v1573_v22  ;;  %v1681_v46 = vand.u32 2147483647, %v3627_v1 }
 0x154   : > { %v1329_v59 = vadd.f32 %v1328_v10, %v1323_v11  ;;  %v1446_v0 = vsub.f32 %v1444_v13, %v1445_v62  ;;  %v1463_v58 = vadd.f32 %v1462_v63, %v1461_v19  ;;  %v1633_v44 = vmul.f32 %v2153_v12, %v3578_v60 }
 0x155   : > { %v1466_v45 = vstv %s3616_s23  ;;  %v1497_v5 = vmul.f32 1.0614054, %v3634_v34  ;;  %v1523_v33 = vmul.f32 1.0614054, %v3637_v43  ;;  %v1469_v53 = vstv %s3621_s28 }
 0x156   : > { %v1464_v3 = vadd.f32 %v1463_v58, %v1458_v31  ;;  %v1465_v25 = vsub.f32 %v1308_v6, %v1446_v0  ;;  %v1634_v51 = vsub.f32 2.0, %v1633_v44  ;;  %v1549_v17 = vmul.f32 1.0614054, %v3639_v41 }
 0x157   : > { %v1575_v2 = vmul.f32 1.0614054, %v3641_v7  ;;  %v1682_v35 = vmul.f32 0.3275911, %v1681_v46  ;;  %v1484_v54 = vmul.f32 %v3483_v52, %v3483_v52  ;;  %v1498_v26 = vadd.f32 -1.4531521, %v1497_v5 }
 0x158   : > { %v1467_v29 = vmul.f32 %v1466_v45, %v1465_v25  ;;  %v1468_v61 = vsub.f32 %v1329_v59, %v1464_v3  ;;  %v3653_v4 = vmul.f32 %v2153_v12, %v1634_v51  ;;  %v1524_v8 = vadd.f32 -1.4531521, %v1523_v33 }
 0x159   : > { %v2155_v60 = vpop.eup %2154  ;;  %v1550_v18 = vadd.f32 -1.4531521, %v1549_v17  ;;  %v1576_v11 = vadd.f32 -1.4531521, %v1575_v2  ;;  %v1683_v47 = vadd.f32 1.0, %v1682_v35  ;;  %v3658_v22 = vmul.f32 %v3464_v21, %v3921_v9 }
 0x15a   : > { %v1470_v42 = vmul.f32 %v1469_v53, %v1468_v61  ;;  %v1659_v37 = vmul.f32 %v2155_v60, %v3603_v20  ;;  %v1485_v14 = vsub.f32 0.0, %v1484_v54  ;;  %v1510_v13 = vmul.f32 %v3941_v28, %v3941_v28 }
 0x15b   : > { %v1536_v6 = vmul.f32 %v3512_v38, %v3512_v38  ;;  %v1562_v24 = vmul.f32 %v3528_v56, %v3528_v56  ;;  %v1636_v20 = vmul.f32 1.0614054, %v3653_v4  ;;  %2156 = vrcp.f32 %v1683_v47 }
 0x15c   : > { %v1471_v10 = vadd.f32 %v1470_v42, %v1467_v29  ;;  %v1660_v57 = vsub.f32 2.0, %v1659_v37  ;;  %v1499_v31 = vmul.f32 %v1498_v26, %v3634_v34  ;;  %v1525_v9 = vmul.f32 %v1524_v8, %v3637_v43 }
 0x15d   : > { %v1551_v62 = vmul.f32 %v1550_v18, %v3639_v41  ;;  %v1577_v19 = vmul.f32 %v1576_v11, %v3641_v7  ;;  %v1707_v63 = vand.u32 2147483647, %v3658_v22  ;;  %v1486_v12 = vmul.f32 1.442695, %v1485_v14 }
 0x15e   : > { %1967 = vst [vmem:[%s2732_s18 + $0x18] sm:$0xff] %v1471_v10  ;;  %v3670_v21 = vmul.f32 %v2155_v60, %v1660_v57  ;;  %v1511_v46 = vsub.f32 0.0, %v1510_v13  ;;  %v1537_v0 = vsub.f32 0.0, %v1536_v6  ;;  %v1563_v58 = vsub.f32 0.0, %v1562_v24 }
 0x15f   : > { %v1637_v44 = vadd.f32 -1.4531521, %v1636_v20  ;;  %v1708_v45 = vmul.f32 0.3275911, %v1707_v63  ;;  %v1500_v5 = vadd.f32 1.4214138, %v1499_v31  ;;  %v1623_v2 = vmul.f32 %v3557_v50, %v3557_v50 }
 0x160   : > { %v1662_v59 = vmul.f32 1.0614054, %v3670_v21  ;;  %v1526_v3 = vadd.f32 1.4214138, %v1525_v9  ;;  %v1552_v33 = vadd.f32 1.4214138, %v1551_v62  ;;  %v1649_v61 = vmul.f32 %v3573_v32, %v3573_v32 }
 0x161   : > { %v1578_v51 = vadd.f32 1.4214138, %v1577_v19  ;;  %v1709_v53 = vadd.f32 1.0, %v1708_v45  ;;  %v1512_v17 = vmul.f32 1.442695, %v1511_v46  ;;  %v1638_v29 = vmul.f32 %v1637_v44, %v3653_v4 }
 0x162   : > { %v1663_v25 = vadd.f32 -1.4531521, %v1662_v59  ;;  %v1538_v35 = vmul.f32 1.442695, %v1537_v0  ;;  %v1501_v60 = vmul.f32 %v1500_v5, %v3634_v34  ;;  %v1527_v42 = vmul.f32 %v1526_v3, %v3637_v43 }
 0x163   : > { %v1564_v26 = vmul.f32 1.442695, %v1563_v58  ;;  %2158 = vrcp.f32 %v1709_v53  ;;  %v1553_v8 = vmul.f32 %v1552_v33, %v3639_v41  ;;  %v1579_v37 = vmul.f32 %v1578_v51, %v3641_v7 }
 0x164   : > { %v1664_v54 = vmul.f32 %v1663_v25, %v3670_v21  ;;  %2160 = vpow2.f32 %v1486_v12  ;;  %v1675_v18 = vmul.f32 %v3627_v1, %v3627_v1  ;;  %v1624_v11 = vsub.f32 0.0, %v1623_v2 }
 0x165   : > { %2162 = vpow2.f32 %v1512_v17  ;;  %v1701_v10 = vmul.f32 %v3658_v22, %v3658_v22  ;;  %v1639_v14 = vadd.f32 1.4214138, %v1638_v29  ;;  %v1650_v13 = vsub.f32 0.0, %v1649_v61 }
 0x166   : > { %2164 = vpow2.f32 %v1538_v35  ;;  %v1665_v57 = vadd.f32 1.4214138, %v1664_v54  ;;  %v1502_v24 = vadd.f32 -0.28449672, %v1501_v60  ;;  %v1528_v20 = vadd.f32 -0.28449672, %v1527_v42 }
 0x167   : > { %2166 = vpow2.f32 %v1564_v26  ;;  %v1554_v31 = vadd.f32 -0.28449672, %v1553_v8  ;;  %v1580_v9 = vadd.f32 -0.28449672, %v1579_v37  ;;  %v1676_v62 = vsub.f32 0.0, %v1675_v18 }
 0x168   : > { %v2157_v6 = vpop.eup %2156  ;;  %v1625_v63 = vmul.f32 1.442695, %v1624_v11  ;;  %v1702_v12 = vsub.f32 0.0, %v1701_v10  ;;  %v1640_v46 = vmul.f32 %v1639_v14, %v3653_v4  ;;  %v1651_v59 = vmul.f32 1.442695, %v1650_v13 }
 0x169   : > { %v1685_v19 = vmul.f32 %v2157_v6, %v1683_v47  ;;  %v1666_v0 = vmul.f32 %v1665_v57, %v3670_v21  ;;  %v1503_v44 = vmul.f32 %v1502_v24, %v3634_v34  ;;  %v1529_v45 = vmul.f32 %v1528_v20, %v3637_v43 }
 0x16a   : > { %v1555_v5 = vmul.f32 %v1554_v31, %v3639_v41  ;;  %v1581_v3 = vmul.f32 %v1580_v9, %v3641_v7  ;;  %v1677_v25 = vmul.f32 1.442695, %v1676_v62  ;;  %2168 = vpow2.f32 %v1625_v63 }
 0x16b   : > { %v1686_v58 = vsub.f32 2.0, %v1685_v19  ;;  %v1703_v33 = vmul.f32 1.442695, %v1702_v12  ;;  %v1641_v51 = vadd.f32 -0.28449672, %v1640_v46  ;;  %2170 = vpow2.f32 %v1651_v59 }
 0x16c   : > { %v1667_v17 = vadd.f32 -0.28449672, %v1666_v0  ;;  %vm1488_vm0 = vcmp.lt.f32.partialorder %v3483_v52, 0.0  ;;  %v1504_v35 = vadd.f32 0.2548296, %v1503_v44  ;;  %2172 = vpow2.f32 %v1677_v25 }
 0x16d   : > { %v3698_v47 = vmul.f32 %v2157_v6, %v1686_v58  ;;  %v1530_v29 = vadd.f32 0.2548296, %v1529_v45  ;;  %v1556_v54 = vadd.f32 0.2548296, %v1555_v5  ;;  %v1582_v60 = vadd.f32 0.2548296, %v1581_v3 }
 0x16e   : > { %vm1514_vm1 = vcmp.lt.f32.partialorder %v3941_v28, 0.0  ;;  %2174 = vpow2.f32 %v1703_v33  ;;  %vm1540_vm2 = vcmp.lt.f32.partialorder %v3512_v38, 0.0  ;;  %v1642_v18 = vmul.f32 %v1641_v51, %v3653_v4  ;;  %v3943_v3 = vld [vmem:[#allocation14_spill] sm:$0xff]  ;;  %v3944_v33 = vld [vmem:[#allocation9_spill] sm:$0xff] }
 0x16f   : > { %v1688_v2 = vmul.f32 1.0614054, %v3698_v47  ;;  %v1668_v11 = vmul.f32 %v1667_v17, %v3670_v21  ;;  %v1489_v13 = vsel %vm1488_vm0, -1.0, %v3884_v49  ;;  %v1505_v57 = vmul.f32 %v1504_v35, %v3634_v34 }
 0x170   : > { %v2159_v61 = vpop.eup %2158  ;;  %vm1566_vm3 = vcmp.lt.f32.partialorder %v3528_v56, 0.0  ;;  %v1531_v38 = vmul.f32 %v1530_v29, %v3637_v43  ;;  %v1557_v24 = vmul.f32 %v1556_v54, %v3639_v41  ;;  %v1583_v20 = vmul.f32 %v1582_v60, %v3641_v7  ;;  %v3942_v7 = vld [vmem:[#allocation13_spill] sm:$0xff] }
 0x171   : > { %v1689_v42 = vadd.f32 -1.4531521, %v1688_v2  ;;  %v2161_v26 = vpop.eup %2160  ;;  %v1711_v8 = vmul.f32 %v2159_v61, %v1709_v53  ;;  %v1515_v9 = vsel %vm1514_vm1, -1.0, %v3884_v49  ;;  %v1541_v52 = vsel %vm1540_vm2, -1.0, %v3884_v49 }
 0x172   : > { %v2163_v37 = vpop.eup %2162  ;;  %v1601_v62 = vstv %s3694_s15  ;;  %v1604_v19 = vstv %s3700_s16  ;;  %v1643_v63 = vadd.f32 0.2548296, %v1642_v18  ;;  %v1669_v12 = vadd.f32 0.2548296, %v1668_v11 }
 0x173   : > { %v1690_v10 = vmul.f32 %v1689_v42, %v3698_v47  ;;  %v2165_v14 = vpop.eup %2164  ;;  %v1712_v53 = vsub.f32 2.0, %v1711_v8  ;;  %v1506_v46 = vmul.f32 %v2161_v26, %v1505_v57  ;;  %v1567_v41 = vsel %vm1566_vm3, -1.0, %v3884_v49 }
 0x174   : > { %v2167_v6 = vpop.eup %2166  ;;  %v1602_v59 = vadd.f32 %v1601_v62, %v3942_v7  ;;  %v1532_v0 = vmul.f32 %v2163_v37, %v1531_v38  ;;  %v1558_v58 = vmul.f32 %v2165_v14, %v1557_v24  ;;  %v1603_v25 = vadd.f32 %v1601_v62, %v3943_v3 }
 0x175   : > { %v1691_v31 = vadd.f32 1.4214138, %v1690_v10  ;;  %v3722_v34 = vmul.f32 %v2159_v61, %v1712_v53  ;;  %v1584_v44 = vmul.f32 %v2167_v6, %v1583_v20  ;;  %v3731_v5 = vsub.f32 %v2165_v14, %v2167_v6 }
 0x176   : > { %v3737_v51 = vadd.f32 %v1604_v19, %v3944_v33  ;;  %v1590_v56 = vadd.f32 %v2167_v6, %v2165_v14  ;;  %v1644_v35 = vmul.f32 %v1643_v63, %v3653_v4  ;;  %v1670_v29 = vmul.f32 %v1669_v12, %v3670_v21 }
 0x177   : > { %v1692_v43 = vmul.f32 %v1691_v31, %v3698_v47  ;;  %v1714_v28 = vmul.f32 1.0614054, %v3722_v34  ;;  %v2169_v2 = vpop.eup %2168  ;;  %v1507_v60 = vsub.f32 1.0, %v1506_v46  ;;  %vm1627_vm4 = vcmp.lt.f32.partialorder %v3557_v50, 0.0  ;;  %v3945_v31 = vld [vmem:[#allocation21_spill] sm:$0xff] }
 0x178   : > { %v2171_v54 = vpop.eup %2170  ;;  %vm1653_vm5 = vcmp.lt.f32.partialorder %v3573_v32, 0.0  ;;  %v1533_v8 = vsub.f32 1.0, %v1532_v0  ;;  %v1559_v18 = vsub.f32 1.0, %v1558_v58  ;;  %v1585_v11 = vsub.f32 1.0, %v1584_v44  ;;  %v3946_v32 = vld [vmem:[#allocation11_spill] sm:$0xff] }
 0x179   : > { %v1693_v45 = vadd.f32 -0.28449672, %v1692_v43  ;;  %v1715_v17 = vadd.f32 -1.4531521, %v1714_v28  ;;  %v2173_v57 = vpop.eup %2172  ;;  %v3745_v14 = vsub.f32 %v2161_v26, %v2163_v37  ;;  %v1588_v4 = vadd.f32 %v2163_v37, %v2161_v26 }
 0x17a   : > { %v1607_v21 = vmul.f32 %v1603_v25, %v3731_v5  ;;  %v1608_v38 = vmul.f32 %v1590_v56, %v3931_v30  ;;  %v1645_v24 = vmul.f32 %v2169_v2, %v1644_v35  ;;  %v1671_v20 = vmul.f32 %v2171_v54, %v1670_v29 }
 0x17b   : > { %v1694_v61 = vmul.f32 %v1693_v45, %v3698_v47  ;;  %v1716_v42 = vmul.f32 %v1715_v17, %v3722_v34  ;;  %v2175_v6 = vpop.eup %2174  ;;  %v1740_v63 = vadd.f32 %v1601_v62, %v3945_v31  ;;  %v1508_v28 = vmul.f32 %v1507_v60, %v1489_v13 }
 0x17c   : > { %v3752_v46 = vsub.f32 %v2173_v57, %v2175_v6  ;;  %v1729_v7 = vadd.f32 %v2175_v6, %v2173_v57  ;;  %v1534_v0 = vmul.f32 %v1533_v8, %v1515_v9  ;;  %v1560_v26 = vmul.f32 %v1559_v18, %v1541_v52 }
 0x17d   : > { %v1695_v10 = vadd.f32 0.2548296, %v1694_v61  ;;  %v1717_v53 = vadd.f32 1.4214138, %v1716_v42  ;;  %v1586_v37 = vmul.f32 %v1585_v11, %v1567_v41  ;;  %v1610_v58 = vmul.f32 %v1602_v59, %v3745_v14 }
 0x17e   : > { %v1628_v30 = vsel %vm1627_vm4, -1.0, %v3884_v49  ;;  %v1646_v45 = vsub.f32 1.0, %v1645_v24  ;;  %v1672_v3 = vsub.f32 1.0, %v1671_v20  ;;  %v1726_v25 = vsub.f32 %v2169_v2, %v2171_v54 }
 0x17f   : > { %v1696_v12 = vmul.f32 %v1695_v10, %v3698_v47  ;;  %v1718_v43 = vmul.f32 %v1717_v53, %v3722_v34  ;;  %v1654_v47 = vsel %vm1653_vm5, -1.0, %v3884_v49  ;;  %v1739_v13 = vadd.f32 %v1601_v62, %v3934_v55  ;;  %v3947_v53 = vld [vmem:[#allocation17_spill] sm:$0xff] }
 0x180   : > { %v1743_v41 = vmul.f32 %v1740_v63, %v3752_v46  ;;  %v1744_v59 = vmul.f32 %v1729_v7, %v2406_v39  ;;  %v1591_v50 = vsub.f32 %v1508_v28, %v1534_v0  ;;  %v1593_v33 = vsub.f32 %v1560_v26, %v1586_v37 }
 0x181   : > { %v1719_v44 = vadd.f32 -0.28449672, %v1718_v43  ;;  %v1697_v9 = vmul.f32 %v2173_v57, %v1696_v12  ;;  %v1609_v17 = vadd.f32 %v1608_v38, %v1607_v21  ;;  %v1612_v56 = vmul.f32 %v1588_v4, %v3946_v32 }
 0x182   : > { %v1592_v35 = vadd.f32 %v1534_v0, %v1508_v28  ;;  %v1594_v29 = vadd.f32 %v1586_v37, %v1560_v26  ;;  %vm1679_vm6 = vcmp.lt.f32.partialorder %v3627_v1, 0.0  ;;  %v1647_v62 = vmul.f32 %v1646_v45, %v1628_v30 }
 0x183   : > { %v1720_v52 = vmul.f32 %v1719_v44, %v3722_v34  ;;  %vm1705_vm7 = vcmp.lt.f32.partialorder %v3658_v22, 0.0  ;;  %v1727_v61 = vadd.f32 %v2171_v54, %v2169_v2  ;;  %v1746_v60 = vmul.f32 %v1739_v13, %v1726_v25 }
 0x184   : > { %v1673_v39 = vmul.f32 %v1672_v3, %v1654_v47  ;;  %v1698_v42 = vsub.f32 1.0, %v1697_v9  ;;  %v1745_v18 = vadd.f32 %v1744_v59, %v1743_v41  ;;  %v1611_v11 = vsub.f32 %v1609_v17, %v1610_v58 }
 0x185   : > { %v1721_v55 = vadd.f32 0.2548296, %v1720_v52  ;;  %v1616_v10 = vmul.f32 %v1593_v33, %v2354_v16  ;;  %v1617_v57 = vmul.f32 %v1591_v50, %v2352_v15  ;;  %v1680_v1 = vsel %vm1679_vm6, -1.0, %v3884_v49 }
 0x186   : > { %v1595_v4 = vsub.f32 %v1592_v35, %v1594_v29  ;;  %v1597_v21 = vstv %s3754_s17  ;;  %v1606_v2 = vmul.f32 %v3947_v53, %v3737_v51  ;;  %v1596_v38 = vsub.f32 %v3745_v14, %v3731_v5  ;;  %v1816_v35 = vld [vmem:[%s2732_s18 + $0x10] sm:$0xff] (%p2280_p4)  ;;  %v1818_v29 = vld [vmem:[%s2732_s18 + $0x18] sm:$0xff] (%p2280_p4) }
 0x187   : > { %v1722_v8 = vmul.f32 %v1721_v55, %v3722_v34  ;;  %v1706_v34 = vsel %vm1705_vm7, -1.0, %v3884_v49  ;;  %v1741_v24 = vadd.f32 %v1604_v19, %v3901_v48  ;;  %v1748_v20 = vmul.f32 %v1727_v61, %v2401_v36  ;;  %1817 = vst [vmem:[%s1775_s7 + $0x20] sm:$0xff] (%p2280_p4), %v1816_v35  ;;  %1819 = vst [vmem:[%s1775_s7 + $0x30] sm:$0xff] (%p2280_p4), %v1818_v29 }
 0x188   : > { %v1699_v31 = vmul.f32 %v1698_v42, %v1680_v1  ;;  %v1730_v12 = vsub.f32 %v1647_v62, %v1673_v39  ;;  %v1747_v43 = vsub.f32 %v1745_v18, %v1746_v60  ;;  %v1613_v7 = vsub.f32 %v1611_v11, %v1612_v56 }
 0x189   : > { %v1723_v54 = vmul.f32 %v2175_v6, %v1722_v8  ;;  %v1614_v28 = vstv %s3767_s20  ;;  %v1618_v51 = vsub.f32 %v1616_v10, %v1617_v57  ;;  %v1619_v6 = vmul.f32 %v1606_v2, %v1595_v4 }
 0x18a   : > { %v1731_v26 = vadd.f32 %v1673_v39, %v1647_v62  ;;  %v1735_v5 = vsub.f32 %v1726_v25, %v3752_v46  ;;  %v1598_v22 = vmul.f32 %v1597_v21, %v1596_v38  ;;  %v1599_v49 = vmul.f32 %v1595_v4, %v2373_v23 }
 0x18b   : > { %v1724_v63 = vsub.f32 1.0, %v1723_v54  ;;  %v1742_v48 = vmul.f32 %v3609_v27, %v1741_v24  ;;  %v1749_v14 = vsub.f32 %v1747_v43, %v1748_v20  ;;  %v1752_v37 = vmul.f32 %v1730_v12, %v2352_v15 }
 0x18c   : > { %v1615_v58 = vmul.f32 %v1614_v28, %v1613_v7  ;;  %v1620_v30 = vadd.f32 %v1619_v6, %v1618_v51  ;;  %v1736_v44 = vmul.f32 %v1735_v5, %v1597_v21  ;;  %v1600_v3 = vsub.f32 %v1598_v22, %v1599_v49 }
 0x18d   : > { %v1725_v0 = vmul.f32 %v1724_v63, %v1706_v34  ;;  %v1750_v25 = vmul.f32 %v1749_v14, %v1614_v28  ;;  %v1758_v41 = vstv %s1968_s24  ;;  %v1761_v50 = vstv %s1969_s27 }
 0x18e   : > { %v1621_v27 = vadd.f32 %v1620_v30, %v1615_v58 }
 0x18f   : > { %v1732_v19 = vsub.f32 %v1699_v31, %v1725_v0  ;;  %v1733_v36 = vadd.f32 %v1725_v0, %v1699_v31 }
 0x191   : > { %v1734_v47 = vsub.f32 %v1731_v26, %v1733_v36  ;;  %v1751_v45 = vmul.f32 %v1732_v19, %v2354_v16  ;;  %v1812_v16 = vld [vmem:[%s2732_s18] sm:$0xff] (%p2280_p4) }
 0x192   : > { %1813 = vst [vmem:[%s1775_s7] sm:$0xff] (%p2280_p4), %v1812_v16 }
 0x193   : > { %v1737_v46 = vmul.f32 %v1734_v47, %v2409_v40  ;;  %v1753_v23 = vsub.f32 %v1751_v45, %v1752_v37  ;;  %v1754_v13 = vmul.f32 %v1742_v48, %v1734_v47  ;;  %v1814_v40 = vld [vmem:[%s2732_s18 + $0x8] sm:$0xff] (%p2280_p4) }
 0x194   : > { %1815 = vst [vmem:[%s1775_s7 + $0x10] sm:$0xff] (%p2280_p4), %v1814_v40 }
 0x195   : > { %v1738_v9 = vsub.f32 %v1736_v44, %v1737_v46  ;;  %v1755_v52 = vadd.f32 %v1754_v13, %v1753_v23 }
 0x197   : > { %v1756_v59 = vadd.f32 %v1755_v52, %v1750_v25  ;;  %v1757_v15 = vsub.f32 %v1600_v3, %v1738_v9 }
 0x199   : > { %v1759_v33 = vmul.f32 %v1758_v41, %v1757_v15  ;;  %v1760_v17 = vsub.f32 %v1621_v27, %v1756_v59 }
 0x19b   : > { %v1762_v32 = vmul.f32 %v1761_v50, %v1760_v17  ;;  %1773 = sbr.rel (!%p2280_p4) target bundleno = 424 (0x1a8), region = 48 }
 0x19d   : > { %v1763_v56 = vadd.f32 %v1762_v32, %v1759_v33 }
 0x19f   : > { %1975 = vst [vmem:[%s2732_s18 + $0x20] sm:$0xff] %v1763_v56 }
 0x1a6   : > { %v1820_v55 = vld [vmem:[%s2732_s18 + $0x20] sm:$0xff] }
 0x1a7   : > { %1821 = vst [vmem:[%s1775_s7 + $0x40] sm:$0xff] %v1820_v55 }
 0x1a8 PF: > { %p13_p4 = scmp.ge.s32.totalorder %s2270_s22, 4   ;;  %s3948_s18 = smov %s2217_s19 }
 0x1a9   : > { %s3949_s19 = smov %s2278_s25  ;;  %s3950_s20 = smov %s2270_s22 }
 0x1aa   :  { %15 = sbr.rel (!%p13_p4) target bundleno = 2 (0x2), region = 126 }
 0x1af   :  { %1837 = vsyncpa [#allocation3], 1 }
 0x1b0   :  { %1839 = vsyncpa [#allocation3 + $0x1], 1 }

</bundles_post_ra>
